<compile_context>
chip_gen: v7x
topology: tpu7x:2x2x1
jax: 0.10.0
libtpu: 0.0.40
codegen_flags: <defaults>
</compile_context>

<pallas_src>
import jax
import jax.numpy as jnp
from jax.experimental import pallas as pl
from jax.experimental.pallas import tpu as pltpu

# ---------------- model configuration (small, backbone_args-consistent) -------
B = 2                      # batch
C = 1                      # in_channels
IMG = 16                   # img_size (cubic)
PATCH = 8                  # patch_size (cubic)
HIDDEN = 32                # hidden_size
MLP_DIM = 64               # mlp_dim
NUM_LAYERS = 2             # num_layers
NUM_HEADS = 4              # num_heads
HEAD_DIM = HIDDEN // NUM_HEADS
N_PATCHES = (IMG // PATCH) ** 3          # 8
SEQ = N_PATCHES + 1                      # +CLS token -> 9
SEQ_PAD = 16                             # per-batch rows padded to a sublane multiple
TOK_ROWS = B * SEQ_PAD                   # 32 flat token rows (batch-major)
PATCH_DIM = C * PATCH ** 3               # 512
N_HEAD_OUT = 1 + 1 + 3 + 3 + 3           # 11
HEAD_PAD = 128                           # lane-dense padded classifier width
EPS = 1e-5                               # nn.LayerNorm default eps
NEG = -1e30                              # additive mask for invalid keys
SCALE = HEAD_DIM ** -0.5

# ---- packed "vecs" slab row layout (all blocks 8-row aligned, 128 lanes wide) ----
LAYER_ROWS = 8                                   # 7 used rows per layer, 1 pad
R_TOK = 0                                        # 32 rows: tok_init (CLS/pos/bias)
R_HM = R_TOK + TOK_ROWS                          # 32: 4 head-mask rows (8 reserved)
R_BIAS = R_HM + 8                                # 40: 128 rows head-stacked attn bias
R_LAYER = R_BIAS + NUM_HEADS * TOK_ROWS          # 168: per-layer vectors
R_NORM = R_LAYER + NUM_LAYERS * LAYER_ROWS       # 184: norm_w, norm_b
R_HEADB = R_NORM + 8                             # 192: head bias (128 lanes)
R_HEADW = R_HEADB + 8                            # 200: 32 rows padded head weight
VEC_ROWS = R_HEADW + HIDDEN                      # 232 rows total
WMAT_LANES = 4 * HIDDEN + MLP_DIM                # 192 = qkv(96) | out_w(32) | mlp_w1(64)


def _layernorm(x, w, b):
    mu = jnp.mean(x, axis=-1, keepdims=True)
    var = jnp.mean(jnp.square(x - mu), axis=-1, keepdims=True)
    return (x - mu) * jax.lax.rsqrt(var + EPS) * w + b


# ------------------------------ fused kernel ----------------------------------
def fused_vit_kernel(xp_ref, patch_w_ref, wmat_ref, wmat2_ref, vecs_ref, o_ref):
    f32 = jnp.float32

    # ---- loop-invariant pieces of the packed vector slab (hoisted once) ----
    tok_init = vecs_ref[R_TOK:R_TOK + TOK_ROWS, :HIDDEN]                    # (32, 32)
    hm = vecs_ref[R_HM:R_HM + NUM_HEADS, :HIDDEN]                           # (4, 32)
    attn_bias = vecs_ref[R_BIAS:R_BIAS + NUM_HEADS * TOK_ROWS, :TOK_ROWS]   # (128, 32)

    # Patch embedding: xp rows already in padded token layout; CLS / pos-emb /
    # conv-bias rows are baked into tok_init, so one matmul + add suffices.
    x = jnp.dot(xp_ref[...], patch_w_ref[...], preferred_element_type=f32) + tok_init

    for L in range(NUM_LAYERS):                  # static, unrolled
        base = R_LAYER + L * LAYER_ROWS
        ln1_w = vecs_ref[base + 0:base + 1, :HIDDEN]
        ln1_b = vecs_ref[base + 1:base + 2, :HIDDEN]
        ln2_w = vecs_ref[base + 2:base + 3, :HIDDEN]
        ln2_b = vecs_ref[base + 3:base + 4, :HIDDEN]
        out_b = vecs_ref[base + 4:base + 5, :HIDDEN]
        mlp_b2 = vecs_ref[base + 5:base + 6, :HIDDEN]
        mlp_b1 = vecs_ref[base + 6:base + 7, :MLP_DIM]
        wL = wmat_ref[L]                                                    # (32, 192)

        # ---------------- self-attention sub-layer ----------------
        xn = _layernorm(x, ln1_w, ln1_b)
        # single fused qkv matmul (Wq pre-scaled by 1/sqrt(head_dim) wrapper-side)
        qkv = jnp.dot(xn, wL[:, 0:3 * HIDDEN], preferred_element_type=f32)  # (32, 96)
        q = qkv[:, 0:HIDDEN]
        k = qkv[:, HIDDEN:2 * HIDDEN]
        v = qkv[:, 2 * HIDDEN:3 * HIDDEN]

        # per-head masked queries stacked along sublanes: (NH*TOK, HID) - free reshape
        qh = (q[None, :, :] * hm[:, None, :]).reshape(NUM_HEADS * TOK_ROWS, HIDDEN)
        # scores for all heads as ONE 2D MXU matmul, M=128 rows
        s = jnp.dot(qh, k.T, preferred_element_type=f32) + attn_bias        # (128, 32)
        m = jnp.max(s, axis=-1, keepdims=True)
        e = jnp.exp(s - m)
        p = e * pl.reciprocal(jnp.sum(e, axis=-1, keepdims=True), approx=True)

        # context for all heads as ONE 2D MXU matmul, then head-select + merge
        ctx = jnp.dot(p, v, preferred_element_type=f32)                     # (128, 32)
        ctx = ctx.reshape(NUM_HEADS, TOK_ROWS, HIDDEN)
        attn = jnp.sum(ctx * hm[:, None, :], axis=0)        # == concat of head outputs

        x = x + jnp.dot(attn, wL[:, 3 * HIDDEN:4 * HIDDEN],
                        preferred_element_type=f32) + out_b

        # ---------------- MLP sub-layer ----------------
        xn2 = _layernorm(x, ln2_w, ln2_b)
        h1 = jnp.dot(xn2, wL[:, 4 * HIDDEN:4 * HIDDEN + MLP_DIM],
                     preferred_element_type=f32) + mlp_b1
        # TODO(synk): PyTorch nn.GELU() is exact-erf; tanh approximation used for
        # robust Mosaic lowering (difference ~1e-3).
        h1 = jax.nn.gelu(h1, approximate=True)
        x = x + jnp.dot(h1, wmat2_ref[L], preferred_element_type=f32) + mlp_b2

    # Final LayerNorm + fused 5-head classifier, 128-lane dense store.
    norm_w = vecs_ref[R_NORM:R_NORM + 1, :HIDDEN]
    norm_b = vecs_ref[R_NORM + 1:R_NORM + 2, :HIDDEN]
    head_b = vecs_ref[R_HEADB:R_HEADB + 1, :]                               # (1, 128)
    head_w = vecs_ref[R_HEADW:R_HEADW + HIDDEN, :]                          # (32, 128)
    xf = _layernorm(x, norm_w, norm_b)
    logits = jnp.dot(xf, head_w, preferred_element_type=f32) + head_b
    o_ref[...] = logits.astype(o_ref.dtype)


# ------------------------------ glue / forward ---------------------------------
def extract_patches(x):
    # x: (B, C, D, H, W) NCDHW -> (B, N_PATCHES, C*p^3); matches Conv3d
    # (kernel=stride=patch) followed by flatten(2).transpose(1,2).
    b, c, d, h, w = x.shape
    p = PATCH
    x = x.reshape(b, c, d // p, p, h // p, p, w // p, p)
    x = x.transpose(0, 2, 4, 6, 1, 3, 5, 7)          # (B, Dp, Hp, Wp, C, p, p, p)
    return x.reshape(b, N_PATCHES, PATCH_DIM)


def forward(x, params):
    f32 = jnp.float32
    xp = extract_patches(x).astype(f32)                       # (B, N_PATCHES, PATCH_DIM)

    # --- wrapper-side layout plumbing (pure XLA glue, no kernel cost) ---
    # patches placed into padded token rows: row b*SEQ_PAD + 1 + p  holds patch p.
    xp_pad = jnp.zeros((B, SEQ_PAD, PATCH_DIM), f32)
    xp_pad = xp_pad.at[:, 1:1 + N_PATCHES, :].set(xp)
    xp_pad = xp_pad.reshape(TOK_ROWS, PATCH_DIM)

    # tok_init: CLS at row b*SEQ_PAD, (conv bias + pos emb) on patch rows, 0 padding.
    tok_init = jnp.zeros((B, SEQ_PAD, HIDDEN), f32)
    tok_init = tok_init.at[:, 0, :].set(params["cls"][0])
    tok_init = tok_init.at[:, 1:1 + N_PATCHES, :].set(params["patch_b"] + params["pos"])
    tok_init = tok_init.reshape(TOK_ROWS, HIDDEN)

    # per-head 0/1 lane mask over the HIDDEN feature axis
    col_head = jnp.arange(HIDDEN) // HEAD_DIM
    head_mask = (col_head[None, :] == jnp.arange(NUM_HEADS)[:, None]).astype(f32)

    # additive attention bias: 0 for (same batch, real token key), NEG otherwise,
    # pre-tiled to the head-stacked (NUM_HEADS*TOK_ROWS, TOK_ROWS) kernel shape.
    row_b = jnp.arange(TOK_ROWS) // SEQ_PAD
    col_s = jnp.arange(TOK_ROWS) % SEQ_PAD
    valid = (row_b[:, None] == row_b[None, :]) & (col_s[None, :] < SEQ)
    attn_bias = jnp.where(valid, 0.0, NEG).astype(f32)
    attn_bias_stk = jnp.tile(attn_bias, (NUM_HEADS, 1))       # (128, 32)

    # stack per-layer params and pack into slabs -> 5 DMAs total
    def _stack(name):
        return jnp.stack([lp[name] for lp in params["layers"]], axis=0)

    qkv_w = _stack("qkv_w")                                   # (L, H, 3H)
    qkv_w = qkv_w.at[:, :, :HIDDEN].multiply(SCALE)           # fold 1/sqrt(dh) into Wq
    wmat = jnp.concatenate([qkv_w, _stack("out_w"), _stack("mlp_w1")], axis=2)
    wmat2 = _stack("mlp_w2")                                  # (L, MLP_DIM, H)

    vecs = jnp.zeros((VEC_ROWS, HEAD_PAD), f32)
    vecs = vecs.at[R_TOK:R_TOK + TOK_ROWS, :HIDDEN].set(tok_init)
    vecs = vecs.at[R_HM:R_HM + NUM_HEADS, :HIDDEN].set(head_mask)
    vecs = vecs.at[R_BIAS:R_BIAS + NUM_HEADS * TOK_ROWS, :TOK_ROWS].set(attn_bias_stk)
    for L, lp in enumerate(params["layers"]):
        base = R_LAYER + L * LAYER_ROWS
        vecs = vecs.at[base + 0, :HIDDEN].set(lp["ln1_w"][0])
        vecs = vecs.at[base + 1, :HIDDEN].set(lp["ln1_b"][0])
        vecs = vecs.at[base + 2, :HIDDEN].set(lp["ln2_w"][0])
        vecs = vecs.at[base + 3, :HIDDEN].set(lp["ln2_b"][0])
        vecs = vecs.at[base + 4, :HIDDEN].set(lp["out_b"][0])
        vecs = vecs.at[base + 5, :HIDDEN].set(lp["mlp_b2"][0])
        vecs = vecs.at[base + 6, :MLP_DIM].set(lp["mlp_b1"][0])
    vecs = vecs.at[R_NORM, :HIDDEN].set(params["norm_w"][0])
    vecs = vecs.at[R_NORM + 1, :HIDDEN].set(params["norm_b"][0])
    vecs = vecs.at[R_HEADB, :N_HEAD_OUT].set(params["head_b"][0])
    vecs = vecs.at[R_HEADW:R_HEADW + HIDDEN, :N_HEAD_OUT].set(params["head_w"])

    args = [xp_pad, params["patch_w"], wmat, wmat2, vecs]
    in_specs = [pl.BlockSpec(a.shape, lambda i, _nd=a.ndim: (0,) * _nd) for a in args]

    logits_all = pl.pallas_call(
        fused_vit_kernel,
        out_shape=jax.ShapeDtypeStruct((TOK_ROWS, HEAD_PAD), jnp.float32),
        grid=(1,),
        in_specs=in_specs,
        out_specs=pl.BlockSpec((TOK_ROWS, HEAD_PAD), lambda i: (0, 0)),
        compiler_params=pltpu.CompilerParams(dimension_semantics=("arbitrary",)),
    )(*args)

    # CLS rows are rows b*SEQ_PAD; unpad the classifier lanes.
    cls_logits = logits_all[0::SEQ_PAD, :N_HEAD_OUT]          # (B, 11)
    bowel = cls_logits[:, 0:1]
    extravasation = cls_logits[:, 1:2]
    kidney = cls_logits[:, 2:5]
    liver = cls_logits[:, 5:8]
    spleen = cls_logits[:, 8:11]
    return bowel, extravasation, kidney, liver, spleen


# ------------------------------ deterministic init -----------------------------
def init_params(key):
    keys = iter(jax.random.split(key, 64))

    def w(shape, scale=0.02):
        return jax.random.normal(next(keys), shape, dtype=jnp.float32) * scale

    layers = []
    for _ in range(NUM_LAYERS):
        layers.append({
            "ln1_w": jnp.ones((1, HIDDEN), jnp.float32),
            "ln1_b": jnp.zeros((1, HIDDEN), jnp.float32),
            "qkv_w": w((HIDDEN, 3 * HIDDEN)),        # qkv_bias=False (MONAI default)
            "out_w": w((HIDDEN, HIDDEN)),
            "out_b": jnp.zeros((1, HIDDEN), jnp.float32),
            "ln2_w": jnp.ones((1, HIDDEN), jnp.float32),
            "ln2_b": jnp.zeros((1, HIDDEN), jnp.float32),
            "mlp_w1": w((HIDDEN, MLP_DIM)),
            "mlp_b1": jnp.zeros((1, MLP_DIM), jnp.float32),
            "mlp_w2": w((MLP_DIM, HIDDEN)),
            "mlp_b2": jnp.zeros((1, HIDDEN), jnp.float32),
        })
    return {
        "patch_w": w((PATCH_DIM, HIDDEN)),           # Conv3d weight, flattened & T
        "patch_b": jnp.zeros((1, HIDDEN), jnp.float32),
        "pos": w((N_PATCHES, HIDDEN)),
        "cls": w((1, HIDDEN)),
        "layers": layers,
        "norm_w": jnp.ones((1, HIDDEN), jnp.float32),
        "norm_b": jnp.zeros((1, HIDDEN), jnp.float32),
        "head_w": w((HIDDEN, N_HEAD_OUT)),
        "head_b": jnp.zeros((1, N_HEAD_OUT), jnp.float32),
    }


if __name__ == "__main__":
    key = jax.random.PRNGKey(0)
    xkey, pkey = jax.random.split(key)
    x = jax.random.normal(xkey, (B, C, IMG, IMG, IMG), dtype=jnp.float32)
    params = init_params(pkey)

    outs = jax.jit(forward)(x, params)
    outs = jax.block_until_ready(outs)

    bowel, extravasation, kidney, liver, spleen = outs
    assert bowel.shape == (B, 1)
    assert extravasation.shape == (B, 1)
    assert kidney.shape == (B, 3)
    assert liver.shape == (B, 3)
    assert spleen.shape == (B, 3)
    assert all(bool(jnp.all(jnp.isfinite(o))) for o in outs)
    print("KERNEL_OK")
</pallas_src>

<mosaic_0001>
module attributes {stable_mosaic.version = 11 : i64} {
  func.func @fused_vit_kernel(%arg0: i32, %arg1: memref<32x512xf32, #tpu.memory_space<vmem>>, %arg2: memref<512x32xf32, #tpu.memory_space<vmem>>, %arg3: memref<2x32x192xf32, #tpu.memory_space<vmem>>, %arg4: memref<2x64x32xf32, #tpu.memory_space<vmem>>, %arg5: memref<232x128xf32, #tpu.memory_space<vmem>>, %arg6: memref<32x128xf32, #tpu.memory_space<vmem>>) attributes {dimension_semantics = [#tpu.dimension_semantics<arbitrary>], iteration_bounds = array<i64: 1>, scalar_prefetch = 0 : i64, scratch_operands = 0 : i64, tpu.core_type = #tpu.core_type<tc>, window_params = [{pipeline_mode = #tpu.pipeline_mode<synchronous>, transform_indices = @transform_0, window_bounds = array<i64: 32, 512>}, {pipeline_mode = #tpu.pipeline_mode<synchronous>, transform_indices = @transform_1, window_bounds = array<i64: 512, 32>}, {pipeline_mode = #tpu.pipeline_mode<synchronous>, transform_indices = @transform_2, window_bounds = array<i64: 2, 32, 192>}, {pipeline_mode = #tpu.pipeline_mode<synchronous>, transform_indices = @transform_3, window_bounds = array<i64: 2, 64, 32>}, {pipeline_mode = #tpu.pipeline_mode<synchronous>, transform_indices = @transform_4, window_bounds = array<i64: 232, 128>}, {pipeline_mode = #tpu.pipeline_mode<synchronous>, transform_indices = @transform_5, window_bounds = array<i64: 32, 128>}]} {
    %c0 = arith.constant 0 : index
    %c0_0 = arith.constant 0 : index
    %0 = vector.load %arg5[%c0, %c0_0] : memref<232x128xf32, #tpu.memory_space<vmem>>, vector<32x32xf32>
    %c32 = arith.constant 32 : index
    %c0_1 = arith.constant 0 : index
    %1 = vector.load %arg5[%c32, %c0_1] : memref<232x128xf32, #tpu.memory_space<vmem>>, vector<4x32xf32>
    %c40 = arith.constant 40 : index
    %c0_2 = arith.constant 0 : index
    %2 = vector.load %arg5[%c40, %c0_2] : memref<232x128xf32, #tpu.memory_space<vmem>>, vector<128x32xf32>
    %c0_3 = arith.constant 0 : index
    %c0_4 = arith.constant 0 : index
    %3 = vector.load %arg1[%c0_3, %c0_4] : memref<32x512xf32, #tpu.memory_space<vmem>>, vector<32x512xf32>
    %c0_5 = arith.constant 0 : index
    %c0_6 = arith.constant 0 : index
    %4 = vector.load %arg2[%c0_5, %c0_6] : memref<512x32xf32, #tpu.memory_space<vmem>>, vector<512x32xf32>
    %cst = arith.constant dense<0.000000e+00> : vector<32x32xf32>
    %5 = tpu.matmul %3, %4, %cst {dimension_numbers = #tpu.dot_dimension_numbers<[1], [0], [0], [1], [0, 0, 1, 1], [], []>} : vector<32x512xf32>, vector<512x32xf32>, vector<32x32xf32> -> vector<32x32xf32>
    %6 = arith.addf %5, %0 : vector<32x32xf32>
    %c168 = arith.constant 168 : index
    %c0_7 = arith.constant 0 : index
    %7 = vector.load %arg5[%c168, %c0_7] : memref<232x128xf32, #tpu.memory_space<vmem>>, vector<1x32xf32>
    %c169 = arith.constant 169 : index
    %c0_8 = arith.constant 0 : index
    %8 = vector.load %arg5[%c169, %c0_8] : memref<232x128xf32, #tpu.memory_space<vmem>>, vector<1x32xf32>
    %c170 = arith.constant 170 : index
    %c0_9 = arith.constant 0 : index
    %9 = vector.load %arg5[%c170, %c0_9] : memref<232x128xf32, #tpu.memory_space<vmem>>, vector<1x32xf32>
    %c171 = arith.constant 171 : index
    %c0_10 = arith.constant 0 : index
    %10 = vector.load %arg5[%c171, %c0_10] : memref<232x128xf32, #tpu.memory_space<vmem>>, vector<1x32xf32>
    %c172 = arith.constant 172 : index
    %c0_11 = arith.constant 0 : index
    %11 = vector.load %arg5[%c172, %c0_11] : memref<232x128xf32, #tpu.memory_space<vmem>>, vector<1x32xf32>
    %c173 = arith.constant 173 : index
    %c0_12 = arith.constant 0 : index
    %12 = vector.load %arg5[%c173, %c0_12] : memref<232x128xf32, #tpu.memory_space<vmem>>, vector<1x32xf32>
    %c174 = arith.constant 174 : index
    %c0_13 = arith.constant 0 : index
    %13 = vector.load %arg5[%c174, %c0_13] : memref<232x128xf32, #tpu.memory_space<vmem>>, vector<1x64xf32>
    %c0_14 = arith.constant 0 : index
    %c0_15 = arith.constant 0 : index
    %c0_16 = arith.constant 0 : index
    %14 = vector.load %arg3[%c0_14, %c0_15, %c0_16] : memref<2x32x192xf32, #tpu.memory_space<vmem>>, vector<1x32x192xf32>
    %15 = vector.shape_cast %14 : vector<1x32x192xf32> to vector<32x192xf32>
    %cst_17 = arith.constant dense<0.000000e+00> : vector<32xf32>
    %16 = vector.multi_reduction <add>, %6, %cst_17 [1] : vector<32x32xf32> to vector<32xf32>
    %17 = vector.shape_cast %16 : vector<32xf32> to vector<32x1xf32>
    %cst_18 = arith.constant 3.200000e+01 : f32
    %18 = vector.broadcast %cst_18 : f32 to vector<32x1xf32>
    %19 = arith.divf %17, %18 : vector<32x1xf32>
    %20 = vector.broadcast %19 : vector<32x1xf32> to vector<32x32xf32>
    %21 = arith.subf %6, %20 : vector<32x32xf32>
    %22 = arith.mulf %21, %21 : vector<32x32xf32>
    %cst_19 = arith.constant dense<0.000000e+00> : vector<32xf32>
    %23 = vector.multi_reduction <add>, %22, %cst_19 [1] : vector<32x32xf32> to vector<32xf32>
    %24 = vector.shape_cast %23 : vector<32xf32> to vector<32x1xf32>
    %cst_20 = arith.constant 3.200000e+01 : f32
    %25 = vector.broadcast %cst_20 : f32 to vector<32x1xf32>
    %26 = arith.divf %24, %25 : vector<32x1xf32>
    %27 = vector.broadcast %19 : vector<32x1xf32> to vector<32x32xf32>
    %28 = arith.subf %6, %27 : vector<32x32xf32>
    %cst_21 = arith.constant 9.99999974E-6 : f32
    %29 = vector.broadcast %cst_21 : f32 to vector<32x1xf32>
    %30 = arith.addf %26, %29 : vector<32x1xf32>
    %31 = math.rsqrt %30 : vector<32x1xf32>
    %32 = vector.broadcast %31 : vector<32x1xf32> to vector<32x32xf32>
    %33 = arith.mulf %28, %32 : vector<32x32xf32>
    %34 = vector.broadcast %7 : vector<1x32xf32> to vector<32x32xf32>
    %35 = arith.mulf %33, %34 : vector<32x32xf32>
    %36 = vector.broadcast %8 : vector<1x32xf32> to vector<32x32xf32>
    %37 = arith.addf %35, %36 : vector<32x32xf32>
    %38 = vector.extract_strided_slice %15 {offsets = [0, 0], sizes = [32, 96], strides = [1, 1]} : vector<32x192xf32> to vector<32x96xf32>
    %cst_22 = arith.constant dense<0.000000e+00> : vector<32x96xf32>
    %39 = tpu.matmul %37, %38, %cst_22 {dimension_numbers = #tpu.dot_dimension_numbers<[1], [0], [0], [1], [0, 0, 1, 1], [], []>} : vector<32x32xf32>, vector<32x96xf32>, vector<32x96xf32> -> vector<32x96xf32>
    %40 = vector.extract_strided_slice %39 {offsets = [0, 0], sizes = [32, 32], strides = [1, 1]} : vector<32x96xf32> to vector<32x32xf32>
    %41 = vector.extract_strided_slice %39 {offsets = [0, 32], sizes = [32, 32], strides = [1, 1]} : vector<32x96xf32> to vector<32x32xf32>
    %42 = vector.extract_strided_slice %39 {offsets = [0, 64], sizes = [32, 32], strides = [1, 1]} : vector<32x96xf32> to vector<32x32xf32>
    %43 = vector.shape_cast %40 : vector<32x32xf32> to vector<1x32x32xf32>
    %44 = vector.shape_cast %1 : vector<4x32xf32> to vector<4x1x32xf32>
    %45 = vector.broadcast %43 : vector<1x32x32xf32> to vector<4x32x32xf32>
    %46 = vector.broadcast %44 : vector<4x1x32xf32> to vector<4x32x32xf32>
    %47 = arith.mulf %45, %46 : vector<4x32x32xf32>
    %48 = vector.shape_cast %47 : vector<4x32x32xf32> to vector<128x32xf32>
    %49 = tpu.transpose %41, [1, 0] : vector<32x32xf32> -> vector<32x32xf32>
    %cst_23 = arith.constant dense<0.000000e+00> : vector<128x32xf32>
    %50 = tpu.matmul %48, %49, %cst_23 {dimension_numbers = #tpu.dot_dimension_numbers<[1], [0], [0], [1], [0, 0, 1, 1], [], []>} : vector<128x32xf32>, vector<32x32xf32>, vector<128x32xf32> -> vector<128x32xf32>
    %51 = arith.addf %50, %2 : vector<128x32xf32>
    %cst_24 = arith.constant dense<0xFF800000> : vector<128xf32>
    %52 = vector.multi_reduction <maximumf>, %51, %cst_24 [1] : vector<128x32xf32> to vector<128xf32>
    %53 = vector.shape_cast %52 : vector<128xf32> to vector<128x1xf32>
    %54 = vector.broadcast %53 : vector<128x1xf32> to vector<128x32xf32>
    %55 = arith.subf %51, %54 : vector<128x32xf32>
    %56 = math.exp %55 : vector<128x32xf32>
    %cst_25 = arith.constant dense<0.000000e+00> : vector<128xf32>
    %57 = vector.multi_reduction <add>, %56, %cst_25 [1] : vector<128x32xf32> to vector<128xf32>
    %58 = vector.shape_cast %57 : vector<128xf32> to vector<128x1xf32>
    %59 = tpu.reciprocal %58 {approx = true} : vector<128x1xf32> -> vector<128x1xf32>
    %60 = vector.broadcast %59 : vector<128x1xf32> to vector<128x32xf32>
    %61 = arith.mulf %56, %60 : vector<128x32xf32>
    %cst_26 = arith.constant dense<0.000000e+00> : vector<128x32xf32>
    %62 = tpu.matmul %61, %42, %cst_26 {dimension_numbers = #tpu.dot_dimension_numbers<[1], [0], [0], [1], [0, 0, 1, 1], [], []>} : vector<128x32xf32>, vector<32x32xf32>, vector<128x32xf32> -> vector<128x32xf32>
    %63 = vector.shape_cast %62 : vector<128x32xf32> to vector<4x32x32xf32>
    %64 = vector.shape_cast %1 : vector<4x32xf32> to vector<4x1x32xf32>
    %65 = vector.broadcast %64 : vector<4x1x32xf32> to vector<4x32x32xf32>
    %66 = arith.mulf %63, %65 : vector<4x32x32xf32>
    %cst_27 = arith.constant dense<0.000000e+00> : vector<32x32xf32>
    %67 = vector.multi_reduction <add>, %66, %cst_27 [0] : vector<4x32x32xf32> to vector<32x32xf32>
    %68 = vector.extract_strided_slice %15 {offsets = [0, 96], sizes = [32, 32], strides = [1, 1]} : vector<32x192xf32> to vector<32x32xf32>
    %cst_28 = arith.constant dense<0.000000e+00> : vector<32x32xf32>
    %69 = tpu.matmul %67, %68, %cst_28 {dimension_numbers = #tpu.dot_dimension_numbers<[1], [0], [0], [1], [0, 0, 1, 1], [], []>} : vector<32x32xf32>, vector<32x32xf32>, vector<32x32xf32> -> vector<32x32xf32>
    %70 = arith.addf %6, %69 : vector<32x32xf32>
    %71 = vector.broadcast %11 : vector<1x32xf32> to vector<32x32xf32>
    %72 = arith.addf %70, %71 : vector<32x32xf32>
    %cst_29 = arith.constant dense<0.000000e+00> : vector<32xf32>
    %73 = vector.multi_reduction <add>, %72, %cst_29 [1] : vector<32x32xf32> to vector<32xf32>
    %74 = vector.shape_cast %73 : vector<32xf32> to vector<32x1xf32>
    %cst_30 = arith.constant 3.200000e+01 : f32
    %75 = vector.broadcast %cst_30 : f32 to vector<32x1xf32>
    %76 = arith.divf %74, %75 : vector<32x1xf32>
    %77 = vector.broadcast %76 : vector<32x1xf32> to vector<32x32xf32>
    %78 = arith.subf %72, %77 : vector<32x32xf32>
    %79 = arith.mulf %78, %78 : vector<32x32xf32>
    %cst_31 = arith.constant dense<0.000000e+00> : vector<32xf32>
    %80 = vector.multi_reduction <add>, %79, %cst_31 [1] : vector<32x32xf32> to vector<32xf32>
    %81 = vector.shape_cast %80 : vector<32xf32> to vector<32x1xf32>
    %cst_32 = arith.constant 3.200000e+01 : f32
    %82 = vector.broadcast %cst_32 : f32 to vector<32x1xf32>
    %83 = arith.divf %81, %82 : vector<32x1xf32>
    %84 = vector.broadcast %76 : vector<32x1xf32> to vector<32x32xf32>
    %85 = arith.subf %72, %84 : vector<32x32xf32>
    %cst_33 = arith.constant 9.99999974E-6 : f32
    %86 = vector.broadcast %cst_33 : f32 to vector<32x1xf32>
    %87 = arith.addf %83, %86 : vector<32x1xf32>
    %88 = math.rsqrt %87 : vector<32x1xf32>
    %89 = vector.broadcast %88 : vector<32x1xf32> to vector<32x32xf32>
    %90 = arith.mulf %85, %89 : vector<32x32xf32>
    %91 = vector.broadcast %9 : vector<1x32xf32> to vector<32x32xf32>
    %92 = arith.mulf %90, %91 : vector<32x32xf32>
    %93 = vector.broadcast %10 : vector<1x32xf32> to vector<32x32xf32>
    %94 = arith.addf %92, %93 : vector<32x32xf32>
    %95 = vector.extract_strided_slice %15 {offsets = [0, 128], sizes = [32, 64], strides = [1, 1]} : vector<32x192xf32> to vector<32x64xf32>
    %cst_34 = arith.constant dense<0.000000e+00> : vector<32x64xf32>
    %96 = tpu.matmul %94, %95, %cst_34 {dimension_numbers = #tpu.dot_dimension_numbers<[1], [0], [0], [1], [0, 0, 1, 1], [], []>} : vector<32x32xf32>, vector<32x64xf32>, vector<32x64xf32> -> vector<32x64xf32>
    %97 = vector.broadcast %13 : vector<1x64xf32> to vector<32x64xf32>
    %98 = arith.addf %96, %97 : vector<32x64xf32>
    %99 = arith.mulf %98, %98 : vector<32x64xf32>
    %100 = arith.mulf %98, %99 : vector<32x64xf32>
    %cst_35 = arith.constant 4.471500e-02 : f32
    %101 = vector.broadcast %cst_35 : f32 to vector<32x64xf32>
    %102 = arith.mulf %101, %100 : vector<32x64xf32>
    %103 = arith.addf %98, %102 : vector<32x64xf32>
    %cst_36 = arith.constant 0.797884583 : f32
    %104 = vector.broadcast %cst_36 : f32 to vector<32x64xf32>
    %105 = arith.mulf %104, %103 : vector<32x64xf32>
    %106 = math.tanh %105 : vector<32x64xf32>
    %cst_37 = arith.constant 1.000000e+00 : f32
    %107 = vector.broadcast %cst_37 : f32 to vector<32x64xf32>
    %108 = arith.addf %107, %106 : vector<32x64xf32>
    %cst_38 = arith.constant 5.000000e-01 : f32
    %109 = vector.broadcast %cst_38 : f32 to vector<32x64xf32>
    %110 = arith.mulf %109, %108 : vector<32x64xf32>
    %111 = arith.mulf %98, %110 : vector<32x64xf32>
    %c0_39 = arith.constant 0 : index
    %c0_40 = arith.constant 0 : index
    %c0_41 = arith.constant 0 : index
    %112 = vector.load %arg4[%c0_39, %c0_40, %c0_41] : memref<2x64x32xf32, #tpu.memory_space<vmem>>, vector<1x64x32xf32>
    %113 = vector.shape_cast %112 : vector<1x64x32xf32> to vector<64x32xf32>
    %cst_42 = arith.constant dense<0.000000e+00> : vector<32x32xf32>
    %114 = tpu.matmul %111, %113, %cst_42 {dimension_numbers = #tpu.dot_dimension_numbers<[1], [0], [0], [1], [0, 0, 1, 1], [], []>} : vector<32x64xf32>, vector<64x32xf32>, vector<32x32xf32> -> vector<32x32xf32>
    %115 = arith.addf %72, %114 : vector<32x32xf32>
    %116 = vector.broadcast %12 : vector<1x32xf32> to vector<32x32xf32>
    %117 = arith.addf %115, %116 : vector<32x32xf32>
    %c176 = arith.constant 176 : index
    %c0_43 = arith.constant 0 : index
    %118 = vector.load %arg5[%c176, %c0_43] : memref<232x128xf32, #tpu.memory_space<vmem>>, vector<1x32xf32>
    %c177 = arith.constant 177 : index
    %c0_44 = arith.constant 0 : index
    %119 = vector.load %arg5[%c177, %c0_44] : memref<232x128xf32, #tpu.memory_space<vmem>>, vector<1x32xf32>
    %c178 = arith.constant 178 : index
    %c0_45 = arith.constant 0 : index
    %120 = vector.load %arg5[%c178, %c0_45] : memref<232x128xf32, #tpu.memory_space<vmem>>, vector<1x32xf32>
    %c179 = arith.constant 179 : index
    %c0_46 = arith.constant 0 : index
    %121 = vector.load %arg5[%c179, %c0_46] : memref<232x128xf32, #tpu.memory_space<vmem>>, vector<1x32xf32>
    %c180 = arith.constant 180 : index
    %c0_47 = arith.constant 0 : index
    %122 = vector.load %arg5[%c180, %c0_47] : memref<232x128xf32, #tpu.memory_space<vmem>>, vector<1x32xf32>
    %c181 = arith.constant 181 : index
    %c0_48 = arith.constant 0 : index
    %123 = vector.load %arg5[%c181, %c0_48] : memref<232x128xf32, #tpu.memory_space<vmem>>, vector<1x32xf32>
    %c182 = arith.constant 182 : index
    %c0_49 = arith.constant 0 : index
    %124 = vector.load %arg5[%c182, %c0_49] : memref<232x128xf32, #tpu.memory_space<vmem>>, vector<1x64xf32>
    %c1 = arith.constant 1 : index
    %c0_50 = arith.constant 0 : index
    %c0_51 = arith.constant 0 : index
    %125 = vector.load %arg3[%c1, %c0_50, %c0_51] : memref<2x32x192xf32, #tpu.memory_space<vmem>>, vector<1x32x192xf32>
    %126 = vector.shape_cast %125 : vector<1x32x192xf32> to vector<32x192xf32>
    %cst_52 = arith.constant dense<0.000000e+00> : vector<32xf32>
    %127 = vector.multi_reduction <add>, %117, %cst_52 [1] : vector<32x32xf32> to vector<32xf32>
    %128 = vector.shape_cast %127 : vector<32xf32> to vector<32x1xf32>
    %cst_53 = arith.constant 3.200000e+01 : f32
    %129 = vector.broadcast %cst_53 : f32 to vector<32x1xf32>
    %130 = arith.divf %128, %129 : vector<32x1xf32>
    %131 = vector.broadcast %130 : vector<32x1xf32> to vector<32x32xf32>
    %132 = arith.subf %117, %131 : vector<32x32xf32>
    %133 = arith.mulf %132, %132 : vector<32x32xf32>
    %cst_54 = arith.constant dense<0.000000e+00> : vector<32xf32>
    %134 = vector.multi_reduction <add>, %133, %cst_54 [1] : vector<32x32xf32> to vector<32xf32>
    %135 = vector.shape_cast %134 : vector<32xf32> to vector<32x1xf32>
    %cst_55 = arith.constant 3.200000e+01 : f32
    %136 = vector.broadcast %cst_55 : f32 to vector<32x1xf32>
    %137 = arith.divf %135, %136 : vector<32x1xf32>
    %138 = vector.broadcast %130 : vector<32x1xf32> to vector<32x32xf32>
    %139 = arith.subf %117, %138 : vector<32x32xf32>
    %cst_56 = arith.constant 9.99999974E-6 : f32
    %140 = vector.broadcast %cst_56 : f32 to vector<32x1xf32>
    %141 = arith.addf %137, %140 : vector<32x1xf32>
    %142 = math.rsqrt %141 : vector<32x1xf32>
    %143 = vector.broadcast %142 : vector<32x1xf32> to vector<32x32xf32>
    %144 = arith.mulf %139, %143 : vector<32x32xf32>
    %145 = vector.broadcast %118 : vector<1x32xf32> to vector<32x32xf32>
    %146 = arith.mulf %144, %145 : vector<32x32xf32>
    %147 = vector.broadcast %119 : vector<1x32xf32> to vector<32x32xf32>
    %148 = arith.addf %146, %147 : vector<32x32xf32>
    %149 = vector.extract_strided_slice %126 {offsets = [0, 0], sizes = [32, 96], strides = [1, 1]} : vector<32x192xf32> to vector<32x96xf32>
    %cst_57 = arith.constant dense<0.000000e+00> : vector<32x96xf32>
    %150 = tpu.matmul %148, %149, %cst_57 {dimension_numbers = #tpu.dot_dimension_numbers<[1], [0], [0], [1], [0, 0, 1, 1], [], []>} : vector<32x32xf32>, vector<32x96xf32>, vector<32x96xf32> -> vector<32x96xf32>
    %151 = vector.extract_strided_slice %150 {offsets = [0, 0], sizes = [32, 32], strides = [1, 1]} : vector<32x96xf32> to vector<32x32xf32>
    %152 = vector.extract_strided_slice %150 {offsets = [0, 32], sizes = [32, 32], strides = [1, 1]} : vector<32x96xf32> to vector<32x32xf32>
    %153 = vector.extract_strided_slice %150 {offsets = [0, 64], sizes = [32, 32], strides = [1, 1]} : vector<32x96xf32> to vector<32x32xf32>
    %154 = vector.shape_cast %151 : vector<32x32xf32> to vector<1x32x32xf32>
    %155 = vector.shape_cast %1 : vector<4x32xf32> to vector<4x1x32xf32>
    %156 = vector.broadcast %154 : vector<1x32x32xf32> to vector<4x32x32xf32>
    %157 = vector.broadcast %155 : vector<4x1x32xf32> to vector<4x32x32xf32>
    %158 = arith.mulf %156, %157 : vector<4x32x32xf32>
    %159 = vector.shape_cast %158 : vector<4x32x32xf32> to vector<128x32xf32>
    %160 = tpu.transpose %152, [1, 0] : vector<32x32xf32> -> vector<32x32xf32>
    %cst_58 = arith.constant dense<0.000000e+00> : vector<128x32xf32>
    %161 = tpu.matmul %159, %160, %cst_58 {dimension_numbers = #tpu.dot_dimension_numbers<[1], [0], [0], [1], [0, 0, 1, 1], [], []>} : vector<128x32xf32>, vector<32x32xf32>, vector<128x32xf32> -> vector<128x32xf32>
    %162 = arith.addf %161, %2 : vector<128x32xf32>
    %cst_59 = arith.constant dense<0xFF800000> : vector<128xf32>
    %163 = vector.multi_reduction <maximumf>, %162, %cst_59 [1] : vector<128x32xf32> to vector<128xf32>
    %164 = vector.shape_cast %163 : vector<128xf32> to vector<128x1xf32>
    %165 = vector.broadcast %164 : vector<128x1xf32> to vector<128x32xf32>
    %166 = arith.subf %162, %165 : vector<128x32xf32>
    %167 = math.exp %166 : vector<128x32xf32>
    %cst_60 = arith.constant dense<0.000000e+00> : vector<128xf32>
    %168 = vector.multi_reduction <add>, %167, %cst_60 [1] : vector<128x32xf32> to vector<128xf32>
    %169 = vector.shape_cast %168 : vector<128xf32> to vector<128x1xf32>
    %170 = tpu.reciprocal %169 {approx = true} : vector<128x1xf32> -> vector<128x1xf32>
    %171 = vector.broadcast %170 : vector<128x1xf32> to vector<128x32xf32>
    %172 = arith.mulf %167, %171 : vector<128x32xf32>
    %cst_61 = arith.constant dense<0.000000e+00> : vector<128x32xf32>
    %173 = tpu.matmul %172, %153, %cst_61 {dimension_numbers = #tpu.dot_dimension_numbers<[1], [0], [0], [1], [0, 0, 1, 1], [], []>} : vector<128x32xf32>, vector<32x32xf32>, vector<128x32xf32> -> vector<128x32xf32>
    %174 = vector.shape_cast %173 : vector<128x32xf32> to vector<4x32x32xf32>
    %175 = vector.shape_cast %1 : vector<4x32xf32> to vector<4x1x32xf32>
    %176 = vector.broadcast %175 : vector<4x1x32xf32> to vector<4x32x32xf32>
    %177 = arith.mulf %174, %176 : vector<4x32x32xf32>
    %cst_62 = arith.constant dense<0.000000e+00> : vector<32x32xf32>
    %178 = vector.multi_reduction <add>, %177, %cst_62 [0] : vector<4x32x32xf32> to vector<32x32xf32>
    %179 = vector.extract_strided_slice %126 {offsets = [0, 96], sizes = [32, 32], strides = [1, 1]} : vector<32x192xf32> to vector<32x32xf32>
    %cst_63 = arith.constant dense<0.000000e+00> : vector<32x32xf32>
    %180 = tpu.matmul %178, %179, %cst_63 {dimension_numbers = #tpu.dot_dimension_numbers<[1], [0], [0], [1], [0, 0, 1, 1], [], []>} : vector<32x32xf32>, vector<32x32xf32>, vector<32x32xf32> -> vector<32x32xf32>
    %181 = arith.addf %117, %180 : vector<32x32xf32>
    %182 = vector.broadcast %122 : vector<1x32xf32> to vector<32x32xf32>
    %183 = arith.addf %181, %182 : vector<32x32xf32>
    %cst_64 = arith.constant dense<0.000000e+00> : vector<32xf32>
    %184 = vector.multi_reduction <add>, %183, %cst_64 [1] : vector<32x32xf32> to vector<32xf32>
    %185 = vector.shape_cast %184 : vector<32xf32> to vector<32x1xf32>
    %cst_65 = arith.constant 3.200000e+01 : f32
    %186 = vector.broadcast %cst_65 : f32 to vector<32x1xf32>
    %187 = arith.divf %185, %186 : vector<32x1xf32>
    %188 = vector.broadcast %187 : vector<32x1xf32> to vector<32x32xf32>
    %189 = arith.subf %183, %188 : vector<32x32xf32>
    %190 = arith.mulf %189, %189 : vector<32x32xf32>
    %cst_66 = arith.constant dense<0.000000e+00> : vector<32xf32>
    %191 = vector.multi_reduction <add>, %190, %cst_66 [1] : vector<32x32xf32> to vector<32xf32>
    %192 = vector.shape_cast %191 : vector<32xf32> to vector<32x1xf32>
    %cst_67 = arith.constant 3.200000e+01 : f32
    %193 = vector.broadcast %cst_67 : f32 to vector<32x1xf32>
    %194 = arith.divf %192, %193 : vector<32x1xf32>
    %195 = vector.broadcast %187 : vector<32x1xf32> to vector<32x32xf32>
    %196 = arith.subf %183, %195 : vector<32x32xf32>
    %cst_68 = arith.constant 9.99999974E-6 : f32
    %197 = vector.broadcast %cst_68 : f32 to vector<32x1xf32>
    %198 = arith.addf %194, %197 : vector<32x1xf32>
    %199 = math.rsqrt %198 : vector<32x1xf32>
    %200 = vector.broadcast %199 : vector<32x1xf32> to vector<32x32xf32>
    %201 = arith.mulf %196, %200 : vector<32x32xf32>
    %202 = vector.broadcast %120 : vector<1x32xf32> to vector<32x32xf32>
    %203 = arith.mulf %201, %202 : vector<32x32xf32>
    %204 = vector.broadcast %121 : vector<1x32xf32> to vector<32x32xf32>
    %205 = arith.addf %203, %204 : vector<32x32xf32>
    %206 = vector.extract_strided_slice %126 {offsets = [0, 128], sizes = [32, 64], strides = [1, 1]} : vector<32x192xf32> to vector<32x64xf32>
    %cst_69 = arith.constant dense<0.000000e+00> : vector<32x64xf32>
    %207 = tpu.matmul %205, %206, %cst_69 {dimension_numbers = #tpu.dot_dimension_numbers<[1], [0], [0], [1], [0, 0, 1, 1], [], []>} : vector<32x32xf32>, vector<32x64xf32>, vector<32x64xf32> -> vector<32x64xf32>
    %208 = vector.broadcast %124 : vector<1x64xf32> to vector<32x64xf32>
    %209 = arith.addf %207, %208 : vector<32x64xf32>
    %210 = arith.mulf %209, %209 : vector<32x64xf32>
    %211 = arith.mulf %209, %210 : vector<32x64xf32>
    %cst_70 = arith.constant 4.471500e-02 : f32
    %212 = vector.broadcast %cst_70 : f32 to vector<32x64xf32>
    %213 = arith.mulf %212, %211 : vector<32x64xf32>
    %214 = arith.addf %209, %213 : vector<32x64xf32>
    %cst_71 = arith.constant 0.797884583 : f32
    %215 = vector.broadcast %cst_71 : f32 to vector<32x64xf32>
    %216 = arith.mulf %215, %214 : vector<32x64xf32>
    %217 = math.tanh %216 : vector<32x64xf32>
    %cst_72 = arith.constant 1.000000e+00 : f32
    %218 = vector.broadcast %cst_72 : f32 to vector<32x64xf32>
    %219 = arith.addf %218, %217 : vector<32x64xf32>
    %cst_73 = arith.constant 5.000000e-01 : f32
    %220 = vector.broadcast %cst_73 : f32 to vector<32x64xf32>
    %221 = arith.mulf %220, %219 : vector<32x64xf32>
    %222 = arith.mulf %209, %221 : vector<32x64xf32>
    %c1_74 = arith.constant 1 : index
    %c0_75 = arith.constant 0 : index
    %c0_76 = arith.constant 0 : index
    %223 = vector.load %arg4[%c1_74, %c0_75, %c0_76] : memref<2x64x32xf32, #tpu.memory_space<vmem>>, vector<1x64x32xf32>
    %224 = vector.shape_cast %223 : vector<1x64x32xf32> to vector<64x32xf32>
    %cst_77 = arith.constant dense<0.000000e+00> : vector<32x32xf32>
    %225 = tpu.matmul %222, %224, %cst_77 {dimension_numbers = #tpu.dot_dimension_numbers<[1], [0], [0], [1], [0, 0, 1, 1], [], []>} : vector<32x64xf32>, vector<64x32xf32>, vector<32x32xf32> -> vector<32x32xf32>
    %226 = arith.addf %183, %225 : vector<32x32xf32>
    %227 = vector.broadcast %123 : vector<1x32xf32> to vector<32x32xf32>
    %228 = arith.addf %226, %227 : vector<32x32xf32>
    %c184 = arith.constant 184 : index
    %c0_78 = arith.constant 0 : index
    %229 = vector.load %arg5[%c184, %c0_78] : memref<232x128xf32, #tpu.memory_space<vmem>>, vector<1x32xf32>
    %c185 = arith.constant 185 : index
    %c0_79 = arith.constant 0 : index
    %230 = vector.load %arg5[%c185, %c0_79] : memref<232x128xf32, #tpu.memory_space<vmem>>, vector<1x32xf32>
    %c192 = arith.constant 192 : index
    %c0_80 = arith.constant 0 : index
    %231 = vector.load %arg5[%c192, %c0_80] : memref<232x128xf32, #tpu.memory_space<vmem>>, vector<1x128xf32>
    %c200 = arith.constant 200 : index
    %c0_81 = arith.constant 0 : index
    %232 = vector.load %arg5[%c200, %c0_81] : memref<232x128xf32, #tpu.memory_space<vmem>>, vector<32x128xf32>
    %cst_82 = arith.constant dense<0.000000e+00> : vector<32xf32>
    %233 = vector.multi_reduction <add>, %228, %cst_82 [1] : vector<32x32xf32> to vector<32xf32>
    %234 = vector.shape_cast %233 : vector<32xf32> to vector<32x1xf32>
    %cst_83 = arith.constant 3.200000e+01 : f32
    %235 = vector.broadcast %cst_83 : f32 to vector<32x1xf32>
    %236 = arith.divf %234, %235 : vector<32x1xf32>
    %237 = vector.broadcast %236 : vector<32x1xf32> to vector<32x32xf32>
    %238 = arith.subf %228, %237 : vector<32x32xf32>
    %239 = arith.mulf %238, %238 : vector<32x32xf32>
    %cst_84 = arith.constant dense<0.000000e+00> : vector<32xf32>
    %240 = vector.multi_reduction <add>, %239, %cst_84 [1] : vector<32x32xf32> to vector<32xf32>
    %241 = vector.shape_cast %240 : vector<32xf32> to vector<32x1xf32>
    %cst_85 = arith.constant 3.200000e+01 : f32
    %242 = vector.broadcast %cst_85 : f32 to vector<32x1xf32>
    %243 = arith.divf %241, %242 : vector<32x1xf32>
    %244 = vector.broadcast %236 : vector<32x1xf32> to vector<32x32xf32>
    %245 = arith.subf %228, %244 : vector<32x32xf32>
    %cst_86 = arith.constant 9.99999974E-6 : f32
    %246 = vector.broadcast %cst_86 : f32 to vector<32x1xf32>
    %247 = arith.addf %243, %246 : vector<32x1xf32>
    %248 = math.rsqrt %247 : vector<32x1xf32>
    %249 = vector.broadcast %248 : vector<32x1xf32> to vector<32x32xf32>
    %250 = arith.mulf %245, %249 : vector<32x32xf32>
    %251 = vector.broadcast %229 : vector<1x32xf32> to vector<32x32xf32>
    %252 = arith.mulf %250, %251 : vector<32x32xf32>
    %253 = vector.broadcast %230 : vector<1x32xf32> to vector<32x32xf32>
    %254 = arith.addf %252, %253 : vector<32x32xf32>
    %cst_87 = arith.constant dense<0.000000e+00> : vector<32x128xf32>
    %255 = tpu.matmul %254, %232, %cst_87 {dimension_numbers = #tpu.dot_dimension_numbers<[1], [0], [0], [1], [0, 0, 1, 1], [], []>} : vector<32x32xf32>, vector<32x128xf32>, vector<32x128xf32> -> vector<32x128xf32>
    %256 = vector.broadcast %231 : vector<1x128xf32> to vector<32x128xf32>
    %257 = arith.addf %255, %256 : vector<32x128xf32>
    %c0_88 = arith.constant 0 : index
    %c0_89 = arith.constant 0 : index
    %258 = vector.load %arg6[%c0_88, %c0_89] : memref<32x128xf32, #tpu.memory_space<vmem>>, vector<32x128xf32>
    tpu.vector_store %arg6[%c0_88, %c0_89], %257 {strides = array<i32>} : memref<32x128xf32, #tpu.memory_space<vmem>>, vector<32x128xf32>,
    return
  }
  func.func @transform_0(%arg0: i32) -> (i32, i32) {
    %c0_i32 = arith.constant 0 : i32
    %c0_i32_0 = arith.constant 0 : i32
    %c0_i32_1 = arith.constant 0 : i32
    return %c0_i32, %c0_i32_0 : i32, i32
  }
  func.func @transform_1(%arg0: i32) -> (i32, i32) {
    %c0_i32 = arith.constant 0 : i32
    %c0_i32_0 = arith.constant 0 : i32
    %c0_i32_1 = arith.constant 0 : i32
    return %c0_i32, %c0_i32_0 : i32, i32
  }
  func.func @transform_2(%arg0: i32) -> (i32, i32, i32) {
    %c0_i32 = arith.constant 0 : i32
    %c0_i32_0 = arith.constant 0 : i32
    %c0_i32_1 = arith.constant 0 : i32
    %c0_i32_2 = arith.constant 0 : i32
    return %c0_i32, %c0_i32_0, %c0_i32_1 : i32, i32, i32
  }
  func.func @transform_3(%arg0: i32) -> (i32, i32, i32) {
    %c0_i32 = arith.constant 0 : i32
    %c0_i32_0 = arith.constant 0 : i32
    %c0_i32_1 = arith.constant 0 : i32
    %c0_i32_2 = arith.constant 0 : i32
    return %c0_i32, %c0_i32_0, %c0_i32_1 : i32, i32, i32
  }
  func.func @transform_4(%arg0: i32) -> (i32, i32) {
    %c0_i32 = arith.constant 0 : i32
    %c0_i32_0 = arith.constant 0 : i32
    %c0_i32_1 = arith.constant 0 : i32
    return %c0_i32, %c0_i32_0 : i32, i32
  }
  func.func @transform_5(%arg0: i32) -> (i32, i32) {
    %c0_i32 = arith.constant 0 : i32
    %c0_i32_0 = arith.constant 0 : i32
    %c0_i32_1 = arith.constant 0 : i32
    return %c0_i32, %c0_i32_0 : i32, i32
  }
}

</mosaic_0001>

<bundles_post_ra>
// kernel: forward.1
= control target key start
LH: loop header
LB: loop body
LE: loop exit
PB: predicated region body
PF: predicated region fallthrough
CT: control target
= control target key end

     0   :  { %vm306_vm0 = vcmask 261120   ;;  %s4204_s22 = smov 96   ;;  %s4205_s29 = smov 64   ;;  %vm1510_vm2 = vcmask 523264   ;;  %s5491_s1 = inlined_call_operand.vmem [shape: f32[512,32], index: 1, kind: input, shape index: {}]   ;;  %s5492_s0 = inlined_call_operand.vmem [shape: f32[32,512], index: 0, kind: input, shape index: {}]   ;;  %s5493_s4 = inlined_call_operand.vmem [shape: f32[232,128], index: 4, kind: input, shape index: {}]   ;;  %s5494_s2 = inlined_call_operand.vmem [shape: f32[2,32,192], index: 2, kind: input, shape index: {}]   ;;  %s5495_s3 = inlined_call_operand.vmem [shape: f32[2,64,32], index: 3, kind: input, shape index: {}]   ;;  %s5496_s5 = inlined_call_operand.vmem [shape: f32[32,128], index: 5, kind: output, shape index: {}]  }
   0x1   :  { %v73_v0 = vld [vmem:[%s5491_s1 + $0x80] sm:$0xff]  ;;  %v74_v1 = vld [vmem:[%s5491_s1 + $0x88] sm:$0xff]  ;;  %v75_v11 = vld [vmem:[%s5491_s1 + $0x90] sm:$0xff]  ;;  %s4206_s30 = smov 32  }
   0x2   :  { %v57_v2 = vld [vmem:[%s5491_s1] sm:$0xff]  ;;  %v3747_v3 = vpack.c.bf16 %v74_v1, %v73_v0  ;;  %v58_v4 = vld [vmem:[%s5491_s1 + $0x8] sm:$0xff]  ;;  %v76_v13 = vld [vmem:[%s5491_s1 + $0x98] sm:$0xff] }
   0x3   :  { %v105_v5 = vld [vmem:[%s5491_s1 + $0x180] sm:$0xff]  ;;  %v106_v6 = vld [vmem:[%s5491_s1 + $0x188] sm:$0xff]  ;;  %v3749_v7 = vpack.c.bf16 %v58_v4, %v57_v2  ;;  %v59_v14 = vld [vmem:[%s5491_s1 + $0x10] sm:$0xff]  ;;  %v3751_v16 = vpack.c.bf16 %v76_v13, %v75_v11 }
   0x4   :  { %v3779_v8 = vpack.c.bf16 %v106_v6, %v105_v5  ;;  %v89_v9 = vld [vmem:[%s5491_s1 + $0x100] sm:$0xff]  ;;  %v90_v10 = vld [vmem:[%s5491_s1 + $0x108] sm:$0xff]  ;;  %3748 = vmatprep.subr.bf16.mxu0 %v3747_v3  ;;  %v60_v15 = vld [vmem:[%s5491_s1 + $0x18] sm:$0xff] }
   0x5   :  { %v3781_v12 = vpack.c.bf16 %v90_v10, %v89_v9  ;;  %3750 = vmatpush3.bf16.msra.mxu0 %v3749_v7  ;;  %v3753_v17 = vpack.c.bf16 %v60_v15, %v59_v14  ;;  %v107_v18 = vld [vmem:[%s5491_s1 + $0x190] sm:$0xff]  ;;  %v108_v19 = vld [vmem:[%s5491_s1 + $0x198] sm:$0xff]  ;;  %v77_v23 = vld [vmem:[%s5491_s1 + $0xa0] sm:$0xff] }
   0x6   :  { %3780 = vmatprep.subr.bf16.mxu1 %v3779_v8  ;;  %v91_v20 = vld [vmem:[%s5491_s1 + $0x110] sm:$0xff]  ;;  %v3783_v21 = vpack.c.bf16 %v108_v19, %v107_v18  ;;  %v92_v22 = vld [vmem:[%s5491_s1 + $0x118] sm:$0xff]  ;;  %v78_v24 = vld [vmem:[%s5491_s1 + $0xa8] sm:$0xff]  ;;  %3752 = vmatprep.subr.bf16.mxu0 %v3751_v16 }
   0x7   :  { %3782 = vmatpush3.bf16.msra.mxu1 %v3781_v12  ;;  %v3785_v25 = vpack.c.bf16 %v92_v22, %v91_v20  ;;  %v3755_v26 = vpack.c.bf16 %v78_v24, %v77_v23  ;;  %v61_v27 = vld [vmem:[%s5491_s1 + $0x20] sm:$0xff]  ;;  %v62_v28 = vld [vmem:[%s5491_s1 + $0x28] sm:$0xff]  ;;  %v79_v35 = vld [vmem:[%s5491_s1 + $0xb0] sm:$0xff] }
   0x8   :  { %v109_v29 = vld [vmem:[%s5491_s1 + $0x1a0] sm:$0xff]  ;;  %3784 = vmatprep.subr.bf16.mxu1 %v3783_v21  ;;  %v110_v30 = vld [vmem:[%s5491_s1 + $0x1a8] sm:$0xff]  ;;  %v3757_v33 = vpack.c.bf16 %v62_v28, %v61_v27  ;;  %v80_v36 = vld [vmem:[%s5491_s1 + $0xb8] sm:$0xff] }
   0x9   :  { %v93_v31 = vld [vmem:[%s5491_s1 + $0x120] sm:$0xff]  ;;  %v94_v32 = vld [vmem:[%s5491_s1 + $0x128] sm:$0xff]  ;;  %3754 = vmatpush3.bf16.msra.mxu0 %v3753_v17  ;;  %v3787_v34 = vpack.c.bf16 %v110_v30, %v109_v29  ;;  %v63_v37 = vld [vmem:[%s5491_s1 + $0x30] sm:$0xff]  ;;  %v3759_v39 = vpack.c.bf16 %v80_v36, %v79_v35 }
   0xa   :  { %3756 = vmatprep.subr.bf16.mxu0 %v3755_v26  ;;  %v3789_v38 = vpack.c.bf16 %v94_v32, %v93_v31  ;;  %v64_v40 = vld [vmem:[%s5491_s1 + $0x38] sm:$0xff]  ;;  %v111_v41 = vld [vmem:[%s5491_s1 + $0x1b0] sm:$0xff]  ;;  %v81_v46 = vld [vmem:[%s5491_s1 + $0xc0] sm:$0xff] }
   0xb   :  { %3786 = vmatpush3.bf16.msra.mxu1 %v3785_v25  ;;  %v112_v42 = vld [vmem:[%s5491_s1 + $0x1b8] sm:$0xff]  ;;  %v95_v44 = vld [vmem:[%s5491_s1 + $0x130] sm:$0xff]  ;;  %v82_v47 = vld [vmem:[%s5491_s1 + $0xc8] sm:$0xff]  ;;  %v3761_v48 = vpack.c.bf16 %v64_v40, %v63_v37 }
   0xc   :  { %3788 = vmatprep.subr.bf16.mxu1 %v3787_v34  ;;  %v3791_v43 = vpack.c.bf16 %v112_v42, %v111_v41  ;;  %v96_v45 = vld [vmem:[%s5491_s1 + $0x138] sm:$0xff]  ;;  %v113_v49 = vld [vmem:[%s5491_s1 + $0x1c0] sm:$0xff]  ;;  %v114_v50 = vld [vmem:[%s5491_s1 + $0x1c8] sm:$0xff]  ;;  %v3763_v52 = vpack.c.bf16 %v82_v47, %v81_v46 }
   0xd   :  { %3758 = vmatpush3.bf16.msra.mxu0 %v3757_v33  ;;  %v3793_v51 = vpack.c.bf16 %v96_v45, %v95_v44  ;;  %v65_v53 = vld [vmem:[%s5491_s1 + $0x40] sm:$0xff]  ;;  %v66_v54 = vld [vmem:[%s5491_s1 + $0x48] sm:$0xff]  ;;  %v3795_v56 = vpack.c.bf16 %v114_v50, %v113_v49  ;;  %v83_v58 = vld [vmem:[%s5491_s1 + $0xd0] sm:$0xff] }
   0xe   :  { %3760 = vmatprep.subr.bf16.mxu0 %v3759_v39  ;;  %v97_v55 = vld [vmem:[%s5491_s1 + $0x140] sm:$0xff]  ;;  %v98_v57 = vld [vmem:[%s5491_s1 + $0x148] sm:$0xff]  ;;  %v84_v59 = vld [vmem:[%s5491_s1 + $0xd8] sm:$0xff]  ;;  %v3765_v62 = vpack.c.bf16 %v66_v54, %v65_v53 }
   0xf   :  { %3790 = vmatpush3.bf16.msra.mxu1 %v3789_v38  ;;  %v115_v60 = vld [vmem:[%s5491_s1 + $0x1d0] sm:$0xff]  ;;  %v116_v61 = vld [vmem:[%s5491_s1 + $0x1d8] sm:$0xff]  ;;  %v3797_v63 = vpack.c.bf16 %v98_v57, %v97_v55  ;;  %v3767_v0 = vpack.c.bf16 %v84_v59, %v83_v58  ;;  %v85_v6 = vld [vmem:[%s5491_s1 + $0xe0] sm:$0xff] }
  0x10   :  { %3792 = vmatprep.subr.bf16.mxu1 %v3791_v43  ;;  %v67_v1 = vld [vmem:[%s5491_s1 + $0x50] sm:$0xff]  ;;  %v68_v2 = vld [vmem:[%s5491_s1 + $0x58] sm:$0xff]  ;;  %v3799_v4 = vpack.c.bf16 %v116_v61, %v115_v60  ;;  %v86_v7 = vld [vmem:[%s5491_s1 + $0xe8] sm:$0xff] }
  0x11   :  { %3762 = vmatpush3.bf16.msra.mxu0 %v3761_v48  ;;  %v99_v3 = vld [vmem:[%s5491_s1 + $0x150] sm:$0xff]  ;;  %v100_v5 = vld [vmem:[%s5491_s1 + $0x158] sm:$0xff]  ;;  %v117_v8 = vld [vmem:[%s5491_s1 + $0x1e0] sm:$0xff]  ;;  %v3769_v10 = vpack.c.bf16 %v68_v2, %v67_v1  ;;  %v3771_v14 = vpack.c.bf16 %v86_v7, %v85_v6 }
  0x12   :  { %3764 = vmatprep.subr.bf16.mxu0 %v3763_v52  ;;  %v118_v9 = vld [vmem:[%s5491_s1 + $0x1e8] sm:$0xff]  ;;  %v69_v11 = vld [vmem:[%s5491_s1 + $0x60] sm:$0xff]  ;;  %v3801_v13 = vpack.c.bf16 %v100_v5, %v99_v3  ;;  %v87_v19 = vld [vmem:[%s5491_s1 + $0xf0] sm:$0xff] }
  0x13   :  { %3794 = vmatpush3.bf16.msra.mxu1 %v3793_v51  ;;  %v70_v12 = vld [vmem:[%s5491_s1 + $0x68] sm:$0xff]  ;;  %v101_v15 = vld [vmem:[%s5491_s1 + $0x160] sm:$0xff]  ;;  %v3803_v18 = vpack.c.bf16 %v118_v9, %v117_v8  ;;  %v88_v20 = vld [vmem:[%s5491_s1 + $0xf8] sm:$0xff] }
  0x14   :  { %3796 = vmatprep.subr.bf16.mxu1 %v3795_v56  ;;  %v102_v16 = vld [vmem:[%s5491_s1 + $0x168] sm:$0xff]  ;;  %v44_v21 = vld [vmem:[%s5492_s0 + $0x18] sm:$0xff]  ;;  %v119_v22 = vld [vmem:[%s5491_s1 + $0x1f0] sm:$0xff]  ;;  %v3773_v24 = vpack.c.bf16 %v70_v12, %v69_v11  ;;  %v3775_v26 = vpack.c.bf16 %v88_v20, %v87_v19 }
  0x15   :  { %3766 = vmatpush3.bf16.msra.mxu0 %v3765_v62  ;;  %v42_v17 = vld [vmem:[%s5492_s0 + $0x8] sm:$0xff]  ;;  %v120_v23 = vld [vmem:[%s5491_s1 + $0x1f8] sm:$0xff]  ;;  %270 = vmatprep.mubr.f32.mxu1 %v44_v21  ;;  %v3805_v25 = vpack.c.bf16 %v102_v16, %v101_v15  ;;  %v71_v27 = vld [vmem:[%s5491_s1 + $0x70] sm:$0xff] }
  0x16   :  { %3768 = vmatprep.subr.bf16.mxu0 %v3767_v0  ;;  %185 = vmatprep.mubr.f32.mxu0 %v42_v17  ;;  %v72_v28 = vld [vmem:[%s5491_s1 + $0x78] sm:$0xff]  ;;  %v3807_v29 = vpack.c.bf16 %v120_v23, %v119_v22  ;;  %v103_v30 = vld [vmem:[%s5491_s1 + $0x170] sm:$0xff]  ;;  %v41_v34 = vld [vmem:[%s5492_s0] sm:$0xff] }
  0x17   :  { %3798 = vmatpush3.bf16.msra.mxu1 %v3797_v63  ;;  %v104_v31 = vld [vmem:[%s5491_s1 + $0x178] sm:$0xff]  ;;  %v3777_v32 = vpack.c.bf16 %v72_v28, %v71_v27  ;;  %v43_v35 = vld [vmem:[%s5492_s0 + $0x10] sm:$0xff]  ;;  %v46_v36 = vld [vmem:[%s5492_s0 + $0x28] sm:$0xff] }
  0x18   :  { %3800 = vmatprep.subr.bf16.mxu1 %v3799_v4  ;;  %v3809_v33 = vpack.c.bf16 %v104_v31, %v103_v30  ;;  %v48_v37 = vld [vmem:[%s5492_s0 + $0x38] sm:$0xff]  ;;  %v45_v38 = vld [vmem:[%s5492_s0 + $0x20] sm:$0xff]  ;;  %v47_v39 = vld [vmem:[%s5492_s0 + $0x30] sm:$0xff] }
  0x19   :  { %3770 = vmatpush3.bf16.msra.mxu0 %v3769_v10  ;;  %v50_v40 = vld [vmem:[%s5492_s0 + $0x48] sm:$0xff]  ;;  %v52_v41 = vld [vmem:[%s5492_s0 + $0x58] sm:$0xff]  ;;  %v49_v42 = vld [vmem:[%s5492_s0 + $0x40] sm:$0xff] }
  0x1a   :  { %3772 = vmatprep.subr.bf16.mxu0 %v3771_v14  ;;  %v51_v43 = vld [vmem:[%s5492_s0 + $0x50] sm:$0xff]  ;;  %v54_v44 = vld [vmem:[%s5492_s0 + $0x68] sm:$0xff]  ;;  %v56_v45 = vld [vmem:[%s5492_s0 + $0x78] sm:$0xff] }
  0x1b   :  { %3802 = vmatpush3.bf16.msra.mxu1 %v3801_v13  ;;  %v53_v46 = vld [vmem:[%s5492_s0 + $0x60] sm:$0xff]  ;;  %v55_v47 = vld [vmem:[%s5492_s0 + $0x70] sm:$0xff]  ;;  %v21_v57 = vld [vmem:[%s5493_s4 + $0x8] sm:$0xff] }
  0x1c   :  { %3804 = vmatprep.subr.bf16.mxu1 %v3803_v18  ;;  %v20_v49 = vld [vmem:[%s5493_s4] sm:$0xff]  ;;  %v22_v3 = vld [vmem:[%s5493_s4 + $0x10] sm:$0xff]  ;;  %v23_v13 = vld [vmem:[%s5493_s4 + $0x18] sm:$0xff] }
  0x1d   :  { %3774 = vmatpush3.bf16.msra.mxu0 %v3773_v24  ;;  %vm4570_vm1 = vmpackc.low %vm306_vm0, %vm306_vm0 }
  0x1e   :  { %3776 = vmatprep.subr.bf16.mxu0 %v3775_v26 }
  0x1f   :  { %3806 = vmatpush3.bf16.msra.mxu1 %v3805_v25 }
  0x20   :  { %3808 = vmatprep.subr.bf16.mxu1 %v3807_v29 }
  0x21   :  { %3778 = vmatpush3.bf16.msra.mxu0 %v3777_v32 }
  0x23   :  { %3810 = vmatpush3.bf16.msra.mxu1 %v3809_v33 }
  0x24   :  { %186 = vmatmul.mubr.f32.vlgmr.msra.gmra.mrb[0].mxu0 %v41_v34 }
  0x25   :  { %190 = vmatprep.mubr.f32.mxu0 %v46_v36 }
  0x26   :  { %271 = vmatmul.mubr.f32.vlgmr.msra.gmra.mrb[0].mxu1 %v43_v35 }
  0x27   :  { %275 = vmatprep.mubr.f32.mxu1 %v48_v37 }
  0x28   :  { %191 = vmatmul.mubr.f32.gmra.mrb[2].mxu0 %v45_v38 }
  0x29   :  { %195 = vmatprep.mubr.f32.mxu0 %v50_v40 }
  0x2a   :  { %276 = vmatmul.mubr.f32.gmra.mrb[2].mxu1 %v47_v39 }
  0x2b   :  { %280 = vmatprep.mubr.f32.mxu1 %v52_v41 }
  0x2c   :  { %196 = vmatmul.mubr.f32.gmra.mrb[4].mxu0 %v49_v42 }
  0x2d   :  { %200 = vmatprep.mubr.f32.mxu0 %v54_v44  ;;  %v4516_v44 = vld [vmem:[%s5494_s2] sm:$0xff] }
  0x2e   :  { %281 = vmatmul.mubr.f32.gmra.mrb[4].mxu1 %v51_v43 }
  0x2f   :  { %285 = vmatprep.mubr.f32.mxu1 %v56_v45  ;;  %v4521_v45 = vld [vmem:[%s5494_s2 + $0x10] sm:$0xff] }
  0x30   :  { %201 = vmatmul.mubr.f32.gmra.mrb[6].mxu0 %v53_v46  ;;  %v3811_v46 = vpack.c.bf16 %v4521_v45, %v4516_v44 }
  0x32   :  { %286 = vmatmul.mubr.f32.gmra.mrb[6].mxu1 %v55_v47  ;;  %3812 = vmatprep.subr.bf16.mxu0 %v3811_v46  ;;  %v4528_v47 = vld [vmem:[%s5494_s2 + $0x20] sm:$0xff] }
  0x33   :  { %3814 = vmatpush3.bf16.msra.mxu0 %v3811_v46 }
  0xf7   :  { %v3261_v48 = vpop.f32.mrb[0].mxu0 }
  0xf8   :  { %v3262_v50 = vpop.f32.mrb[1].mxu0 }
  0xf9   :  { %v3305_v51 = vpop.f32.mrb[0].mxu1  ;;  %v3263_v52 = vadd.f32 %v3262_v50, %v3261_v48  ;;  %v4533_v48 = vld [vmem:[%s5494_s2 + $0x30] sm:$0xff] }
  0xfa   :  { %v3306_v53 = vpop.f32.mrb[1].mxu1 }
  0xfb   :  { %v3307_v54 = vadd.f32 %v3306_v53, %v3305_v51  ;;  %v188_v55 = vadd.f32 %v3263_v52, %v20_v49  ;;  %v3264_v56 = vpop.f32.mrb[2].mxu0  ;;  %v3815_v49 = vpack.c.bf16 %v4533_v48, %v4528_v47 }
  0xfc   :  { %v3265_v58 = vpop.f32.mrb[3].mxu0 }
  0xfd   :  { %v3308_v59 = vpop.f32.mrb[2].mxu1  ;;  %v4483_v60 = vadd.f32 %v3307_v54, %v188_v55  ;;  %v3266_v61 = vadd.f32 %v3265_v58, %v3264_v56  ;;  %3816 = vmatprep.subr.bf16.mxu0 %v3815_v49 }
  0xfe   :  { %v3309_v62 = vpop.f32.mrb[3].mxu1  ;;  %3818 = vmatpush3.bf16.msra.mxu0 %v3815_v49 }
  0xff   :  { %v3310_v63 = vadd.f32 %v3309_v62, %v3308_v59  ;;  %v193_v0 = vadd.f32 %v3266_v61, %v21_v57  ;;  %v3267_v1 = vpop.f32.mrb[4].mxu0  ;;  %v307_v2 = vsel %vm306_vm0, %v4483_v60, 0.0 }
 0x100   :  { %v3268_v4 = vpop.f32.mrb[5].mxu0  ;;  %308 = vadd.xlane.f32.xlu0 %v307_v2  ;;  %v3088_v2 = vld [vmem:[%s5493_s4 + $0xa9] ss:$0 sm:$0xff] }
 0x101   :  { %v3311_v5 = vpop.f32.mrb[4].mxu1  ;;  %v4490_v6 = vadd.f32 %v3310_v63, %v193_v0  ;;  %v3269_v7 = vadd.f32 %v3268_v4, %v3267_v1  ;;  %v3087_v0 = vld [vmem:[%s5493_s4 + $0xa8] ss:$0 sm:$0xff] }
 0x102   :  { %v3312_v8 = vpop.f32.mrb[5].mxu1 }
 0x103   :  { %v3313_v9 = vadd.f32 %v3312_v8, %v3311_v5  ;;  %v198_v10 = vadd.f32 %v3269_v7, %v22_v3  ;;  %v3270_v11 = vpop.f32.mrb[6].mxu0  ;;  %v310_v12 = vsel %vm306_vm0, %v4490_v6, 0.0 }
 0x104   :  { %v3271_v14 = vpop.f32.mrb[7].mxu0  ;;  %311 = vadd.xlane.f32.xlu0 %v310_v12 }
 0x105   :  { %v3314_v15 = vpop.f32.mrb[6].mxu1  ;;  %v4497_v16 = vadd.f32 %v3313_v9, %v198_v10  ;;  %v3272_v17 = vadd.f32 %v3271_v14, %v3270_v11 }
 0x106   :  { %v3315_v18 = vpop.f32.mrb[7].mxu1 }
 0x107   :  { %v3316_v19 = vadd.f32 %v3315_v18, %v3314_v15  ;;  %v203_v20 = vadd.f32 %v3272_v17, %v23_v13  ;;  %v313_v21 = vsel %vm306_vm0, %v4497_v16, 0.0 }
 0x108   :  { %314 = vadd.xlane.f32.xlu1 %v313_v21  ;;  %v485_v21 = vlaneseq }
 0x109   :  { %v4501_v22 = vadd.f32 %v3316_v19, %v203_v20  ;;  %v4203_v19 = vmov 1966171168  }
 0x10a   :  { %v483_v20 = vunpack.c.l.s4 %v4203_v19  ;;  %v27_v19 = vld [vmem:[%s5493_s4 + $0x38] sm:$0xff] }
 0x10b   :  { %v316_v23 = vsel %vm306_vm0, %v4501_v22, 0.0 }
 0x10c   :  { %317 = vadd.xlane.f32.xlu1 %v316_v23  ;;  %v3093_v23 = vld.sshfl [vmem:[%s5493_s4 + $0x20] sm:$0x33 pattern:$0x75316420] }
 0x18d   :  { %v309_v24 = vpop.xlane.xlu0 %308 }
 0x18e   :  { %v320_v25 = vmul.f32 0.03125, %v309_v24  ;;  %v484_v24 = vunpack.c.0.s8 %v483_v20 }
 0x190   :  { %v324_v26 = vsub.f32 %v4483_v60, %v320_v25  ;;  %v486_v25 = vshrl.u32 %v485_v21, 7 }
 0x191   :  { %v312_v27 = vpop.xlane.xlu0 %311 }
 0x192   :  { %v321_v28 = vmul.f32 0.03125, %v312_v27  ;;  %v328_v29 = vmul.f32 %v324_v26, %v324_v26  ;;  %v481_v27 = vcombine.high %v3093_v23, %v3093_v23 }
 0x194   :  { %v325_v30 = vsub.f32 %v4490_v6, %v321_v28  ;;  %v332_v31 = vsel %vm306_vm0, %v328_v29, 0.0 }
 0x195   :  { %v315_v32 = vpop.xlane.xlu1 %314  ;;  %333 = vadd.xlane.f32.xlu0 %v332_v31 }
 0x196   :  { %v322_v33 = vmul.f32 0.03125, %v315_v32  ;;  %v329_v34 = vmul.f32 %v325_v30, %v325_v30 }
 0x198   :  { %v326_v35 = vsub.f32 %v4497_v16, %v322_v33  ;;  %v335_v36 = vsel %vm306_vm0, %v329_v34, 0.0 }
 0x199   :  { %v318_v37 = vpop.xlane.xlu1 %317  ;;  %336 = vadd.xlane.f32.xlu1 %v335_v36 }
 0x19a   :  { %v323_v38 = vmul.f32 0.03125, %v318_v37  ;;  %v330_v39 = vmul.f32 %v326_v35, %v326_v35 }
 0x19c   :  { %v327_v40 = vsub.f32 %v4501_v22, %v323_v38  ;;  %v338_v41 = vsel %vm306_vm0, %v330_v39, 0.0 }
 0x19d   :  { %339 = vadd.xlane.f32.xlu0 %v338_v41 }
 0x19e   :  { %v331_v42 = vmul.f32 %v327_v40, %v327_v40 }
 0x1a0   :  { %v341_v43 = vsel %vm306_vm0, %v331_v42, 0.0 }
 0x1a1   :  { %342 = vadd.xlane.f32.xlu1 %v341_v43 }
 0x222   :  { %v334_v50 = vpop.xlane.xlu0 %333 }
 0x223   :  { %v344_v51 = vmul.f32 0.03125, %v334_v50 }
 0x225   :  { %v348_v52 = vadd.f32 1e-05, %v344_v51 }
 0x226   :  { %v337_v53 = vpop.xlane.xlu1 %336 }
 0x227   :  { %4003 = vrsqrt.f32 %v348_v52  ;;  %v345_v54 = vmul.f32 0.03125, %v337_v53 }
 0x229   :  { %v349_v55 = vadd.f32 1e-05, %v345_v54 }
 0x22a   :  { %v340_v56 = vpop.xlane.xlu0 %339 }
 0x22b   :  { %4005 = vrsqrt.f32 %v349_v55  ;;  %v346_v57 = vmul.f32 0.03125, %v340_v56 }
 0x22d   :  { %v350_v58 = vadd.f32 1e-05, %v346_v57 }
 0x22e   :  { %v343_v59 = vpop.xlane.xlu1 %342 }
 0x22f   :  { %4007 = vrsqrt.f32 %v350_v58  ;;  %v347_v61 = vmul.f32 0.03125, %v343_v59 }
 0x231   :  { %v4004_v62 = vpop.eup %4003  ;;  %v351_v63 = vadd.f32 1e-05, %v347_v61 }
 0x232   :  { %v356_v1 = vmul.f32 %v4004_v62, %v324_v26  ;;  %v487_v26 = vsub.s32 %v484_v24, %v486_v25 }
 0x233   :  { %4009 = vrsqrt.f32 %v351_v63 }
 0x234   :  { %v364_v3 = vmul.f32 %v3087_v0, %v356_v1  ;;  %v488_v28 = vrot.slane %v3093_v23, %v487_v26  ;;  %v495_v29 = vrot.slane %v481_v27, %v487_v26  ;;  %v30_v26 = vld [vmem:[%s5493_s4 + $0x50] sm:$0xff]  ;;  %v29_v27 = vld [vmem:[%s5493_s4 + $0x48] sm:$0xff] }
 0x235   :  { %v4006_v4 = vpop.eup %4005 }
 0x236   :  { %v357_v5 = vmul.f32 %v4006_v4, %v325_v30  ;;  %v372_v7 = vadd.f32 %v3088_v2, %v364_v3  ;;  %v500_v30 = vsub.s32 0, %v486_v25  ;;  %v496_v31 = vcombine.high %v488_v28, %v488_v28 }
 0x237   :  { %v497_v32 = vcombine.high %v495_v29, %v495_v29 }
 0x238   :  { %v365_v8 = vmul.f32 %v3087_v0, %v357_v5  ;;  %3485 = vmatprep.mubr.msk.f32.mxu0 %vm306_vm0, %v372_v7  ;;  %v4550_v33 = vrot.slane %v495_v29, %v500_v30  ;;  %v4552_v34 = vrot.slane %v496_v31, %v500_v30  ;;  %v4556_v36 = vrot.slane %v488_v28, %v500_v30 }
 0x239   :  { %v4008_v9 = vpop.eup %4007 }
 0x23a   :  { %v373_v10 = vadd.f32 %v3088_v2, %v365_v8  ;;  %v358_v11 = vmul.f32 %v4008_v9, %v326_v35  ;;  %v4554_v35 = vrot.slane %v497_v32, %v500_v30 }
 0x23c   :  { %3486 = vmatmul.mubr.msk.f32.vlgmr.msra.gmra.mrb[8].mxu0 %vm306_vm0, %v373_v10  ;;  %v366_v12 = vmul.f32 %v3087_v0, %v358_v11  ;;  %v26_v10 = vld [vmem:[%s5493_s4 + $0x30] sm:$0xff]  ;;  %v25_v11 = vld [vmem:[%s5493_s4 + $0x28] sm:$0xff] }
 0x23d   :  { %v4010_v13 = vpop.eup %4009 }
 0x23e   :  { %v374_v14 = vadd.f32 %v3088_v2, %v366_v12  ;;  %v359_v15 = vmul.f32 %v4010_v13, %v327_v40 }
 0x240   :  { %3488 = vmatprep.mubr.msk.f32.mxu0 %vm306_vm0, %v374_v14  ;;  %v367_v17 = vmul.f32 %v3087_v0, %v359_v15 }
 0x242   :  { %v375_v18 = vadd.f32 %v3088_v2, %v367_v17  ;;  %v28_v17 = vld [vmem:[%s5493_s4 + $0x40] sm:$0xff] }
 0x244   :  { %3489 = vmatmul.mubr.msk.f32.gmra.mrb[10].mxu0 %vm306_vm0, %v375_v18 }
 0x30f   :  { %v3487_v37 = vpop.f32.mrb[8].mxu0 }
 0x310   :  { %v454_v38 = vpop.f32.mrb[9].mxu0  ;;  %v519_v57 = vmul.f32 %v3487_v37, %v4556_v36  ;;  %v523_v62 = vmul.f32 %v3487_v37, %v4550_v33  ;;  %v527_v2 = vmul.f32 %v3487_v37, %v4552_v34  ;;  %v531_v7 = vmul.f32 %v3487_v37, %v4554_v35 }
 0x311   :  { %v4558_v39 = vpack.i.bf16 %v3487_v37, %v454_v38  ;;  %v518_v40 = vmul.f32 %v4556_v36, %v454_v38  ;;  %v522_v61 = vmul.f32 %v4550_v33, %v454_v38  ;;  %v526_v1 = vmul.f32 %v4552_v34, %v454_v38 }
 0x312   :  { %v530_v5 = vmul.f32 %v4554_v35, %v454_v38  ;;  %v32_v38 = vld [vmem:[%s5493_s4 + $0x60] sm:$0xff] }
 0x313   :  { %3944 = vrot.lane.b32.xlu0 %v4558_v39, %s4204_s22  ;;  %3499 = vmatprep.mubr.msk.f32.mxu1 %vm306_vm0, %v518_v40  ;;  %v31_v40 = vld [vmem:[%s5493_s4 + $0x58] sm:$0xff] }
 0x317   :  { %v3490_v41 = vpop.f32.mrb[10].mxu0 }
 0x318   :  { %v464_v42 = vpop.f32.mrb[11].mxu0  ;;  %v521_v59 = vmul.f32 %v3490_v41, %v4556_v36  ;;  %v525_v0 = vmul.f32 %v3490_v41, %v4550_v33  ;;  %v529_v4 = vmul.f32 %v3490_v41, %v4552_v34  ;;  %v533_v9 = vmul.f32 %v3490_v41, %v4554_v35 }
 0x319   :  { %v4564_v43 = vpack.i.bf16 %v3490_v41, %v464_v42  ;;  %v520_v58 = vmul.f32 %v4556_v36, %v464_v42  ;;  %v524_v63 = vmul.f32 %v4550_v33, %v464_v42  ;;  %v528_v3 = vmul.f32 %v4552_v34, %v464_v42 }
 0x31a   :  { %v532_v8 = vmul.f32 %v4554_v35, %v464_v42 }
 0x31b   :  { %3949 = vrot.lane.b32.xlu1 %v4564_v43, %s4204_s22 }
 0x385   :  { %v3945_v46 = vpop.permute.xlu0 %3944 }
 0x386   :  { %v3947_v49 = vunpack.i.h.bf16 %v3945_v46  ;;  %v3946_v50 = vunpack.i.l.bf16 %v3945_v46 }
 0x388   :  { %v3819_v52 = vpack.c.bf16 %v3947_v49, %v3946_v50 }
 0x38a   :  { %3821 = vmatprep.subr.msk.bf16.mxu1 %vm4570_vm1, %v3819_v52 }
 0x38b   :  { %3824 = vmatpush3.bf16.xpose.msk.msra.mxu1 %vm4570_vm1, %v3819_v52 }
 0x38d   :  { %v3950_v53 = vpop.permute.xlu1 %3949 }
 0x38e   :  { %v3952_v54 = vunpack.i.h.bf16 %v3950_v53  ;;  %v3951_v55 = vunpack.i.l.bf16 %v3950_v53  ;;  %v34_v53 = vld [vmem:[%s5493_s4 + $0x70] sm:$0xff] }
 0x390   :  { %v3825_v56 = vpack.c.bf16 %v3952_v54, %v3951_v55  ;;  %v33_v54 = vld [vmem:[%s5493_s4 + $0x68] sm:$0xff] }
 0x392   :  { %3827 = vmatprep.subr.msk.bf16.mxu1 %vm4570_vm1, %v3825_v56 }
 0x393   :  { %3830 = vmatpush3.bf16.xpose.msk.msra.mxu1 %vm4570_vm1, %v3825_v56 }
 0x39a   :  { %3500 = vmatmul.mubr.msk.f32.vlgmr.msra.gmra.mrb[8].mxu1 %vm306_vm0, %v519_v57 }
 0x39b   :  { %3502 = vmatprep.mubr.msk.f32.mxu1 %vm306_vm0, %v520_v58 }
 0x39e   :  { %3503 = vmatmul.mubr.msk.f32.gmra.mrb[10].mxu1 %vm306_vm0, %v521_v59 }
 0x39f   :  { %3505 = vmatprep.mubr.msk.f32.mxu1 %vm306_vm0, %v522_v61 }
 0x3a2   :  { %3506 = vmatmul.mubr.msk.f32.gmra.mrb[12].mxu1 %vm306_vm0, %v523_v62  ;;  %v36_v62 = vld [vmem:[%s5493_s4 + $0x80] sm:$0xff] }
 0x3a3   :  { %3508 = vmatprep.mubr.msk.f32.mxu1 %vm306_vm0, %v524_v63  ;;  %v35_v63 = vld [vmem:[%s5493_s4 + $0x78] sm:$0xff] }
 0x3a6   :  { %3509 = vmatmul.mubr.msk.f32.gmra.mrb[14].mxu1 %vm306_vm0, %v525_v0 }
 0x3a7   :  { %3511 = vmatprep.mubr.msk.f32.mxu1 %vm306_vm0, %v526_v1 }
 0x3aa   :  { %3512 = vmatmul.mubr.msk.f32.gmra.mrb[16].mxu1 %vm306_vm0, %v527_v2 }
 0x3ab   :  { %3514 = vmatprep.mubr.msk.f32.mxu1 %vm306_vm0, %v528_v3 }
 0x3ae   :  { %3515 = vmatmul.mubr.msk.f32.gmra.mrb[18].mxu1 %vm306_vm0, %v529_v4 }
 0x3af   :  { %3517 = vmatprep.mubr.msk.f32.mxu1 %vm306_vm0, %v530_v5 }
 0x3b2   :  { %3518 = vmatmul.mubr.msk.f32.gmra.mrb[20].mxu1 %vm306_vm0, %v531_v7  ;;  %v38_v7 = vld [vmem:[%s5493_s4 + $0x90] sm:$0xff] }
 0x3b3   :  { %3520 = vmatprep.mubr.msk.f32.mxu1 %vm306_vm0, %v532_v8  ;;  %v37_v8 = vld [vmem:[%s5493_s4 + $0x88] sm:$0xff] }
 0x3b6   :  { %3521 = vmatmul.mubr.msk.f32.gmra.mrb[22].mxu1 %vm306_vm0, %v533_v9 }
 0x46d   :  { %v3501_v12 = vpop.f32.mrb[8].mxu1 }
 0x46e   :  { %v4618_v13 = vadd.f32 %v3501_v12, %v26_v10  ;;  %v668_v14 = vpop.f32.mrb[9].mxu1 }
 0x46f   :  { %v4620_v15 = vadd.f32 %v668_v14, %v25_v11 }
 0x470   :  { %v750_v18 = vsel %vm306_vm0, %v4618_v13, -inf }
 0x471   :  { %751 = vmax.xlane.f32.xlu0 %v750_v18  ;;  %v3504_v20 = vpop.f32.mrb[10].mxu1  ;;  %v747_v21 = vsel %vm306_vm0, %v4620_v15, -inf  ;;  %v40_v18 = vld [vmem:[%s5493_s4 + $0xa0] sm:$0xff] }
 0x472   :  { %v4632_v23 = vadd.f32 %v3504_v20, %v28_v17  ;;  %v678_v24 = vpop.f32.mrb[11].mxu1  ;;  %748 = vmax.xlane.f32.xlu1 %v747_v21 }
 0x473   :  { %v4634_v25 = vadd.f32 %v678_v24, %v27_v19  ;;  %v39_v19 = vld [vmem:[%s5493_s4 + $0x98] sm:$0xff] }
 0x474   :  { %v756_v28 = vsel %vm306_vm0, %v4632_v23, -inf }
 0x475   :  { %v3507_v29 = vpop.f32.mrb[12].mxu1  ;;  %v753_v30 = vsel %vm306_vm0, %v4634_v25, -inf }
 0x476   :  { %v4646_v31 = vadd.f32 %v3507_v29, %v30_v26  ;;  %v688_v32 = vpop.f32.mrb[13].mxu1  ;;  %754 = vmax.xlane.f32.xlu0 %v753_v30  ;;  %757 = vmax.xlane.f32.xlu1 %v756_v28 }
 0x477   :  { %v4648_v37 = vadd.f32 %v688_v32, %v29_v27 }
 0x478   :  { %v762_v41 = vsel %vm306_vm0, %v4646_v31, -inf }
 0x479   :  { %v3510_v42 = vpop.f32.mrb[14].mxu1  ;;  %v759_v46 = vsel %vm306_vm0, %v4648_v37, -inf }
 0x47a   :  { %v4660_v49 = vadd.f32 %v3510_v42, %v32_v38  ;;  %v698_v50 = vpop.f32.mrb[15].mxu1  ;;  %760 = vmax.xlane.f32.xlu0 %v759_v46  ;;  %763 = vmax.xlane.f32.xlu1 %v762_v41 }
 0x47b   :  { %v4662_v52 = vadd.f32 %v698_v50, %v31_v40 }
 0x47c   :  { %v768_v55 = vsel %vm306_vm0, %v4660_v49, -inf }
 0x47d   :  { %v3513_v56 = vpop.f32.mrb[16].mxu1  ;;  %v765_v57 = vsel %vm306_vm0, %v4662_v52, -inf }
 0x47e   :  { %v4674_v58 = vadd.f32 %v3513_v56, %v34_v53  ;;  %v708_v59 = vpop.f32.mrb[17].mxu1  ;;  %766 = vmax.xlane.f32.xlu0 %v765_v57  ;;  %769 = vmax.xlane.f32.xlu1 %v768_v55 }
 0x47f   :  { %v4676_v61 = vadd.f32 %v708_v59, %v33_v54 }
 0x480   :  { %v774_v0 = vsel %vm306_vm0, %v4674_v58, -inf }
 0x481   :  { %v3516_v1 = vpop.f32.mrb[18].mxu1  ;;  %v771_v2 = vsel %vm306_vm0, %v4676_v61, -inf }
 0x482   :  { %v4688_v3 = vadd.f32 %v3516_v1, %v36_v62  ;;  %v718_v4 = vpop.f32.mrb[19].mxu1  ;;  %772 = vmax.xlane.f32.xlu0 %v771_v2  ;;  %775 = vmax.xlane.f32.xlu1 %v774_v0 }
 0x483   :  { %v4690_v5 = vadd.f32 %v718_v4, %v35_v63 }
 0x484   :  { %v780_v9 = vsel %vm306_vm0, %v4688_v3, -inf }
 0x485   :  { %v3519_v10 = vpop.f32.mrb[20].mxu1  ;;  %v777_v11 = vsel %vm306_vm0, %v4690_v5, -inf }
 0x486   :  { %v4702_v12 = vadd.f32 %v3519_v10, %v38_v7  ;;  %v728_v14 = vpop.f32.mrb[21].mxu1  ;;  %778 = vmax.xlane.f32.xlu0 %v777_v11  ;;  %781 = vmax.xlane.f32.xlu1 %v780_v9 }
 0x487   :  { %v4704_v17 = vadd.f32 %v728_v14, %v37_v8 }
 0x488   :  { %v786_v20 = vsel %vm306_vm0, %v4702_v12, -inf }
 0x489   :  { %v3522_v21 = vpop.f32.mrb[22].mxu1  ;;  %v783_v24 = vsel %vm306_vm0, %v4704_v17, -inf }
 0x48a   :  { %v4716_v26 = vadd.f32 %v3522_v21, %v40_v18  ;;  %v738_v27 = vpop.f32.mrb[23].mxu1  ;;  %784 = vmax.xlane.f32.xlu0 %v783_v24  ;;  %787 = vmax.xlane.f32.xlu1 %v786_v20 }
 0x48b   :  { %v4718_v28 = vadd.f32 %v738_v27, %v39_v19 }
 0x48c   :  { %v792_v29 = vsel %vm306_vm0, %v4716_v26, -inf }
 0x48d   :  { %v789_v30 = vsel %vm306_vm0, %v4718_v28, -inf }
 0x48e   :  { %790 = vmax.xlane.f32.xlu0 %v789_v30  ;;  %793 = vmax.xlane.f32.xlu1 %v792_v29 }
 0x4fe   :  { %v752_v32 = vpop.xlane.xlu0 %751 }
 0x4ff   :  { %v796_v38 = vsub.f32 %v4618_v13, %v752_v32  ;;  %v749_v40 = vpop.xlane.xlu1 %748 }
 0x500   :  { %v795_v41 = vsub.f32 %v4620_v15, %v749_v40 }
 0x501   :  { %v813_v42 = vmul.f32 1.442695, %v796_v38 }
 0x502   :  { %v811_v46 = vmul.f32 1.442695, %v795_v41 }
 0x503   :  { %4011 = vpow2.f32 %v813_v42  ;;  %v755_v50 = vpop.xlane.xlu0 %754  ;;  %v758_v53 = vpop.xlane.xlu1 %757 }
 0x504   :  { %4013 = vpow2.f32 %v811_v46  ;;  %v797_v54 = vsub.f32 %v4634_v25, %v755_v50  ;;  %v798_v55 = vsub.f32 %v4632_v23, %v758_v53 }
 0x506   :  { %v815_v56 = vmul.f32 1.442695, %v797_v54  ;;  %v817_v57 = vmul.f32 1.442695, %v798_v55 }
 0x507   :  { %v761_v59 = vpop.xlane.xlu0 %760  ;;  %v764_v62 = vpop.xlane.xlu1 %763 }
 0x508   :  { %4015 = vpow2.f32 %v815_v56  ;;  %v799_v13 = vsub.f32 %v4648_v37, %v761_v59  ;;  %v800_v63 = vsub.f32 %v4646_v31, %v764_v62 }
 0x509   :  { %4017 = vpow2.f32 %v817_v57 }
 0x50a   :  { %v819_v15 = vmul.f32 1.442695, %v799_v13  ;;  %v821_v0 = vmul.f32 1.442695, %v800_v63 }
 0x50b   :  { %v767_v1 = vpop.xlane.xlu0 %766  ;;  %v770_v2 = vpop.xlane.xlu1 %769 }
 0x50c   :  { %4019 = vpow2.f32 %v819_v15  ;;  %v801_v4 = vsub.f32 %v4662_v52, %v767_v1  ;;  %v802_v25 = vsub.f32 %v4660_v49, %v770_v2 }
 0x50d   :  { %v4732_v23 = vpop.eup %4011  ;;  %4021 = vpow2.f32 %v821_v0 }
 0x50e   :  { %v4734_v7 = vpop.eup %4013  ;;  %v823_v8 = vmul.f32 1.442695, %v801_v4  ;;  %v825_v9 = vmul.f32 1.442695, %v802_v25  ;;  %v846_v31 = vsel %vm306_vm0, %v4732_v23, 0.0 }
 0x50f   :  { %v773_v37 = vpop.xlane.xlu0 %772  ;;  %847 = vadd.xlane.f32.xlu1 %v846_v31  ;;  %v776_v10 = vpop.xlane.xlu1 %775  ;;  %v843_v11 = vsel %vm306_vm0, %v4734_v7, 0.0 }
 0x510   :  { %4023 = vpow2.f32 %v823_v8  ;;  %v803_v52 = vsub.f32 %v4676_v61, %v773_v37  ;;  %v804_v49 = vsub.f32 %v4674_v58, %v776_v10  ;;  %844 = vadd.xlane.f32.xlu0 %v843_v11 }
 0x511   :  { %4025 = vpow2.f32 %v825_v9 }
 0x512   :  { %v4742_v14 = vpop.eup %4015  ;;  %v827_v18 = vmul.f32 1.442695, %v803_v52  ;;  %v829_v19 = vmul.f32 1.442695, %v804_v49  ;;  %v3963_v49 = vpack.i.bf16 %v4521_v45, %v4516_v44 }
 0x513   :  { %v4744_v20 = vpop.eup %4017  ;;  %v779_v21 = vpop.xlane.xlu0 %778  ;;  %v849_v27 = vsel %vm306_vm0, %v4742_v14, 0.0 }
 0x514   :  { %v782_v24 = vpop.xlane.xlu1 %781  ;;  %4027 = vpow2.f32 %v827_v18  ;;  %v805_v29 = vsub.f32 %v4690_v5, %v779_v21  ;;  %850 = vadd.xlane.f32.xlu0 %v849_v27  ;;  %v852_v58 = vsel %vm306_vm0, %v4744_v20, 0.0  ;;  %v3968_v18 = vpack.i.bf16 %v4533_v48, %v4528_v47 }
 0x515   :  { %v806_v61 = vsub.f32 %v4688_v3, %v782_v24  ;;  %4029 = vpow2.f32 %v829_v19  ;;  %853 = vadd.xlane.f32.xlu1 %v852_v58 }
 0x516   :  { %v4752_v30 = vpop.eup %4019  ;;  %v831_v40 = vmul.f32 1.442695, %v805_v29 }
 0x517   :  { %v833_v32 = vmul.f32 1.442695, %v806_v61  ;;  %v4754_v38 = vpop.eup %4021  ;;  %v855_v41 = vsel %vm306_vm0, %v4752_v30, 0.0  ;;  %v785_v63 = vpop.xlane.xlu0 %784 }
 0x518   :  { %856 = vadd.xlane.f32.xlu0 %v855_v41  ;;  %v858_v5 = vsel %vm306_vm0, %v4754_v38, 0.0  ;;  %v788_v15 = vpop.xlane.xlu1 %787  ;;  %v807_v0 = vsub.f32 %v4704_v17, %v785_v63 }
 0x519   :  { %4031 = vpow2.f32 %v833_v32  ;;  %859 = vadd.xlane.f32.xlu1 %v858_v5  ;;  %v808_v31 = vsub.f32 %v4702_v12, %v788_v15 }
 0x51a   :  { %v4760_v3 = vpop.eup %4023  ;;  %4033 = vpow2.f32 %v831_v40  ;;  %v835_v2 = vmul.f32 1.442695, %v807_v0 }
 0x51b   :  { %v4762_v42 = vpop.eup %4025  ;;  %v861_v46 = vsel %vm306_vm0, %v4760_v3, 0.0  ;;  %v791_v1 = vpop.xlane.xlu0 %790  ;;  %v837_v37 = vmul.f32 1.442695, %v808_v31 }
 0x51c   :  { %862 = vadd.xlane.f32.xlu0 %v861_v46  ;;  %v864_v50 = vsel %vm306_vm0, %v4762_v42, 0.0  ;;  %v809_v4 = vsub.f32 %v4718_v28, %v791_v1  ;;  %v794_v25 = vpop.xlane.xlu1 %793  ;;  %4035 = vpow2.f32 %v835_v2 }
 0x51d   :  { %865 = vadd.xlane.f32.xlu1 %v864_v50  ;;  %v810_v9 = vsub.f32 %v4716_v26, %v794_v25 }
 0x51e   :  { %v4768_v53 = vpop.eup %4027  ;;  %v839_v8 = vmul.f32 1.442695, %v809_v4 }
 0x51f   :  { %v4770_v54 = vpop.eup %4029  ;;  %v867_v55 = vsel %vm306_vm0, %v4768_v53, 0.0 }
 0x520   :  { %868 = vadd.xlane.f32.xlu0 %v867_v55  ;;  %v870_v56 = vsel %vm306_vm0, %v4770_v54, 0.0  ;;  %4037 = vpow2.f32 %v839_v8 }
 0x521   :  { %871 = vadd.xlane.f32.xlu1 %v870_v56 }
 0x523   :  { %v4776_v57 = vpop.eup %4031 }
 0x524   :  { %v876_v59 = vsel %vm306_vm0, %v4776_v57, 0.0  ;;  %v4780_v62 = vpop.eup %4033 }
 0x525   :  { %877 = vadd.xlane.f32.xlu1 %v876_v59  ;;  %v873_v13 = vsel %vm306_vm0, %v4780_v62, 0.0 }
 0x529   :  { %874 = vadd.xlane.f32.xlu1 %v873_v13 }
 0x536   :  { %3954 = vrot.lane.b32.xlu0 %v4558_v39, %s4205_s29  ;;  %v841_v39 = vmul.f32 1.442695, %v810_v9 }
 0x538   :  { %4039 = vpow2.f32 %v841_v39 }
 0x539   :  { %4041 = vpow2.f32 %v837_v37 }
 0x53a   :  { %3959 = vrot.lane.b32.xlu1 %v4564_v43, %s4205_s29  ;;  %v4792_v43 = vpop.eup %4035 }
 0x53b   :  { %v879_v17 = vsel %vm306_vm0, %v4792_v43, 0.0  ;;  %v4796_v10 = vpop.eup %4037 }
 0x53c   :  { %v885_v28 = vsel %vm306_vm0, %v4796_v10, 0.0 }
 0x542   :  { %v4800_v11 = vpop.eup %4039 }
 0x543   :  { %v4802_v12 = vpop.eup %4041  ;;  %v888_v26 = vsel %vm306_vm0, %v4800_v11, 0.0 }
 0x544   :  { %v882_v52 = vsel %vm306_vm0, %v4802_v12, 0.0 }
 0x555   :  { %880 = vadd.xlane.f32.xlu0 %v879_v17 }
 0x559   :  { %886 = vadd.xlane.f32.xlu0 %v885_v28 }
 0x55d   :  { %889 = vadd.xlane.f32.xlu0 %v888_v26 }
 0x55e   :  { %883 = vadd.xlane.f32.xlu1 %v882_v52 }
 0x56f   :  { %3969 = vrot.lane.b32.xlu1 %v3968_v18, %s4206_s30 }
 0x573   :  { %3964 = vrot.lane.b32.xlu0 %v3963_v49, %s4206_s30 }
 0x59c   :  { %v848_v19 = vpop.xlane.xlu1 %847 }
 0x59d   :  { %v845_v21 = vpop.xlane.xlu0 %844 }
 0x59e   :  { %4043 = vrcp.f32 %v845_v21 }
 0x59f   :  { %4045 = vrcp.f32 %v848_v19 }
 0x5a1   :  { %v851_v24 = vpop.xlane.xlu0 %850 }
 0x5a2   :  { %v854_v27 = vpop.xlane.xlu1 %853  ;;  %4047 = vrcp.f32 %v851_v24 }
 0x5a3   :  { %4049 = vrcp.f32 %v854_v27 }
 0x5a5   :  { %v857_v29 = vpop.xlane.xlu0 %856 }
 0x5a6   :  { %v860_v61 = vpop.xlane.xlu1 %859  ;;  %4051 = vrcp.f32 %v857_v29 }
 0x5a7   :  { %4053 = vrcp.f32 %v860_v61 }
 0x5a8   :  { %v4044_v58 = vpop.eup %4043 }
 0x5a9   :  { %v863_v32 = vpop.xlane.xlu0 %862  ;;  %v907_v40 = vmul.f32 %v4044_v58, %v4734_v7  ;;  %v4046_v63 = vpop.eup %4045 }
 0x5aa   :  { %v866_v44 = vpop.xlane.xlu1 %865  ;;  %4055 = vrcp.f32 %v863_v32  ;;  %v908_v0 = vmul.f32 %v4046_v63, %v4732_v23 }
 0x5ab   :  { %3531 = vmatprep.mubr.msk.f32.mxu0 %vm306_vm0, %v907_v40  ;;  %4057 = vrcp.f32 %v866_v44 }
 0x5ac   :  { %v4048_v15 = vpop.eup %4047 }
 0x5ad   :  { %v869_v45 = vpop.xlane.xlu0 %868  ;;  %v4050_v1 = vpop.eup %4049  ;;  %v909_v2 = vmul.f32 %v4048_v15, %v4742_v14 }
 0x5ae   :  { %v872_v47 = vpop.xlane.xlu1 %871  ;;  %4059 = vrcp.f32 %v869_v45  ;;  %v910_v25 = vmul.f32 %v4050_v1, %v4744_v20 }
 0x5af   :  { %4061 = vrcp.f32 %v872_v47 }
 0x5b0   :  { %v4052_v4 = vpop.eup %4051 }
 0x5b1   :  { %v3955_v48 = vpop.permute.xlu0 %3954  ;;  %v4054_v8 = vpop.eup %4053  ;;  %v911_v9 = vmul.f32 %v4052_v4, %v4752_v30 }
 0x5b2   :  { %v3957_v41 = vunpack.i.h.bf16 %v3955_v48  ;;  %v3956_v5 = vunpack.i.l.bf16 %v3955_v48  ;;  %v878_v46 = vpop.xlane.xlu1 %877  ;;  %v912_v23 = vmul.f32 %v4054_v8, %v4754_v38 }
 0x5b4   :  { %v3831_v50 = vpack.c.bf16 %v3957_v41, %v3956_v5  ;;  %v4056_v31 = vpop.eup %4055 }
 0x5b5   :  { %v4058_v14 = vpop.eup %4057  ;;  %v913_v39 = vmul.f32 %v4056_v31, %v4760_v3 }
 0x5b6   :  { %v875_v55 = vpop.xlane.xlu1 %874  ;;  %3832 = vmatprep.subr.bf16.mxu0 %v3831_v50  ;;  %v914_v20 = vmul.f32 %v4058_v14, %v4762_v42 }
 0x5b7   :  { %3834 = vmatpush3.bf16.msra.mxu0 %v3831_v50  ;;  %4063 = vrcp.f32 %v875_v55 }
 0x5b8   :  { %4065 = vrcp.f32 %v878_v46  ;;  %v4060_v37 = vpop.eup %4059 }
 0x5b9   :  { %v4062_v17 = vpop.eup %4061  ;;  %v915_v30 = vmul.f32 %v4060_v37, %v4768_v53 }
 0x5ba   :  { %v3960_v56 = vpop.permute.xlu1 %3959  ;;  %v916_v38 = vmul.f32 %v4062_v17, %v4770_v54 }
 0x5bb   :  { %v3962_v59 = vunpack.i.h.bf16 %v3960_v56  ;;  %v3961_v7 = vunpack.i.l.bf16 %v3960_v56 }
 0x5bd   :  { %v3835_v13 = vpack.c.bf16 %v3962_v59, %v3961_v7 }
 0x5bf   :  { %3836 = vmatprep.subr.bf16.mxu0 %v3835_v13 }
 0x5c0   :  { %3838 = vmatpush3.bf16.msra.mxu0 %v3835_v13 }
 0x5c1   :  { %v4064_v28 = vpop.eup %4063 }
 0x5c2   :  { %v4066_v26 = vpop.eup %4065  ;;  %v917_v3 = vmul.f32 %v4064_v28, %v4780_v62 }
 0x5c3   :  { %3532 = vmatmul.mubr.msk.f32.vlgmr.msra.gmra.mrb[12].mxu0 %vm306_vm0, %v908_v0  ;;  %v918_v52 = vmul.f32 %v4066_v26, %v4776_v57 }
 0x5c4   :  { %3534 = vmatprep.mubr.msk.f32.mxu0 %vm306_vm0, %v909_v2 }
 0x5c7   :  { %3535 = vmatmul.mubr.msk.f32.gmra.mrb[14].mxu0 %vm306_vm0, %v910_v25 }
 0x5c8   :  { %3537 = vmatprep.mubr.msk.f32.mxu0 %vm306_vm0, %v911_v9 }
 0x5cb   :  { %3538 = vmatmul.mubr.msk.f32.gmra.mrb[16].mxu0 %vm306_vm0, %v912_v23 }
 0x5cc   :  { %3540 = vmatprep.mubr.msk.f32.mxu0 %vm306_vm0, %v913_v39 }
 0x5cf   :  { %3541 = vmatmul.mubr.msk.f32.gmra.mrb[18].mxu0 %vm306_vm0, %v914_v20 }
 0x5d0   :  { %3543 = vmatprep.mubr.msk.f32.mxu0 %vm306_vm0, %v915_v30 }
 0x5d3   :  { %3544 = vmatmul.mubr.msk.f32.gmra.mrb[20].mxu0 %vm306_vm0, %v916_v38 }
 0x5d4   :  { %3546 = vmatprep.mubr.msk.f32.mxu0 %vm306_vm0, %v917_v3 }
 0x5d7   :  { %3547 = vmatmul.mubr.msk.f32.gmra.mrb[22].mxu0 %vm306_vm0, %v918_v52 }
 0x5e2   :  { %v881_v42 = vpop.xlane.xlu0 %880 }
 0x5e3   :  { %4067 = vrcp.f32 %v881_v42 }
 0x5e6   :  { %v887_v53 = vpop.xlane.xlu0 %886 }
 0x5e7   :  { %4069 = vrcp.f32 %v887_v53 }
 0x5ea   :  { %v890_v49 = vpop.xlane.xlu0 %889 }
 0x5eb   :  { %v884_v18 = vpop.xlane.xlu1 %883 }
 0x5ec   :  { %4071 = vrcp.f32 %v884_v18 }
 0x5ed   :  { %v4068_v19 = vpop.eup %4067  ;;  %4073 = vrcp.f32 %v890_v49 }
 0x5ee   :  { %v919_v54 = vmul.f32 %v4068_v19, %v4792_v43  ;;  %v3965_v61 = vpop.permute.xlu0 %3964 }
 0x5ef   :  { %v3970_v58 = vpop.permute.xlu1 %3969  ;;  %v3967_v43 = vunpack.i.h.bf16 %v3965_v61  ;;  %v3966_v32 = vunpack.i.l.bf16 %v3965_v61 }
 0x5f0   :  { %3549 = vmatprep.mubr.msk.f32.mxu0 %vm306_vm0, %v919_v54  ;;  %v3972_v40 = vunpack.i.h.bf16 %v3970_v58  ;;  %v3971_v44 = vunpack.i.l.bf16 %v3970_v58 }
 0x5f1   :  { %v4070_v62 = vpop.eup %4069  ;;  %v3839_v45 = vpack.c.bf16 %v3967_v43, %v3966_v32 }
 0x5f2   :  { %v921_v27 = vmul.f32 %v4070_v62, %v4796_v10  ;;  %v3843_v47 = vpack.c.bf16 %v3972_v40, %v3971_v44 }
 0x5f3   :  { %3840 = vmatprep.subr.bf16.mxu1 %v3839_v45 }
 0x5f4   :  { %3842 = vmatpush3.bf16.msra.mxu1 %v3839_v45 }
 0x5f5   :  { %3844 = vmatprep.subr.bf16.mxu1 %v3843_v47 }
 0x5f6   :  { %v4072_v21 = vpop.eup %4071 }
 0x5f7   :  { %v920_v24 = vmul.f32 %v4072_v21, %v4802_v12  ;;  %v4074_v57 = vpop.eup %4073 }
 0x5f8   :  { %v922_v29 = vmul.f32 %v4074_v57, %v4800_v11  ;;  %3846 = vmatpush3.bf16.msra.mxu1 %v3843_v47 }
 0x5f9   :  { %3550 = vmatmul.mubr.msk.f32.gmra.mrb[24].mxu0 %vm306_vm0, %v920_v24 }
 0x5fa   :  { %3552 = vmatprep.mubr.msk.f32.mxu0 %vm306_vm0, %v921_v27 }
 0x5fd   :  { %3553 = vmatmul.mubr.msk.f32.gmra.mrb[26].mxu0 %vm306_vm0, %v922_v29 }
 0x696   :  { %v3533_v10 = vpop.f32.mrb[12].mxu0 }
 0x697   :  { %v1049_v12 = vpop.f32.mrb[13].mxu0  ;;  %v1129_v11 = vmul.f32 %v3533_v10, %v4556_v36 }
 0x698   :  { %v1128_v5 = vmul.f32 %v1049_v12, %v4556_v36 }
 0x699   :  { %v1151_v59 = vsel %vm306_vm0, %v1129_v11, 0.0 }
 0x69a   :  { %v3536_v48 = vpop.f32.mrb[14].mxu0  ;;  %v1144_v63 = vsel %vm306_vm0, %v1128_v5, 0.0  ;;  %v3134_v5 = vld [vmem:[%s5493_s4 + $0xac] ss:$0 sm:$0xff] }
 0x69b   :  { %v1059_v41 = vpop.f32.mrb[15].mxu0  ;;  %v1131_v7 = vmul.f32 %v3536_v48, %v4556_v36 }
 0x69c   :  { %v1130_v15 = vmul.f32 %v1059_v41, %v4556_v36 }
 0x69d   :  { %v1165_v31 = vsel %vm306_vm0, %v1131_v7, 0.0 }
 0x69e   :  { %v3539_v46 = vpop.f32.mrb[16].mxu0  ;;  %v1158_v14 = vsel %vm306_vm0, %v1130_v15, 0.0 }
 0x69f   :  { %v1133_v50 = vmul.f32 %v3539_v46, %v4550_v33  ;;  %v1069_v55 = vpop.f32.mrb[17].mxu0 }
 0x6a0   :  { %v1132_v56 = vmul.f32 %v1069_v55, %v4550_v33 }
 0x6a1   :  { %v1152_v13 = vsel %vm306_vm0, %v1133_v50, 0.0 }
 0x6a2   :  { %v1153_v0 = vadd.f32 %v1152_v13, %v1151_v59  ;;  %v1145_v1 = vsel %vm306_vm0, %v1132_v56, 0.0  ;;  %v3542_v2 = vpop.f32.mrb[18].mxu0 }
 0x6a3   :  { %v1146_v4 = vadd.f32 %v1145_v1, %v1144_v63  ;;  %v1135_v25 = vmul.f32 %v3542_v2, %v4550_v33  ;;  %v1079_v8 = vpop.f32.mrb[19].mxu0 }
 0x6a4   :  { %v1134_v9 = vmul.f32 %v1079_v8, %v4550_v33 }
 0x6a5   :  { %v1166_v23 = vsel %vm306_vm0, %v1135_v25, 0.0  ;;  %v301_v25 = vld [vmem:[%s5494_s2 + $0x18] sm:$0xff] }
 0x6a6   :  { %v1167_v39 = vadd.f32 %v1166_v23, %v1165_v31  ;;  %v1159_v37 = vsel %vm306_vm0, %v1134_v9, 0.0  ;;  %v3545_v20 = vpop.f32.mrb[20].mxu0 }
 0x6a7   :  { %v1160_v17 = vadd.f32 %v1159_v37, %v1158_v14  ;;  %v1137_v30 = vmul.f32 %v3545_v20, %v4552_v34  ;;  %v1089_v28 = vpop.f32.mrb[21].mxu0 }
 0x6a8   :  { %v1136_v38 = vmul.f32 %v1089_v28, %v4552_v34 }
 0x6a9   :  { %v1154_v26 = vsel %vm306_vm0, %v1137_v30, 0.0 }
 0x6aa   :  { %v1155_v3 = vadd.f32 %v1154_v26, %v1153_v0  ;;  %v1147_v52 = vsel %vm306_vm0, %v1136_v38, 0.0  ;;  %v3548_v42 = vpop.f32.mrb[22].mxu0 }
 0x6ab   :  { %v1148_v53 = vadd.f32 %v1147_v52, %v1146_v4  ;;  %v1139_v49 = vmul.f32 %v3548_v42, %v4552_v34  ;;  %v1099_v18 = vpop.f32.mrb[23].mxu0 }
 0x6ac   :  { %v1138_v19 = vmul.f32 %v1099_v18, %v4552_v34 }
 0x6ad   :  { %v1168_v54 = vsel %vm306_vm0, %v1139_v49, 0.0 }
 0x6ae   :  { %v1169_v62 = vadd.f32 %v1168_v54, %v1167_v39  ;;  %v1161_v21 = vsel %vm306_vm0, %v1138_v19, 0.0 }
 0x6af   :  { %v1162_v24 = vadd.f32 %v1161_v21, %v1160_v17  ;;  %v305_v21 = vld [vmem:[%s5494_s2 + $0x38] sm:$0xff] }
 0x6cc   :  { %v3551_v57 = vpop.f32.mrb[24].mxu0 }
 0x6cd   :  { %v1141_v27 = vmul.f32 %v3551_v57, %v4554_v35  ;;  %v1109_v29 = vpop.f32.mrb[25].mxu0 }
 0x6ce   :  { %v1140_v61 = vmul.f32 %v1109_v29, %v4554_v35 }
 0x6cf   :  { %v1156_v58 = vsel %vm306_vm0, %v1141_v27, 0.0 }
 0x6d0   :  { %v1157_v43 = vadd.f32 %v1156_v58, %v1155_v3  ;;  %v1149_v32 = vsel %vm306_vm0, %v1140_v61, 0.0  ;;  %v3554_v40 = vpop.f32.mrb[26].mxu0 }
 0x6d1   :  { %v1150_v44 = vadd.f32 %v1149_v32, %v1148_v53  ;;  %v1143_v45 = vmul.f32 %v3554_v40, %v4554_v35  ;;  %v1119_v47 = vpop.f32.mrb[27].mxu0 }
 0x6d2   :  { %v1142_v10 = vmul.f32 %v1119_v47, %v4554_v35 }
 0x6d3   :  { %v1170_v12 = vsel %vm306_vm0, %v1143_v45, 0.0  ;;  %3563 = vmatprep.mubr.msk.f32.mxu1 %vm306_vm0, %v1150_v44 }
 0x6d4   :  { %v1171_v48 = vadd.f32 %v1170_v12, %v1169_v62  ;;  %v1163_v41 = vsel %vm306_vm0, %v1142_v10, 0.0  ;;  %3564 = vmatmul.mubr.msk.f32.vlgmr.msra.gmra.mrb[24].mxu1 %vm306_vm0, %v1157_v43  ;;  %v303_v62 = vld [vmem:[%s5494_s2 + $0x28] sm:$0xff] }
 0x6d5   :  { %v1164_v11 = vadd.f32 %v1163_v41, %v1162_v24  ;;  %v3851_v24 = vpack.c.bf16 %v305_v21, %v303_v62 }
 0x6d7   :  { %3566 = vmatprep.mubr.msk.f32.mxu1 %vm306_vm0, %v1164_v11 }
 0x6d8   :  { %3567 = vmatmul.mubr.msk.f32.gmra.mrb[26].mxu1 %vm306_vm0, %v1171_v48  ;;  %v3135_v48 = vld [vmem:[%s5493_s4 + $0xaa] ss:$0 sm:$0xff] }
 0x7a7   :  { %v3565_v46 = vpop.f32.mrb[24].mxu1 }
 0x7a8   :  { %v1286_v50 = vadd.f32 %v3565_v46, %v4490_v6  ;;  %v1266_v55 = vpop.f32.mrb[25].mxu1  ;;  %v3136_v46 = vld [vmem:[%s5493_s4 + $0xab] ss:$0 sm:$0xff] }
 0x7a9   :  { %v1285_v56 = vadd.f32 %v1266_v55, %v4483_v60 }
 0x7aa   :  { %v4887_v59 = vadd.f32 %v3134_v5, %v1286_v50 }
 0x7ab   :  { %v4889_v7 = vadd.f32 %v3134_v5, %v1285_v56  ;;  %v3568_v13 = vpop.f32.mrb[26].mxu1 }
 0x7ac   :  { %v1288_v63 = vadd.f32 %v3568_v13, %v4501_v22  ;;  %v1276_v15 = vpop.f32.mrb[27].mxu1  ;;  %v1300_v0 = vsel %vm306_vm0, %v4887_v59, 0.0 }
 0x7ad   :  { %v1287_v1 = vadd.f32 %v1276_v15, %v4497_v16  ;;  %1301 = vadd.xlane.f32.xlu0 %v1300_v0  ;;  %v1297_v6 = vsel %vm306_vm0, %v4889_v7, 0.0  ;;  %v299_v16 = vld [vmem:[%s5494_s2 + $0x8] sm:$0xff] }
 0x7ae   :  { %v4897_v2 = vadd.f32 %v3134_v5, %v1288_v63  ;;  %1298 = vadd.xlane.f32.xlu1 %v1297_v6  ;;  %v3847_v8 = vpack.c.bf16 %v301_v25, %v299_v16  ;;  %v1502_v25 = vld [vmem:[%s5495_s3] sm:$0xff] }
 0x7af   :  { %v4899_v60 = vadd.f32 %v3134_v5, %v1287_v1 }
 0x7b0   :  { %v1306_v4 = vsel %vm306_vm0, %v4897_v2, 0.0  ;;  %3848 = vmatprep.subr.bf16.mxu0 %v3847_v8 }
 0x7b1   :  { %v1303_v22 = vsel %vm306_vm0, %v4899_v60, 0.0  ;;  %3850 = vmatpush3.bf16.msra.mxu0 %v3847_v8  ;;  %v1503_v8 = vld [vmem:[%s5495_s3 + $0x8] sm:$0xff] }
 0x7b2   :  { %1307 = vadd.xlane.f32.xlu1 %v1306_v4  ;;  %1304 = vadd.xlane.f32.xlu0 %v1303_v22 }
 0x7b3   :  { %3852 = vmatprep.subr.bf16.mxu0 %v3851_v24 }
 0x7b5   :  { %3854 = vmatpush3.bf16.msra.mxu0 %v3851_v24 }
 0x83a   :  { %v1302_v9 = vpop.xlane.xlu0 %1301 }
 0x83b   :  { %v1310_v31 = vmul.f32 0.03125, %v1302_v9  ;;  %v1299_v23 = vpop.xlane.xlu1 %1298  ;;  %v3855_v9 = vpack.c.bf16 %v1503_v8, %v1502_v25 }
 0x83c   :  { %v1309_v14 = vmul.f32 0.03125, %v1299_v23  ;;  %v1505_v23 = vld [vmem:[%s5495_s3 + $0x18] sm:$0xff] }
 0x83d   :  { %v1314_v39 = vsub.f32 %v4887_v59, %v1310_v31  ;;  %3856 = vmatprep.subr.bf16.mxu1 %v3855_v9  ;;  %v1504_v31 = vld [vmem:[%s5495_s3 + $0x10] sm:$0xff] }
 0x83e   :  { %v1313_v37 = vsub.f32 %v4889_v7, %v1309_v14  ;;  %3858 = vmatpush3.bf16.msra.mxu1 %v3855_v9  ;;  %v3859_v14 = vpack.c.bf16 %v1505_v23, %v1504_v31  ;;  %v3146_v9 = vld [vmem:[%s5493_s4 + $0xad] ss:$0 sm:$0xff] }
 0x83f   :  { %v1308_v20 = vpop.xlane.xlu1 %1307  ;;  %v1305_v17 = vpop.xlane.xlu0 %1304  ;;  %v1318_v30 = vmul.f32 %v1314_v39, %v1314_v39 }
 0x840   :  { %v1312_v28 = vmul.f32 0.03125, %v1308_v20  ;;  %v1311_v38 = vmul.f32 0.03125, %v1305_v17  ;;  %v1317_v26 = vmul.f32 %v1313_v37, %v1313_v37  ;;  %3860 = vmatprep.subr.bf16.mxu1 %v3859_v14  ;;  %v1508_v17 = vld [vmem:[%s5495_s3 + $0x30] sm:$0xff] }
 0x841   :  { %v1324_v3 = vsel %vm306_vm0, %v1318_v30, 0.0  ;;  %v1509_v30 = vld [vmem:[%s5495_s3 + $0x38] sm:$0xff] }
 0x842   :  { %v1316_v52 = vsub.f32 %v4897_v2, %v1312_v28  ;;  %v1315_v42 = vsub.f32 %v4899_v60, %v1311_v38  ;;  %1325 = vadd.xlane.f32.xlu1 %v1324_v3  ;;  %v1321_v53 = vsel %vm306_vm0, %v1317_v26, 0.0  ;;  %3862 = vmatpush3.bf16.msra.mxu1 %v3859_v14  ;;  %v3867_v28 = vpack.c.bf16 %v1509_v30, %v1508_v17  ;;  %v3137_v38 = vld [vmem:[%s5493_s4 + $0xae] ss:$0 sm:$0xff] }
 0x843   :  { %1322 = vadd.xlane.f32.xlu0 %v1321_v53 }
 0x844   :  { %v1320_v49 = vmul.f32 %v1316_v52, %v1316_v52  ;;  %v1319_v18 = vmul.f32 %v1315_v42, %v1315_v42 }
 0x846   :  { %v1330_v19 = vsel %vm306_vm0, %v1320_v49, 0.0  ;;  %v1327_v54 = vsel %vm306_vm0, %v1319_v18, 0.0 }
 0x847   :  { %1331 = vadd.xlane.f32.xlu1 %v1330_v19  ;;  %1328 = vadd.xlane.f32.xlu0 %v1327_v54 }
 0x8cf   :  { %v1326_v57 = vpop.xlane.xlu1 %1325 }
 0x8d0   :  { %v1334_v27 = vmul.f32 0.03125, %v1326_v57  ;;  %v1323_v29 = vpop.xlane.xlu0 %1322 }
 0x8d1   :  { %v1333_v61 = vmul.f32 0.03125, %v1323_v29 }
 0x8d2   :  { %v1338_v58 = vadd.f32 1e-05, %v1334_v27 }
 0x8d3   :  { %v1337_v43 = vadd.f32 1e-05, %v1333_v61 }
 0x8d4   :  { %4075 = vrsqrt.f32 %v1338_v58  ;;  %v1332_v32 = vpop.xlane.xlu1 %1331  ;;  %v1329_v40 = vpop.xlane.xlu0 %1328 }
 0x8d5   :  { %4077 = vrsqrt.f32 %v1337_v43  ;;  %v1336_v44 = vmul.f32 0.03125, %v1332_v32  ;;  %v1335_v45 = vmul.f32 0.03125, %v1329_v40 }
 0x8d7   :  { %v1340_v47 = vadd.f32 1e-05, %v1336_v44  ;;  %v1339_v10 = vadd.f32 1e-05, %v1335_v45 }
 0x8d9   :  { %4079 = vrsqrt.f32 %v1340_v47 }
 0x8da   :  { %4081 = vrsqrt.f32 %v1339_v10 }
 0x8de   :  { %v4076_v12 = vpop.eup %4075 }
 0x8df   :  { %v4078_v41 = vpop.eup %4077  ;;  %v1346_v11 = vmul.f32 %v4076_v12, %v1314_v39  ;;  %v1506_v39 = vld [vmem:[%s5495_s3 + $0x20] sm:$0xff] }
 0x8e0   :  { %v1345_v5 = vmul.f32 %v4078_v41, %v1313_v37  ;;  %v1507_v37 = vld [vmem:[%s5495_s3 + $0x28] sm:$0xff] }
 0x8e1   :  { %v1354_v50 = vmul.f32 %v3135_v48, %v1346_v11  ;;  %v3863_v20 = vpack.c.bf16 %v1507_v37, %v1506_v39 }
 0x8e2   :  { %v1353_v55 = vmul.f32 %v3135_v48, %v1345_v5 }
 0x8e3   :  { %v4080_v56 = vpop.eup %4079  ;;  %v1362_v0 = vadd.f32 %v3136_v46, %v1354_v50  ;;  %3864 = vmatprep.subr.bf16.mxu1 %v3863_v20 }
 0x8e4   :  { %v4082_v13 = vpop.eup %4081  ;;  %v1361_v63 = vadd.f32 %v3136_v46, %v1353_v55  ;;  %v1348_v15 = vmul.f32 %v4080_v56, %v1316_v52  ;;  %3866 = vmatpush3.bf16.msra.mxu1 %v3863_v20 }
 0x8e5   :  { %v1347_v1 = vmul.f32 %v4082_v13, %v1315_v42  ;;  %3868 = vmatprep.subr.bf16.mxu1 %v3867_v28 }
 0x8e6   :  { %3577 = vmatprep.mubr.msk.f32.mxu0 %vm306_vm0, %v1361_v63  ;;  %v1356_v6 = vmul.f32 %v3135_v48, %v1348_v15 }
 0x8e7   :  { %3578 = vmatmul.mubr.msk.f32.vlgmr.msra.gmra.mrb[28].mxu0 %vm306_vm0, %v1362_v0  ;;  %v1355_v4 = vmul.f32 %v3135_v48, %v1347_v1 }
 0x8e8   :  { %v1364_v22 = vadd.f32 %v3136_v46, %v1356_v6  ;;  %3870 = vmatpush3.bf16.msra.mxu1 %v3867_v28 }
 0x8e9   :  { %v1363_v16 = vadd.f32 %v3136_v46, %v1355_v4 }
 0x8eb   :  { %3580 = vmatprep.mubr.msk.f32.mxu0 %vm306_vm0, %v1363_v16 }
 0x8ec   :  { %3581 = vmatmul.mubr.msk.f32.gmra.mrb[30].mxu0 %vm306_vm0, %v1364_v22 }
 0x9ba   :  { %v3579_v26 = vpop.f32.mrb[28].mxu0 }
 0x9bb   :  { %v1453_v3 = vadd.f32 %v3579_v26, %v3137_v38  ;;  %v1447_v52 = vpop.f32.mrb[29].mxu0 }
 0x9bc   :  { %v1448_v42 = vadd.f32 %v3137_v38, %v1447_v52 }
 0x9bd   :  { %v1467_v53 = vmul.f32 %v1453_v3, %v1453_v3 }
 0x9be   :  { %v1466_v49 = vmul.f32 %v1448_v42, %v1448_v42 }
 0x9bf   :  { %v1471_v18 = vmul.f32 %v1467_v53, %v1453_v3  ;;  %v3582_v19 = vpop.f32.mrb[30].mxu0 }
 0x9c0   :  { %v1470_v54 = vmul.f32 %v1466_v49, %v1448_v42  ;;  %v1463_v62 = vadd.f32 %v3582_v19, %v3137_v38  ;;  %v1457_v21 = vpop.f32.mrb[31].mxu0 }
 0x9c1   :  { %v1475_v24 = vmul.f32 0.044715, %v1471_v18  ;;  %v1458_v57 = vadd.f32 %v3137_v38, %v1457_v21 }
 0x9c2   :  { %v1474_v27 = vmul.f32 0.044715, %v1470_v54  ;;  %v1469_v29 = vmul.f32 %v1463_v62, %v1463_v62 }
 0x9c3   :  { %v1479_v61 = vadd.f32 %v1475_v24, %v1453_v3  ;;  %v1468_v58 = vmul.f32 %v1458_v57, %v1458_v57 }
 0x9c4   :  { %v1478_v43 = vadd.f32 %v1474_v27, %v1448_v42  ;;  %v1473_v32 = vmul.f32 %v1469_v29, %v1463_v62 }
 0x9c5   :  { %v1483_v40 = vmul.f32 0.7978846, %v1479_v61  ;;  %v1472_v44 = vmul.f32 %v1468_v58, %v1458_v57 }
 0x9c6   :  { %v1482_v45 = vmul.f32 0.7978846, %v1478_v43  ;;  %v1477_v47 = vmul.f32 0.044715, %v1473_v32 }
 0x9c7   :  { %4083 = vtanh.f32 %v1483_v40  ;;  %v1476_v10 = vmul.f32 0.044715, %v1472_v44 }
 0x9c8   :  { %4085 = vtanh.f32 %v1482_v45  ;;  %v1481_v12 = vadd.f32 %v1477_v47, %v1463_v62  ;;  %v5000_v47 = vld [vmem:[%s5494_s2 + $0x40] sm:$0xff] }
 0x9c9   :  { %v1480_v48 = vadd.f32 %v1476_v10, %v1458_v57  ;;  %v5005_v10 = vld [vmem:[%s5494_s2 + $0x50] sm:$0xff] }
 0x9ca   :  { %v1485_v41 = vmul.f32 0.7978846, %v1481_v12  ;;  %v3871_v12 = vpack.c.bf16 %v5005_v10, %v5000_v47 }
 0x9cb   :  { %v1484_v11 = vmul.f32 0.7978846, %v1480_v48  ;;  %v3993_v48 = vpack.i.bf16 %v5005_v10, %v5000_v47 }
 0x9cc   :  { %4087 = vtanh.f32 %v1485_v41  ;;  %v5014_v41 = vld [vmem:[%s5494_s2 + $0x60] sm:$0xff]  ;;  %3872 = vmatprep.subr.bf16.mxu0 %v3871_v12 }
 0x9cd   :  { %4089 = vtanh.f32 %v1484_v11  ;;  %v5019_v11 = vld [vmem:[%s5494_s2 + $0x70] sm:$0xff]  ;;  %3874 = vmatpush3.bf16.msra.mxu0 %v3871_v12 }
 0x9d1   :  { %v4084_v5 = vpop.eup %4083 }
 0x9d2   :  { %v4086_v46 = vpop.eup %4085  ;;  %v1491_v50 = vadd.f32 1.0, %v4084_v5  ;;  %v3998_v5 = vpack.i.bf16 %v5019_v11, %v5014_v41 }
 0x9d3   :  { %v1490_v55 = vadd.f32 1.0, %v4086_v46  ;;  %v3875_v46 = vpack.c.bf16 %v5019_v11, %v5014_v41 }
 0x9d4   :  { %v1495_v56 = vmul.f32 0.5, %v1491_v50 }
 0x9d5   :  { %v1494_v13 = vmul.f32 0.5, %v1490_v55  ;;  %3876 = vmatprep.subr.bf16.mxu0 %v3875_v46 }
 0x9d6   :  { %v4088_v63 = vpop.eup %4087  ;;  %v1499_v6 = vmul.f32 %v1495_v56, %v1453_v3  ;;  %3878 = vmatpush3.bf16.msra.mxu0 %v3875_v46 }
 0x9d7   :  { %v4090_v15 = vpop.eup %4089  ;;  %v1498_v0 = vmul.f32 %v1494_v13, %v1448_v42  ;;  %v1493_v1 = vadd.f32 1.0, %v4088_v63 }
 0x9d8   :  { %v1492_v4 = vadd.f32 1.0, %v4090_v15 }
 0x9d9   :  { %3599 = vmatprep.mubr.msk.f32.mxu1 %vm1510_vm2, %v1498_v0  ;;  %v1497_v22 = vmul.f32 0.5, %v1493_v1 }
 0x9da   :  { %3600 = vmatmul.mubr.msk.f32.vlgmr.msra.gmra.mrb[28].mxu1 %vm1510_vm2, %v1499_v6  ;;  %v1496_v16 = vmul.f32 0.5, %v1492_v4 }
 0x9db   :  { %v1501_v8 = vmul.f32 %v1497_v22, %v1463_v62 }
 0x9dc   :  { %v1500_v25 = vmul.f32 %v1496_v16, %v1458_v57 }
 0x9de   :  { %3602 = vmatprep.mubr.msk.f32.mxu1 %vm1510_vm2, %v1500_v25 }
 0x9df   :  { %3603 = vmatmul.mubr.msk.f32.gmra.mrb[30].mxu1 %vm1510_vm2, %v1501_v8  ;;  %v3155_v8 = vld [vmem:[%s5493_s4 + $0xb0] ss:$0 sm:$0xff] }
 0xaad   :  { %v3601_v31 = vpop.f32.mrb[28].mxu1 }
 0xaae   :  { %v1609_v23 = vadd.f32 %v3601_v31, %v4887_v59  ;;  %v1589_v14 = vpop.f32.mrb[29].mxu1 }
 0xaaf   :  { %v1608_v39 = vadd.f32 %v1589_v14, %v4889_v7  ;;  %v3156_v14 = vld [vmem:[%s5493_s4 + $0xb1] ss:$0 sm:$0xff] }
 0xab0   :  { %v4971_v37 = vadd.f32 %v3146_v9, %v1609_v23 }
 0xab1   :  { %v4973_v20 = vadd.f32 %v3146_v9, %v1608_v39 }
 0xab2   :  { %v3604_v17 = vpop.f32.mrb[30].mxu1  ;;  %v1639_v30 = vsel %vm306_vm0, %v4971_v37, 0.0 }
 0xab3   :  { %v1611_v28 = vadd.f32 %v3604_v17, %v4897_v2  ;;  %v1599_v38 = vpop.f32.mrb[31].mxu1  ;;  %1640 = vadd.xlane.f32.xlu1 %v1639_v30  ;;  %v1636_v26 = vsel %vm306_vm0, %v4973_v20, 0.0 }
 0xab4   :  { %v1610_v59 = vadd.f32 %v1599_v38, %v4899_v60  ;;  %1637 = vadd.xlane.f32.xlu0 %v1636_v26 }
 0xab5   :  { %v4981_v3 = vadd.f32 %v3146_v9, %v1611_v28 }
 0xab6   :  { %v4983_v7 = vadd.f32 %v3146_v9, %v1610_v59 }
 0xab7   :  { %v1645_v52 = vsel %vm306_vm0, %v4981_v3, 0.0 }
 0xab8   :  { %1646 = vadd.xlane.f32.xlu1 %v1645_v52  ;;  %v1642_v42 = vsel %vm306_vm0, %v4983_v7, 0.0 }
 0xab9   :  { %1643 = vadd.xlane.f32.xlu0 %v1642_v42 }
 0xb40   :  { %v1641_v2 = vpop.xlane.xlu1 %1640 }
 0xb41   :  { %v1649_v53 = vmul.f32 0.03125, %v1641_v2  ;;  %v1638_v49 = vpop.xlane.xlu0 %1637 }
 0xb42   :  { %v1648_v18 = vmul.f32 0.03125, %v1638_v49 }
 0xb43   :  { %v1653_v19 = vsub.f32 %v4971_v37, %v1649_v53 }
 0xb44   :  { %v1652_v60 = vsub.f32 %v4973_v20, %v1648_v18 }
 0xb45   :  { %v1647_v54 = vpop.xlane.xlu1 %1646  ;;  %v1657_v62 = vmul.f32 %v1653_v19, %v1653_v19 }
 0xb46   :  { %v1651_v21 = vmul.f32 0.03125, %v1647_v54  ;;  %v1644_v24 = vpop.xlane.xlu0 %1643  ;;  %v1656_v57 = vmul.f32 %v1652_v60, %v1652_v60 }
 0xb47   :  { %v1650_v27 = vmul.f32 0.03125, %v1644_v24  ;;  %v1663_v29 = vsel %vm306_vm0, %v1657_v62, 0.0 }
 0xb48   :  { %v1655_v61 = vsub.f32 %v4981_v3, %v1651_v21  ;;  %1664 = vadd.xlane.f32.xlu1 %v1663_v29  ;;  %v1660_v58 = vsel %vm306_vm0, %v1656_v57, 0.0 }
 0xb49   :  { %v1654_v43 = vsub.f32 %v4983_v7, %v1650_v27  ;;  %1661 = vadd.xlane.f32.xlu0 %v1660_v58 }
 0xb4a   :  { %v1659_v32 = vmul.f32 %v1655_v61, %v1655_v61 }
 0xb4b   :  { %v1658_v40 = vmul.f32 %v1654_v43, %v1654_v43 }
 0xb4c   :  { %v1669_v44 = vsel %vm306_vm0, %v1659_v32, 0.0 }
 0xb4d   :  { %1670 = vadd.xlane.f32.xlu1 %v1669_v44  ;;  %v1666_v45 = vsel %vm306_vm0, %v1658_v40, 0.0 }
 0xb4e   :  { %1667 = vadd.xlane.f32.xlu0 %v1666_v45 }
 0xbd5   :  { %v1665_v50 = vpop.xlane.xlu1 %1664 }
 0xbd6   :  { %v1673_v55 = vmul.f32 0.03125, %v1665_v50  ;;  %v1662_v56 = vpop.xlane.xlu0 %1661 }
 0xbd7   :  { %v1672_v13 = vmul.f32 0.03125, %v1662_v56 }
 0xbd8   :  { %v1677_v63 = vadd.f32 1e-05, %v1673_v55 }
 0xbd9   :  { %v1676_v15 = vadd.f32 1e-05, %v1672_v13 }
 0xbda   :  { %4091 = vrsqrt.f32 %v1677_v63  ;;  %v1671_v0 = vpop.xlane.xlu1 %1670 }
 0xbdb   :  { %4093 = vrsqrt.f32 %v1676_v15  ;;  %v1675_v1 = vmul.f32 0.03125, %v1671_v0  ;;  %v1668_v6 = vpop.xlane.xlu0 %1667 }
 0xbdc   :  { %v1674_v4 = vmul.f32 0.03125, %v1668_v6 }
 0xbdd   :  { %v1679_v22 = vadd.f32 1e-05, %v1675_v1 }
 0xbde   :  { %v1678_v16 = vadd.f32 1e-05, %v1674_v4 }
 0xbdf   :  { %4095 = vrsqrt.f32 %v1679_v22 }
 0xbe0   :  { %4097 = vrsqrt.f32 %v1678_v16  ;;  %v4187_v16 = vld [vmem:[%s5493_s4 + $0x30] sm:$0xff] }
 0xbe4   :  { %v4092_v25 = vpop.eup %4091 }
 0xbe5   :  { %v4094_v9 = vpop.eup %4093  ;;  %v1685_v31 = vmul.f32 %v4092_v25, %v1653_v19 }
 0xbe6   :  { %v1684_v23 = vmul.f32 %v4094_v9, %v1652_v60  ;;  %v4188_v9 = vld [vmem:[%s5493_s4 + $0x28] sm:$0xff] }
 0xbe7   :  { %v1693_v39 = vmul.f32 %v3155_v8, %v1685_v31 }
 0xbe8   :  { %v1692_v17 = vmul.f32 %v3155_v8, %v1684_v23 }
 0xbe9   :  { %v4096_v30 = vpop.eup %4095  ;;  %v1701_v59 = vadd.f32 %v3156_v14, %v1693_v39 }
 0xbea   :  { %v4098_v28 = vpop.eup %4097  ;;  %v1700_v38 = vadd.f32 %v3156_v14, %v1692_v17  ;;  %v1687_v26 = vmul.f32 %v4096_v30, %v1655_v61  ;;  %v4189_v17 = vld [vmem:[%s5493_s4 + $0x40] sm:$0xff] }
 0xbeb   :  { %v1686_v52 = vmul.f32 %v4098_v28, %v1654_v43 }
 0xbec   :  { %3613 = vmatprep.mubr.msk.f32.mxu0 %vm306_vm0, %v1700_v38  ;;  %v1695_v42 = vmul.f32 %v3155_v8, %v1687_v26  ;;  %v4190_v38 = vld [vmem:[%s5493_s4 + $0x38] sm:$0xff] }
 0xbed   :  { %3614 = vmatmul.mubr.msk.f32.vlgmr.msra.gmra.mrb[32].mxu0 %vm306_vm0, %v1701_v59  ;;  %v1694_v2 = vmul.f32 %v3155_v8, %v1686_v52 }
 0xbee   :  { %v1703_v49 = vadd.f32 %v3156_v14, %v1695_v42 }
 0xbef   :  { %v1702_v53 = vadd.f32 %v3156_v14, %v1694_v2  ;;  %v4191_v2 = vld [vmem:[%s5493_s4 + $0x50] sm:$0xff] }
 0xbf1   :  { %3616 = vmatprep.mubr.msk.f32.mxu0 %vm306_vm0, %v1702_v53 }
 0xbf2   :  { %3617 = vmatmul.mubr.msk.f32.gmra.mrb[34].mxu0 %vm306_vm0, %v1703_v49 }
 0xcc0   :  { %v3615_v18 = vpop.f32.mrb[32].mxu0 }
 0xcc1   :  { %v1782_v19 = vpop.f32.mrb[33].mxu0  ;;  %v1802_v44 = vmul.f32 %v3615_v18, %v4556_v36  ;;  %v1806_v50 = vmul.f32 %v3615_v18, %v4550_v33  ;;  %v1810_v13 = vmul.f32 %v3615_v18, %v4552_v34  ;;  %v1814_v1 = vmul.f32 %v3615_v18, %v4554_v35 }
 0xcc2   :  { %v5035_v60 = vpack.i.bf16 %v3615_v18, %v1782_v19  ;;  %v1801_v54 = vmul.f32 %v1782_v19, %v4556_v36  ;;  %v1805_v46 = vmul.f32 %v1782_v19, %v4550_v33  ;;  %v1809_v56 = vmul.f32 %v1782_v19, %v4552_v34  ;;  %v4192_v18 = vld [vmem:[%s5493_s4 + $0x48] sm:$0xff] }
 0xcc3   :  { %v1813_v0 = vmul.f32 %v1782_v19, %v4554_v35 }
 0xcc4   :  { %3974 = vrot.lane.b32.xlu0 %v5035_v60, %s4204_s22  ;;  %3627 = vmatprep.mubr.msk.f32.mxu0 %vm306_vm0, %v1801_v54 }
 0xcc5   :  { %v3618_v62 = vpop.f32.mrb[34].mxu0 }
 0xcc6   :  { %v1792_v21 = vpop.f32.mrb[35].mxu0  ;;  %v1804_v12 = vmul.f32 %v3618_v62, %v4556_v36  ;;  %v1808_v55 = vmul.f32 %v3618_v62, %v4550_v33  ;;  %v1812_v15 = vmul.f32 %v3618_v62, %v4552_v34  ;;  %v1816_v4 = vmul.f32 %v3618_v62, %v4554_v35 }
 0xcc7   :  { %v5041_v24 = vpack.i.bf16 %v3618_v62, %v1792_v21  ;;  %v1803_v45 = vmul.f32 %v1792_v21, %v4556_v36  ;;  %v1807_v51 = vmul.f32 %v1792_v21, %v4550_v33  ;;  %v1811_v63 = vmul.f32 %v1792_v21, %v4552_v34 }
 0xcc8   :  { %v1815_v6 = vmul.f32 %v1792_v21, %v4554_v35 }
 0xcc9   :  { %3979 = vrot.lane.b32.xlu1 %v5041_v24, %s4204_s22 }
 0xd36   :  { %v3975_v57 = vpop.permute.xlu0 %3974 }
 0xd37   :  { %v3977_v27 = vunpack.i.h.bf16 %v3975_v57  ;;  %v3976_v29 = vunpack.i.l.bf16 %v3975_v57  ;;  %v4193_v57 = vld [vmem:[%s5493_s4 + $0x60] sm:$0xff] }
 0xd39   :  { %v3879_v61 = vpack.c.bf16 %v3977_v27, %v3976_v29 }
 0xd3b   :  { %v3980_v58 = vpop.permute.xlu1 %3979  ;;  %3881 = vmatprep.subr.msk.bf16.mxu0 %vm4570_vm1, %v3879_v61 }
 0xd3c   :  { %v3982_v43 = vunpack.i.h.bf16 %v3980_v58  ;;  %v3981_v32 = vunpack.i.l.bf16 %v3980_v58  ;;  %3884 = vmatpush3.bf16.xpose.msk.msra.mxu0 %vm4570_vm1, %v3879_v61  ;;  %v4194_v61 = vld [vmem:[%s5493_s4 + $0x58] sm:$0xff] }
 0xd3e   :  { %v3885_v40 = vpack.c.bf16 %v3982_v43, %v3981_v32 }
 0xd40   :  { %3887 = vmatprep.subr.msk.bf16.mxu0 %vm4570_vm1, %v3885_v40 }
 0xd44   :  { %3890 = vmatpush3.bf16.xpose.msk.msra.mxu0 %vm4570_vm1, %v3885_v40 }
 0xd4b   :  { %3628 = vmatmul.mubr.msk.f32.vlgmr.msra.gmra.mrb[36].mxu0 %vm306_vm0, %v1802_v44  ;;  %v4195_v44 = vld [vmem:[%s5493_s4 + $0x70] sm:$0xff] }
 0xd4c   :  { %3630 = vmatprep.mubr.msk.f32.mxu0 %vm306_vm0, %v1803_v45 }
 0xd4f   :  { %3631 = vmatmul.mubr.msk.f32.gmra.mrb[38].mxu0 %vm306_vm0, %v1804_v12 }
 0xd50   :  { %3633 = vmatprep.mubr.msk.f32.mxu0 %vm306_vm0, %v1805_v46  ;;  %v4196_v46 = vld [vmem:[%s5493_s4 + $0x68] sm:$0xff] }
 0xd53   :  { %3634 = vmatmul.mubr.msk.f32.gmra.mrb[40].mxu0 %vm306_vm0, %v1806_v50 }
 0xd54   :  { %3636 = vmatprep.mubr.msk.f32.mxu0 %vm306_vm0, %v1807_v51 }
 0xd57   :  { %3637 = vmatmul.mubr.msk.f32.gmra.mrb[42].mxu0 %vm306_vm0, %v1808_v55 }
 0xd58   :  { %3639 = vmatprep.mubr.msk.f32.mxu0 %vm306_vm0, %v1809_v56 }
 0xd5b   :  { %3640 = vmatmul.mubr.msk.f32.gmra.mrb[44].mxu0 %vm306_vm0, %v1810_v13  ;;  %v4197_v13 = vld [vmem:[%s5493_s4 + $0x80] sm:$0xff] }
 0xd5c   :  { %3642 = vmatprep.mubr.msk.f32.mxu0 %vm306_vm0, %v1811_v63 }
 0xd5f   :  { %3643 = vmatmul.mubr.msk.f32.gmra.mrb[46].mxu0 %vm306_vm0, %v1812_v15 }
 0xd60   :  { %3645 = vmatprep.mubr.msk.f32.mxu0 %vm306_vm0, %v1813_v0  ;;  %v4198_v0 = vld [vmem:[%s5493_s4 + $0x78] sm:$0xff] }
 0xd63   :  { %3646 = vmatmul.mubr.msk.f32.gmra.mrb[48].mxu0 %vm306_vm0, %v1814_v1 }
 0xd64   :  { %3648 = vmatprep.mubr.msk.f32.mxu0 %vm306_vm0, %v1815_v6 }
 0xd67   :  { %3649 = vmatmul.mubr.msk.f32.gmra.mrb[50].mxu0 %vm306_vm0, %v1816_v4 }
 0xe1e   :  { %v3629_v22 = vpop.f32.mrb[36].mxu0 }
 0xe1f   :  { %v5086_v25 = vadd.f32 %v4187_v16, %v3629_v22  ;;  %v1951_v8 = vpop.f32.mrb[37].mxu0  ;;  %v4199_v16 = vld [vmem:[%s5493_s4 + $0x90] sm:$0xff] }
 0xe20   :  { %v5091_v31 = vadd.f32 %v4188_v9, %v1951_v8 }
 0xe21   :  { %v2033_v23 = vsel %vm306_vm0, %v5086_v25, -inf }
 0xe22   :  { %2034 = vmax.xlane.f32.xlu0 %v2033_v23  ;;  %v3632_v14 = vpop.f32.mrb[38].mxu0  ;;  %v2030_v39 = vsel %vm306_vm0, %v5091_v31, -inf  ;;  %v4200_v23 = vld [vmem:[%s5493_s4 + $0x88] sm:$0xff] }
 0xe23   :  { %v5100_v30 = vadd.f32 %v4189_v17, %v3632_v14  ;;  %v1961_v28 = vpop.f32.mrb[39].mxu0  ;;  %2031 = vmax.xlane.f32.xlu1 %v2030_v39 }
 0xe24   :  { %v5105_v26 = vadd.f32 %v4190_v38, %v1961_v28  ;;  %v4201_v38 = vld [vmem:[%s5493_s4 + $0xa0] sm:$0xff] }
 0xe25   :  { %v2039_v59 = vsel %vm306_vm0, %v5100_v30, -inf }
 0xe26   :  { %v3635_v52 = vpop.f32.mrb[40].mxu0  ;;  %v2036_v42 = vsel %vm306_vm0, %v5105_v26, -inf }
 0xe27   :  { %v5114_v53 = vadd.f32 %v4191_v2, %v3635_v52  ;;  %v1971_v49 = vpop.f32.mrb[41].mxu0  ;;  %2037 = vmax.xlane.f32.xlu0 %v2036_v42  ;;  %2040 = vmax.xlane.f32.xlu1 %v2039_v59  ;;  %v4202_v42 = vld [vmem:[%s5493_s4 + $0x98] sm:$0xff] }
 0xe28   :  { %v5119_v19 = vadd.f32 %v4192_v18, %v1971_v49 }
 0xe29   :  { %v2045_v54 = vsel %vm306_vm0, %v5114_v53, -inf }
 0xe2a   :  { %v3638_v62 = vpop.f32.mrb[42].mxu0  ;;  %v2042_v21 = vsel %vm306_vm0, %v5119_v19, -inf }
 0xe2b   :  { %v5128_v27 = vadd.f32 %v4193_v57, %v3638_v62  ;;  %v1981_v29 = vpop.f32.mrb[43].mxu0  ;;  %2043 = vmax.xlane.f32.xlu0 %v2042_v21  ;;  %2046 = vmax.xlane.f32.xlu1 %v2045_v54 }
 0xe2c   :  { %v5133_v58 = vadd.f32 %v4194_v61, %v1981_v29 }
 0xe2d   :  { %v2051_v43 = vsel %vm306_vm0, %v5128_v27, -inf }
 0xe2e   :  { %v3641_v32 = vpop.f32.mrb[44].mxu0  ;;  %v2048_v40 = vsel %vm306_vm0, %v5133_v58, -inf }
 0xe2f   :  { %v5142_v45 = vadd.f32 %v4195_v44, %v3641_v32  ;;  %v1991_v12 = vpop.f32.mrb[45].mxu0  ;;  %2049 = vmax.xlane.f32.xlu0 %v2048_v40  ;;  %2052 = vmax.xlane.f32.xlu1 %v2051_v43 }
 0xe30   :  { %v5147_v50 = vadd.f32 %v4196_v46, %v1991_v12 }
 0xe31   :  { %v2057_v51 = vsel %vm306_vm0, %v5142_v45, -inf }
 0xe32   :  { %v3644_v55 = vpop.f32.mrb[46].mxu0  ;;  %v2054_v56 = vsel %vm306_vm0, %v5147_v50, -inf }
 0xe33   :  { %v5156_v63 = vadd.f32 %v4197_v13, %v3644_v55  ;;  %v2001_v15 = vpop.f32.mrb[47].mxu0  ;;  %2055 = vmax.xlane.f32.xlu0 %v2054_v56  ;;  %2058 = vmax.xlane.f32.xlu1 %v2057_v51 }
 0xe34   :  { %v5161_v1 = vadd.f32 %v4198_v0, %v2001_v15 }
 0xe35   :  { %v2063_v6 = vsel %vm306_vm0, %v5156_v63, -inf }
 0xe36   :  { %v3647_v4 = vpop.f32.mrb[48].mxu0  ;;  %v2060_v22 = vsel %vm306_vm0, %v5161_v1, -inf }
 0xe37   :  { %v5170_v8 = vadd.f32 %v4199_v16, %v3647_v4  ;;  %v2011_v9 = vpop.f32.mrb[49].mxu0  ;;  %2061 = vmax.xlane.f32.xlu0 %v2060_v22  ;;  %2064 = vmax.xlane.f32.xlu1 %v2063_v6 }
 0xe38   :  { %v5175_v14 = vadd.f32 %v4200_v23, %v2011_v9 }
 0xe39   :  { %v2069_v39 = vsel %vm306_vm0, %v5170_v8, -inf }
 0xe3a   :  { %v3650_v17 = vpop.f32.mrb[50].mxu0  ;;  %v2066_v28 = vsel %vm306_vm0, %v5175_v14, -inf }
 0xe3b   :  { %v5184_v59 = vadd.f32 %v4201_v38, %v3650_v17  ;;  %v2021_v52 = vpop.f32.mrb[51].mxu0  ;;  %2067 = vmax.xlane.f32.xlu0 %v2066_v28  ;;  %2070 = vmax.xlane.f32.xlu1 %v2069_v39 }
 0xe3c   :  { %v5189_v2 = vadd.f32 %v4202_v42, %v2021_v52 }
 0xe3d   :  { %v2075_v49 = vsel %vm306_vm0, %v5184_v59, -inf }
 0xe3e   :  { %v2072_v18 = vsel %vm306_vm0, %v5189_v2, -inf }
 0xe3f   :  { %2073 = vmax.xlane.f32.xlu0 %v2072_v18  ;;  %2076 = vmax.xlane.f32.xlu1 %v2075_v49 }
 0xeaf   :  { %v2035_v54 = vpop.xlane.xlu0 %2034 }
 0xeb0   :  { %v2079_v62 = vsub.f32 %v5086_v25, %v2035_v54  ;;  %v2032_v21 = vpop.xlane.xlu1 %2031 }
 0xeb1   :  { %v2078_v57 = vsub.f32 %v5091_v31, %v2032_v21 }
 0xeb2   :  { %v2096_v29 = vmul.f32 1.442695, %v2079_v62 }
 0xeb3   :  { %v2094_v61 = vmul.f32 1.442695, %v2078_v57 }
 0xeb4   :  { %4099 = vpow2.f32 %v2096_v29  ;;  %v2038_v43 = vpop.xlane.xlu0 %2037  ;;  %v2041_v32 = vpop.xlane.xlu1 %2040 }
 0xeb5   :  { %4101 = vpow2.f32 %v2094_v61  ;;  %v2080_v40 = vsub.f32 %v5105_v26, %v2038_v43  ;;  %v2081_v44 = vsub.f32 %v5100_v30, %v2041_v32 }
 0xeb7   :  { %v2098_v12 = vmul.f32 1.442695, %v2080_v40  ;;  %v2100_v46 = vmul.f32 1.442695, %v2081_v44 }
 0xeb8   :  { %v2044_v51 = vpop.xlane.xlu0 %2043  ;;  %v2047_v55 = vpop.xlane.xlu1 %2046 }
 0xeb9   :  { %4103 = vpow2.f32 %v2098_v12  ;;  %v2082_v25 = vsub.f32 %v5119_v19, %v2044_v51  ;;  %v2083_v56 = vsub.f32 %v5114_v53, %v2047_v55 }
 0xeba   :  { %4105 = vpow2.f32 %v2100_v46 }
 0xebb   :  { %v2102_v31 = vmul.f32 1.442695, %v2082_v25  ;;  %v2104_v13 = vmul.f32 1.442695, %v2083_v56 }
 0xebc   :  { %v2050_v15 = vpop.xlane.xlu0 %2049  ;;  %v2053_v0 = vpop.xlane.xlu1 %2052 }
 0xebd   :  { %4107 = vpow2.f32 %v2102_v31  ;;  %v2084_v6 = vsub.f32 %v5133_v58, %v2050_v15  ;;  %v2085_v26 = vsub.f32 %v5128_v27, %v2053_v0 }
 0xebe   :  { %v5203_v30 = vpop.eup %4099  ;;  %4109 = vpow2.f32 %v2104_v13 }
 0xebf   :  { %v5205_v4 = vpop.eup %4101  ;;  %v2106_v22 = vmul.f32 1.442695, %v2084_v6  ;;  %v2108_v16 = vmul.f32 1.442695, %v2085_v26  ;;  %v2129_v53 = vsel %vm306_vm0, %v5203_v30, 0.0 }
 0xec0   :  { %v2056_v19 = vpop.xlane.xlu0 %2055  ;;  %2130 = vadd.xlane.f32.xlu1 %v2129_v53  ;;  %v2059_v9 = vpop.xlane.xlu1 %2058  ;;  %v2126_v23 = vsel %vm306_vm0, %v5205_v4, 0.0 }
 0xec1   :  { %4111 = vpow2.f32 %v2106_v22  ;;  %v2086_v58 = vsub.f32 %v5147_v50, %v2056_v19  ;;  %v2087_v27 = vsub.f32 %v5142_v45, %v2059_v9  ;;  %2127 = vadd.xlane.f32.xlu0 %v2126_v23 }
 0xec2   :  { %4113 = vpow2.f32 %v2108_v16 }
 0xec3   :  { %v5213_v39 = vpop.eup %4103  ;;  %v2110_v17 = vmul.f32 1.442695, %v2086_v58  ;;  %v2112_v28 = vmul.f32 1.442695, %v2087_v27 }
 0xec4   :  { %v5215_v38 = vpop.eup %4105  ;;  %v2062_v52 = vpop.xlane.xlu0 %2061  ;;  %v2132_v49 = vsel %vm306_vm0, %v5213_v39, 0.0 }
 0xec5   :  { %v2065_v42 = vpop.xlane.xlu1 %2064  ;;  %4115 = vpow2.f32 %v2110_v17  ;;  %v2088_v18 = vsub.f32 %v5161_v1, %v2062_v52  ;;  %2133 = vadd.xlane.f32.xlu0 %v2132_v49  ;;  %v2135_v45 = vsel %vm306_vm0, %v5215_v38, 0.0 }
 0xec6   :  { %v2089_v50 = vsub.f32 %v5156_v63, %v2065_v42  ;;  %4117 = vpow2.f32 %v2112_v28  ;;  %2136 = vadd.xlane.f32.xlu1 %v2135_v45 }
 0xec7   :  { %v5223_v54 = vpop.eup %4107  ;;  %v2114_v57 = vmul.f32 1.442695, %v2088_v18 }
 0xec8   :  { %v2116_v62 = vmul.f32 1.442695, %v2089_v50  ;;  %v5225_v21 = vpop.eup %4109  ;;  %v2138_v29 = vsel %vm306_vm0, %v5223_v54, 0.0  ;;  %v2068_v31 = vpop.xlane.xlu0 %2067 }
 0xec9   :  { %2139 = vadd.xlane.f32.xlu0 %v2138_v29  ;;  %v2141_v1 = vsel %vm306_vm0, %v5225_v21, 0.0  ;;  %v2071_v13 = vpop.xlane.xlu1 %2070  ;;  %v2090_v15 = vsub.f32 %v5175_v14, %v2068_v31 }
 0xeca   :  { %4119 = vpow2.f32 %v2116_v62  ;;  %2142 = vadd.xlane.f32.xlu1 %v2141_v1  ;;  %v2091_v19 = vsub.f32 %v5170_v8, %v2071_v13 }
 0xecb   :  { %v5231_v63 = vpop.eup %4111  ;;  %4121 = vpow2.f32 %v2114_v57  ;;  %v2118_v6 = vmul.f32 1.442695, %v2090_v15 }
 0xecc   :  { %v5233_v61 = vpop.eup %4113  ;;  %v2144_v43 = vsel %vm306_vm0, %v5231_v63, 0.0  ;;  %v2074_v0 = vpop.xlane.xlu0 %2073  ;;  %v2120_v9 = vmul.f32 1.442695, %v2091_v19 }
 0xecd   :  { %2145 = vadd.xlane.f32.xlu0 %v2144_v43  ;;  %v2147_v32 = vsel %vm306_vm0, %v5233_v61, 0.0  ;;  %v2092_v26 = vsub.f32 %v5189_v2, %v2074_v0  ;;  %v2077_v22 = vpop.xlane.xlu1 %2076  ;;  %4123 = vpow2.f32 %v2118_v6 }
 0xece   :  { %2148 = vadd.xlane.f32.xlu1 %v2147_v32  ;;  %v2093_v53 = vsub.f32 %v5184_v59, %v2077_v22 }
 0xecf   :  { %v5239_v40 = vpop.eup %4115  ;;  %v2122_v16 = vmul.f32 1.442695, %v2092_v26 }
 0xed0   :  { %v5241_v44 = vpop.eup %4117  ;;  %v2150_v12 = vsel %vm306_vm0, %v5239_v40, 0.0 }
 0xed1   :  { %2151 = vadd.xlane.f32.xlu0 %v2150_v12  ;;  %v2153_v46 = vsel %vm306_vm0, %v5241_v44, 0.0  ;;  %4125 = vpow2.f32 %v2122_v16 }
 0xed2   :  { %2154 = vadd.xlane.f32.xlu1 %v2153_v46 }
 0xed4   :  { %v5247_v51 = vpop.eup %4119 }
 0xed5   :  { %v2159_v55 = vsel %vm306_vm0, %v5247_v51, 0.0  ;;  %v5251_v25 = vpop.eup %4121 }
 0xed6   :  { %2160 = vadd.xlane.f32.xlu1 %v2159_v55  ;;  %v2156_v56 = vsel %vm306_vm0, %v5251_v25, 0.0 }
 0xeda   :  { %2157 = vadd.xlane.f32.xlu1 %v2156_v56 }
 0xee7   :  { %3984 = vrot.lane.b32.xlu0 %v5035_v60, %s4205_s29  ;;  %v2124_v60 = vmul.f32 1.442695, %v2093_v53 }
 0xee9   :  { %4127 = vpow2.f32 %v2124_v60 }
 0xeea   :  { %4129 = vpow2.f32 %v2120_v9 }
 0xeeb   :  { %3989 = vrot.lane.b32.xlu1 %v5041_v24, %s4205_s29  ;;  %v5263_v24 = vpop.eup %4123 }
 0xeec   :  { %v2162_v14 = vsel %vm306_vm0, %v5263_v24, 0.0  ;;  %v5267_v23 = vpop.eup %4125 }
 0xeed   :  { %v2168_v2 = vsel %vm306_vm0, %v5267_v23, 0.0 }
 0xef3   :  { %v5271_v58 = vpop.eup %4127 }
 0xef4   :  { %v5273_v8 = vpop.eup %4129  ;;  %v2171_v59 = vsel %vm306_vm0, %v5271_v58, 0.0 }
 0xef5   :  { %v2165_v27 = vsel %vm306_vm0, %v5273_v8, 0.0 }
 0xf06   :  { %2163 = vadd.xlane.f32.xlu0 %v2162_v14 }
 0xf0a   :  { %2169 = vadd.xlane.f32.xlu0 %v2168_v2 }
 0xf0e   :  { %2172 = vadd.xlane.f32.xlu0 %v2171_v59 }
 0xf0f   :  { %2166 = vadd.xlane.f32.xlu1 %v2165_v27 }
 0xf20   :  { %3999 = vrot.lane.b32.xlu1 %v3998_v5, %s4206_s30 }
 0xf24   :  { %3994 = vrot.lane.b32.xlu0 %v3993_v48, %s4206_s30 }
 0xf4d   :  { %v2131_v17 = vpop.xlane.xlu1 %2130 }
 0xf4e   :  { %v2128_v28 = vpop.xlane.xlu0 %2127 }
 0xf4f   :  { %4131 = vrcp.f32 %v2128_v28 }
 0xf50   :  { %4133 = vrcp.f32 %v2131_v17 }
 0xf52   :  { %v2134_v52 = vpop.xlane.xlu0 %2133 }
 0xf53   :  { %v2137_v42 = vpop.xlane.xlu1 %2136  ;;  %4135 = vrcp.f32 %v2134_v52 }
 0xf54   :  { %4137 = vrcp.f32 %v2137_v42 }
 0xf56   :  { %v2140_v49 = vpop.xlane.xlu0 %2139 }
 0xf57   :  { %v2143_v18 = vpop.xlane.xlu1 %2142  ;;  %4139 = vrcp.f32 %v2140_v49 }
 0xf58   :  { %4141 = vrcp.f32 %v2143_v18 }
 0xf59   :  { %v4132_v50 = vpop.eup %4131 }
 0xf5a   :  { %v2146_v45 = vpop.xlane.xlu0 %2145  ;;  %v2190_v62 = vmul.f32 %v4132_v50, %v5205_v4  ;;  %v4134_v46 = vpop.eup %4133 }
 0xf5b   :  { %v2149_v57 = vpop.xlane.xlu1 %2148  ;;  %4143 = vrcp.f32 %v2146_v45  ;;  %v2191_v56 = vmul.f32 %v4134_v46, %v5203_v30 }
 0xf5c   :  { %3659 = vmatprep.mubr.msk.f32.mxu1 %vm306_vm0, %v2190_v62  ;;  %4145 = vrcp.f32 %v2149_v57 }
 0xf5d   :  { %v4136_v55 = vpop.eup %4135 }
 0xf5e   :  { %v2152_v41 = vpop.xlane.xlu0 %2151  ;;  %v4138_v31 = vpop.eup %4137  ;;  %v2192_v13 = vmul.f32 %v4136_v55, %v5213_v39 }
 0xf5f   :  { %v2155_v11 = vpop.xlane.xlu1 %2154  ;;  %4147 = vrcp.f32 %v2152_v41  ;;  %v2193_v0 = vmul.f32 %v4138_v31, %v5215_v38 }
 0xf60   :  { %4149 = vrcp.f32 %v2155_v11 }
 0xf61   :  { %v4140_v15 = vpop.eup %4139 }
 0xf62   :  { %v3985_v5 = vpop.permute.xlu0 %3984  ;;  %v4142_v6 = vpop.eup %4141  ;;  %v2194_v26 = vmul.f32 %v4140_v15, %v5223_v54 }
 0xf63   :  { %v3987_v29 = vunpack.i.h.bf16 %v3985_v5  ;;  %v3986_v47 = vunpack.i.l.bf16 %v3985_v5  ;;  %v2161_v10 = vpop.xlane.xlu1 %2160  ;;  %v2195_v30 = vmul.f32 %v4142_v6, %v5225_v21 }
 0xf65   :  { %v3891_v48 = vpack.c.bf16 %v3987_v29, %v3986_v47  ;;  %v4144_v22 = vpop.eup %4143 }
 0xf66   :  { %v4146_v39 = vpop.eup %4145  ;;  %v2196_v16 = vmul.f32 %v4144_v22, %v5231_v63 }
 0xf67   :  { %v2158_v1 = vpop.xlane.xlu1 %2157  ;;  %3892 = vmatprep.subr.bf16.mxu1 %v3891_v48  ;;  %v2197_v38 = vmul.f32 %v4146_v39, %v5233_v61 }
 0xf68   :  { %3894 = vmatpush3.bf16.msra.mxu1 %v3891_v48  ;;  %4151 = vrcp.f32 %v2158_v1 }
 0xf69   :  { %4153 = vrcp.f32 %v2161_v10  ;;  %v4148_v53 = vpop.eup %4147 }
 0xf6a   :  { %v4150_v19 = vpop.eup %4149  ;;  %v2198_v54 = vmul.f32 %v4148_v53, %v5239_v40 }
 0xf6b   :  { %v3990_v43 = vpop.permute.xlu1 %3989  ;;  %v2199_v21 = vmul.f32 %v4150_v19, %v5241_v44 }
 0xf6c   :  { %v3992_v32 = vunpack.i.h.bf16 %v3990_v43  ;;  %v3991_v4 = vunpack.i.l.bf16 %v3990_v43 }
 0xf6e   :  { %v3895_v12 = vpack.c.bf16 %v3992_v32, %v3991_v4 }
 0xf70   :  { %3896 = vmatprep.subr.bf16.mxu1 %v3895_v12 }
 0xf71   :  { %3898 = vmatpush3.bf16.msra.mxu1 %v3895_v12 }
 0xf72   :  { %v4152_v60 = vpop.eup %4151 }
 0xf73   :  { %v4154_v9 = vpop.eup %4153  ;;  %v2200_v63 = vmul.f32 %v4152_v60, %v5251_v25 }
 0xf74   :  { %3660 = vmatmul.mubr.msk.f32.vlgmr.msra.gmra.mrb[32].mxu1 %vm306_vm0, %v2191_v56  ;;  %v2201_v14 = vmul.f32 %v4154_v9, %v5247_v51 }
 0xf75   :  { %3662 = vmatprep.mubr.msk.f32.mxu1 %vm306_vm0, %v2192_v13 }
 0xf78   :  { %3663 = vmatmul.mubr.msk.f32.gmra.mrb[34].mxu1 %vm306_vm0, %v2193_v0 }
 0xf79   :  { %3665 = vmatprep.mubr.msk.f32.mxu1 %vm306_vm0, %v2194_v26 }
 0xf7c   :  { %3666 = vmatmul.mubr.msk.f32.gmra.mrb[36].mxu1 %vm306_vm0, %v2195_v30 }
 0xf7d   :  { %3668 = vmatprep.mubr.msk.f32.mxu1 %vm306_vm0, %v2196_v16 }
 0xf80   :  { %3669 = vmatmul.mubr.msk.f32.gmra.mrb[38].mxu1 %vm306_vm0, %v2197_v38 }
 0xf81   :  { %3671 = vmatprep.mubr.msk.f32.mxu1 %vm306_vm0, %v2198_v54 }
 0xf84   :  { %3672 = vmatmul.mubr.msk.f32.gmra.mrb[40].mxu1 %vm306_vm0, %v2199_v21 }
 0xf85   :  { %3674 = vmatprep.mubr.msk.f32.mxu1 %vm306_vm0, %v2200_v63 }
 0xf88   :  { %3675 = vmatmul.mubr.msk.f32.gmra.mrb[42].mxu1 %vm306_vm0, %v2201_v14 }
 0xf93   :  { %v2164_v61 = vpop.xlane.xlu0 %2163 }
 0xf94   :  { %4155 = vrcp.f32 %v2164_v61 }
 0xf97   :  { %v2170_v40 = vpop.xlane.xlu0 %2169 }
 0xf98   :  { %4157 = vrcp.f32 %v2170_v40 }
 0xf9b   :  { %v2173_v2 = vpop.xlane.xlu0 %2172 }
 0xf9c   :  { %v2167_v59 = vpop.xlane.xlu1 %2166 }
 0xf9d   :  { %4159 = vrcp.f32 %v2167_v59 }
 0xf9e   :  { %v4156_v27 = vpop.eup %4155  ;;  %4161 = vrcp.f32 %v2173_v2 }
 0xf9f   :  { %v2202_v44 = vmul.f32 %v4156_v27, %v5263_v24  ;;  %v3995_v49 = vpop.permute.xlu0 %3994 }
 0xfa0   :  { %v4000_v18 = vpop.permute.xlu1 %3999  ;;  %v3997_v24 = vunpack.i.h.bf16 %v3995_v49  ;;  %v3996_v50 = vunpack.i.l.bf16 %v3995_v49 }
 0xfa1   :  { %3677 = vmatprep.mubr.msk.f32.mxu1 %vm306_vm0, %v2202_v44  ;;  %v4002_v45 = vunpack.i.h.bf16 %v4000_v18  ;;  %v4001_v62 = vunpack.i.l.bf16 %v4000_v18 }
 0xfa2   :  { %v4158_v25 = vpop.eup %4157  ;;  %v3899_v57 = vpack.c.bf16 %v3997_v24, %v3996_v50 }
 0xfa3   :  { %v2204_v52 = vmul.f32 %v4158_v25, %v5267_v23  ;;  %v3903_v41 = vpack.c.bf16 %v4002_v45, %v4001_v62 }
 0xfa4   :  { %3900 = vmatprep.subr.bf16.mxu1 %v3899_v57 }
 0xfa5   :  { %3902 = vmatpush3.bf16.msra.mxu1 %v3899_v57 }
 0xfa6   :  { %3904 = vmatprep.subr.bf16.mxu1 %v3903_v41 }
 0xfa7   :  { %v4160_v17 = vpop.eup %4159 }
 0xfa8   :  { %v2203_v28 = vmul.f32 %v4160_v17, %v5273_v8  ;;  %v4162_v51 = vpop.eup %4161 }
 0xfa9   :  { %v2205_v42 = vmul.f32 %v4162_v51, %v5271_v58  ;;  %3906 = vmatpush3.bf16.msra.mxu1 %v3903_v41 }
 0xfaa   :  { %3678 = vmatmul.mubr.msk.f32.gmra.mrb[44].mxu1 %vm306_vm0, %v2203_v28 }
 0xfab   :  { %3680 = vmatprep.mubr.msk.f32.mxu1 %vm306_vm0, %v2204_v52 }
 0xfae   :  { %3681 = vmatmul.mubr.msk.f32.gmra.mrb[46].mxu1 %vm306_vm0, %v2205_v42 }
0x1047   :  { %v3661_v23 = vpop.f32.mrb[32].mxu1 }
0x1048   :  { %v2332_v8 = vpop.f32.mrb[33].mxu1  ;;  %v2412_v58 = vmul.f32 %v3661_v23, %v4556_v36 }
0x1049   :  { %v2411_v29 = vmul.f32 %v2332_v8, %v4556_v36  ;;  %v3201_v8 = vld [vmem:[%s5493_s4 + $0xb4] ss:$0 sm:$0xff] }
0x104a   :  { %v2434_v43 = vsel %vm306_vm0, %v2412_v58, 0.0 }
0x104b   :  { %v3664_v11 = vpop.f32.mrb[34].mxu1  ;;  %v2427_v12 = vsel %vm306_vm0, %v2411_v29, 0.0 }
0x104c   :  { %v2342_v5 = vpop.f32.mrb[35].mxu1  ;;  %v2414_v32 = vmul.f32 %v3664_v11, %v4556_v36 }
0x104d   :  { %v2413_v46 = vmul.f32 %v2342_v5, %v4556_v36 }
0x104e   :  { %v2448_v26 = vsel %vm306_vm0, %v2414_v32, 0.0 }
0x104f   :  { %v3667_v47 = vpop.f32.mrb[36].mxu1  ;;  %v2441_v30 = vsel %vm306_vm0, %v2413_v46, 0.0  ;;  %v3150_v46 = vld [vmem:[%s5494_s2 + $0x58] sm:$0xff] }
0x1050   :  { %v2416_v10 = vmul.f32 %v3667_v47, %v4550_v33  ;;  %v2352_v48 = vpop.f32.mrb[37].mxu1 }
0x1051   :  { %v2415_v1 = vmul.f32 %v2352_v48, %v4550_v33 }
0x1052   :  { %v2435_v4 = vsel %vm306_vm0, %v2416_v10, 0.0 }
0x1053   :  { %v2436_v55 = vadd.f32 %v2435_v4, %v2434_v43  ;;  %v2428_v56 = vsel %vm306_vm0, %v2415_v1, 0.0  ;;  %v3670_v31 = vpop.f32.mrb[38].mxu1 }
0x1054   :  { %v2429_v13 = vadd.f32 %v2428_v56, %v2427_v12  ;;  %v2418_v15 = vmul.f32 %v3670_v31, %v4550_v33  ;;  %v2362_v0 = vpop.f32.mrb[39].mxu1 }
0x1055   :  { %v2417_v6 = vmul.f32 %v2362_v0, %v4550_v33 }
0x1056   :  { %v2449_v22 = vsel %vm306_vm0, %v2418_v15, 0.0 }
0x1057   :  { %v2450_v39 = vadd.f32 %v2449_v22, %v2448_v26  ;;  %v2442_v16 = vsel %vm306_vm0, %v2417_v6, 0.0  ;;  %v3673_v36 = vpop.f32.mrb[40].mxu1 }
0x1058   :  { %v2443_v53 = vadd.f32 %v2442_v16, %v2441_v30  ;;  %v2420_v38 = vmul.f32 %v3673_v36, %v4552_v34  ;;  %v2372_v19 = vpop.f32.mrb[41].mxu1 }
0x1059   :  { %v2419_v54 = vmul.f32 %v2372_v19, %v4552_v34 }
0x105a   :  { %v2437_v60 = vsel %vm306_vm0, %v2420_v38, 0.0 }
0x105b   :  { %v2438_v21 = vadd.f32 %v2437_v60, %v2436_v55  ;;  %v2430_v33 = vsel %vm306_vm0, %v2419_v54, 0.0  ;;  %v3676_v9 = vpop.f32.mrb[42].mxu1 }
0x105c   :  { %v2431_v63 = vadd.f32 %v2430_v33, %v2429_v13  ;;  %v2422_v14 = vmul.f32 %v3676_v9, %v4552_v34  ;;  %v2382_v61 = vpop.f32.mrb[43].mxu1 }
0x105d   :  { %v2421_v40 = vmul.f32 %v2382_v61, %v4552_v34 }
0x105e   :  { %v2451_v2 = vsel %vm306_vm0, %v2422_v14, 0.0  ;;  %v3154_v14 = vld [vmem:[%s5494_s2 + $0x78] sm:$0xff] }
0x105f   :  { %v2452_v59 = vadd.f32 %v2451_v2, %v2450_v39  ;;  %v2444_v27 = vsel %vm306_vm0, %v2421_v40, 0.0 }
0x1060   :  { %v2445_v44 = vadd.f32 %v2444_v27, %v2443_v53 }
0x107d   :  { %v3679_v25 = vpop.f32.mrb[44].mxu1 }
0x107e   :  { %v2424_v17 = vmul.f32 %v3679_v25, %v4554_v35  ;;  %v2392_v28 = vpop.f32.mrb[45].mxu1 }
0x107f   :  { %v2423_v51 = vmul.f32 %v2392_v28, %v4554_v35 }
0x1080   :  { %v2439_v52 = vsel %vm306_vm0, %v2424_v17, 0.0 }
0x1081   :  { %v2440_v42 = vadd.f32 %v2439_v52, %v2438_v21  ;;  %v2432_v49 = vsel %vm306_vm0, %v2423_v51, 0.0  ;;  %v3682_v18 = vpop.f32.mrb[46].mxu1 }
0x1082   :  { %v2433_v24 = vadd.f32 %v2432_v49, %v2431_v63  ;;  %v2426_v34 = vmul.f32 %v3682_v18, %v4554_v35  ;;  %v2402_v50 = vpop.f32.mrb[47].mxu1  ;;  %v3152_v63 = vld [vmem:[%s5494_s2 + $0x68] sm:$0xff] }
0x1083   :  { %v2425_v45 = vmul.f32 %v2402_v50, %v4554_v35  ;;  %v3911_v61 = vpack.c.bf16 %v3154_v14, %v3152_v63 }
0x1084   :  { %v2453_v62 = vsel %vm306_vm0, %v2426_v34, 0.0  ;;  %3691 = vmatprep.mubr.msk.f32.mxu1 %vm306_vm0, %v2433_v24  ;;  %v3202_v24 = vld [vmem:[%s5493_s4 + $0xb2] ss:$0 sm:$0xff] }
0x1085   :  { %v2454_v57 = vadd.f32 %v2453_v62, %v2452_v59  ;;  %v2446_v41 = vsel %vm306_vm0, %v2425_v45, 0.0  ;;  %3692 = vmatmul.mubr.msk.f32.vlgmr.msra.gmra.mrb[48].mxu1 %vm306_vm0, %v2440_v42  ;;  %v3203_v62 = vld [vmem:[%s5493_s4 + $0xb3] ss:$0 sm:$0xff] }
0x1086   :  { %v2447_v23 = vadd.f32 %v2446_v41, %v2445_v44 }
0x1088   :  { %3694 = vmatprep.mubr.msk.f32.mxu1 %vm306_vm0, %v2447_v23 }
0x1089   :  { %3695 = vmatmul.mubr.msk.f32.gmra.mrb[50].mxu1 %vm306_vm0, %v2454_v57 }
0x1158   :  { %v3693_v11 = vpop.f32.mrb[48].mxu1 }
0x1159   :  { %v2569_v35 = vadd.f32 %v3693_v11, %v4971_v37  ;;  %v2549_v5 = vpop.f32.mrb[49].mxu1 }
0x115a   :  { %v2568_v58 = vadd.f32 %v2549_v5, %v4973_v20 }
0x115b   :  { %v5360_v29 = vadd.f32 %v3201_v8, %v2569_v35 }
0x115c   :  { %v5362_v47 = vadd.f32 %v3201_v8, %v2568_v58  ;;  %v3696_v10 = vpop.f32.mrb[50].mxu1 }
0x115d   :  { %v2571_v48 = vadd.f32 %v3696_v10, %v4981_v3  ;;  %v2559_v1 = vpop.f32.mrb[51].mxu1  ;;  %v2583_v43 = vsel %vm306_vm0, %v5360_v29, 0.0 }
0x115e   :  { %v2570_v32 = vadd.f32 %v2559_v1, %v4983_v7  ;;  %2584 = vadd.xlane.f32.xlu0 %v2583_v43  ;;  %v2580_v37 = vsel %vm306_vm0, %v5362_v47, 0.0  ;;  %v3148_v7 = vld [vmem:[%s5494_s2 + $0x48] sm:$0xff] }
0x115f   :  { %v5370_v4 = vadd.f32 %v3201_v8, %v2571_v48  ;;  %2581 = vadd.xlane.f32.xlu1 %v2580_v37  ;;  %v3907_v55 = vpack.c.bf16 %v3150_v46, %v3148_v7  ;;  %v3210_v37 = vld [vmem:[%s5495_s3 + $0x48] sm:$0xff]  ;;  %v3212_v7 = vld [vmem:[%s5495_s3 + $0x58] sm:$0xff] }
0x1160   :  { %v5372_v20 = vadd.f32 %v3201_v8, %v2570_v32  ;;  %v3209_v32 = vld [vmem:[%s5495_s3 + $0x40] sm:$0xff] }
0x1161   :  { %v2589_v12 = vsel %vm306_vm0, %v5370_v4, 0.0  ;;  %3908 = vmatprep.subr.bf16.mxu0 %v3907_v55 }
0x1162   :  { %v2586_v3 = vsel %vm306_vm0, %v5372_v20, 0.0  ;;  %3910 = vmatpush3.bf16.msra.mxu0 %v3907_v55  ;;  %v3213_v55 = vld [vmem:[%s5495_s3 + $0x60] sm:$0xff] }
0x1163   :  { %2590 = vadd.xlane.f32.xlu1 %v2589_v12  ;;  %2587 = vadd.xlane.f32.xlu0 %v2586_v3  ;;  %v3915_v12 = vpack.c.bf16 %v3210_v37, %v3209_v32  ;;  %v3211_v3 = vld [vmem:[%s5495_s3 + $0x50] sm:$0xff] }
0x1164   :  { %3912 = vmatprep.subr.bf16.mxu0 %v3911_v61  ;;  %v3919_v46 = vpack.c.bf16 %v3212_v7, %v3211_v3 }
0x1165   :  { %3916 = vmatprep.subr.bf16.mxu1 %v3915_v12 }
0x1166   :  { %3914 = vmatpush3.bf16.msra.mxu0 %v3911_v61  ;;  %3918 = vmatpush3.bf16.msra.mxu1 %v3915_v12 }
0x1167   :  { %3920 = vmatprep.subr.bf16.mxu1 %v3919_v46 }
0x116a   :  { %3922 = vmatpush3.bf16.msra.mxu1 %v3919_v46 }
0x11eb   :  { %v2585_v56 = vpop.xlane.xlu0 %2584 }
0x11ec   :  { %v2593_v31 = vmul.f32 0.03125, %v2585_v56  ;;  %v2582_v13 = vpop.xlane.xlu1 %2581  ;;  %v3214_v56 = vld [vmem:[%s5495_s3 + $0x68] sm:$0xff] }
0x11ed   :  { %v2592_v15 = vmul.f32 0.03125, %v2582_v13  ;;  %v3215_v13 = vld [vmem:[%s5495_s3 + $0x70] sm:$0xff] }
0x11ee   :  { %v2597_v0 = vsub.f32 %v5360_v29, %v2593_v31  ;;  %v3923_v31 = vpack.c.bf16 %v3214_v56, %v3213_v55 }
0x11ef   :  { %v2596_v6 = vsub.f32 %v5362_v47, %v2592_v15  ;;  %v3216_v15 = vld [vmem:[%s5495_s3 + $0x78] sm:$0xff] }
0x11f0   :  { %v2591_v26 = vpop.xlane.xlu1 %2590  ;;  %v2588_v22 = vpop.xlane.xlu0 %2587  ;;  %v2601_v30 = vmul.f32 %v2597_v0, %v2597_v0  ;;  %3924 = vmatprep.subr.bf16.mxu1 %v3923_v31 }
0x11f1   :  { %v2595_v39 = vmul.f32 0.03125, %v2591_v26  ;;  %v2594_v16 = vmul.f32 0.03125, %v2588_v22  ;;  %v2600_v36 = vmul.f32 %v2596_v6, %v2596_v6  ;;  %3926 = vmatpush3.bf16.msra.mxu1 %v3923_v31 }
0x11f2   :  { %v2607_v53 = vsel %vm306_vm0, %v2601_v30, 0.0 }
0x11f3   :  { %v2599_v38 = vsub.f32 %v5370_v4, %v2595_v39  ;;  %v2598_v19 = vsub.f32 %v5372_v20, %v2594_v16  ;;  %2608 = vadd.xlane.f32.xlu1 %v2607_v53  ;;  %v2604_v54 = vsel %vm306_vm0, %v2600_v36, 0.0 }
0x11f4   :  { %2605 = vadd.xlane.f32.xlu0 %v2604_v54 }
0x11f5   :  { %v2603_v60 = vmul.f32 %v2599_v38, %v2599_v38  ;;  %v2602_v21 = vmul.f32 %v2598_v19, %v2598_v19 }
0x11f7   :  { %v2613_v33 = vsel %vm306_vm0, %v2603_v60, 0.0  ;;  %v2610_v9 = vsel %vm306_vm0, %v2602_v21, 0.0 }
0x11f8   :  { %2614 = vadd.xlane.f32.xlu1 %v2613_v33  ;;  %2611 = vadd.xlane.f32.xlu0 %v2610_v9 }
0x1280   :  { %v2609_v40 = vpop.xlane.xlu1 %2608 }
0x1281   :  { %v2617_v2 = vmul.f32 0.03125, %v2609_v40  ;;  %v2606_v59 = vpop.xlane.xlu0 %2605 }
0x1282   :  { %v2616_v27 = vmul.f32 0.03125, %v2606_v59 }
0x1283   :  { %v2621_v44 = vadd.f32 1e-05, %v2617_v2 }
0x1284   :  { %v2620_v25 = vadd.f32 1e-05, %v2616_v27 }
0x1285   :  { %4163 = vrsqrt.f32 %v2621_v44  ;;  %v2615_v17 = vpop.xlane.xlu1 %2614  ;;  %v2612_v28 = vpop.xlane.xlu0 %2611 }
0x1286   :  { %4165 = vrsqrt.f32 %v2620_v25  ;;  %v2619_v51 = vmul.f32 0.03125, %v2615_v17  ;;  %v2618_v52 = vmul.f32 0.03125, %v2612_v28 }
0x1288   :  { %v2623_v42 = vadd.f32 1e-05, %v2619_v51  ;;  %v2622_v49 = vadd.f32 1e-05, %v2618_v52 }
0x128a   :  { %4167 = vrsqrt.f32 %v2623_v42 }
0x128b   :  { %4169 = vrsqrt.f32 %v2622_v49 }
0x128f   :  { %v4164_v18 = vpop.eup %4163 }
0x1290   :  { %v4166_v34 = vpop.eup %4165  ;;  %v2629_v50 = vmul.f32 %v4164_v18, %v2597_v0  ;;  %v3927_v0 = vpack.c.bf16 %v3216_v15, %v3215_v13 }
0x1291   :  { %v2628_v45 = vmul.f32 %v4166_v34, %v2596_v6  ;;  %v3204_v6 = vld [vmem:[%s5493_s4 + $0xb6] ss:$0 sm:$0xff] }
0x1292   :  { %v2637_v57 = vmul.f32 %v3202_v24, %v2629_v50  ;;  %3928 = vmatprep.subr.bf16.mxu1 %v3927_v0 }
0x1293   :  { %v2636_v41 = vmul.f32 %v3202_v24, %v2628_v45  ;;  %3930 = vmatpush3.bf16.msra.mxu1 %v3927_v0 }
0x1294   :  { %v4168_v23 = vpop.eup %4167  ;;  %v2645_v5 = vadd.f32 %v3203_v62, %v2637_v57 }
0x1295   :  { %v4170_v8 = vpop.eup %4169  ;;  %v2644_v11 = vadd.f32 %v3203_v62, %v2636_v41  ;;  %v2631_v35 = vmul.f32 %v4168_v23, %v2599_v38 }
0x1296   :  { %v2630_v58 = vmul.f32 %v4170_v8, %v2598_v19 }
0x1297   :  { %3705 = vmatprep.mubr.msk.f32.mxu0 %vm306_vm0, %v2644_v11  ;;  %v2639_v10 = vmul.f32 %v3202_v24, %v2631_v35 }
0x1298   :  { %3706 = vmatmul.mubr.msk.f32.vlgmr.msra.gmra.mrb[52].mxu0 %vm306_vm0, %v2645_v5  ;;  %v2638_v48 = vmul.f32 %v3202_v24, %v2630_v58 }
0x1299   :  { %v2647_v1 = vadd.f32 %v3203_v62, %v2639_v10 }
0x129a   :  { %v2646_v43 = vadd.f32 %v3203_v62, %v2638_v48  ;;  %v3221_v48 = vld [vmem:[%s5493_s4 + $0xb5] ss:$0 sm:$0xff] }
0x129c   :  { %3708 = vmatprep.mubr.msk.f32.mxu0 %vm306_vm0, %v2646_v43 }
0x129d   :  { %3709 = vmatmul.mubr.msk.f32.gmra.mrb[54].mxu0 %vm306_vm0, %v2647_v1 }
0x136b   :  { %v3707_v26 = vpop.f32.mrb[52].mxu0 }
0x136c   :  { %v2736_v22 = vadd.f32 %v3707_v26, %v3204_v6  ;;  %v2730_v30 = vpop.f32.mrb[53].mxu0 }
0x136d   :  { %v2731_v39 = vadd.f32 %v3204_v6, %v2730_v30 }
0x136e   :  { %v2750_v16 = vmul.f32 %v2736_v22, %v2736_v22 }
0x136f   :  { %v2749_v36 = vmul.f32 %v2731_v39, %v2731_v39 }
0x1370   :  { %v2754_v53 = vmul.f32 %v2750_v16, %v2736_v22  ;;  %v3710_v38 = vpop.f32.mrb[54].mxu0 }
0x1371   :  { %v2753_v19 = vmul.f32 %v2749_v36, %v2731_v39  ;;  %v2746_v54 = vadd.f32 %v3710_v38, %v3204_v6  ;;  %v2740_v60 = vpop.f32.mrb[55].mxu0 }
0x1372   :  { %v2758_v21 = vmul.f32 0.044715, %v2754_v53  ;;  %v2741_v33 = vadd.f32 %v3204_v6, %v2740_v60 }
0x1373   :  { %v2757_v9 = vmul.f32 0.044715, %v2753_v19  ;;  %v2752_v63 = vmul.f32 %v2746_v54, %v2746_v54 }
0x1374   :  { %v2762_v14 = vadd.f32 %v2758_v21, %v2736_v22  ;;  %v2751_v61 = vmul.f32 %v2741_v33, %v2741_v33 }
0x1375   :  { %v2761_v40 = vadd.f32 %v2757_v9, %v2731_v39  ;;  %v2756_v2 = vmul.f32 %v2752_v63, %v2746_v54 }
0x1376   :  { %v2766_v59 = vmul.f32 0.7978846, %v2762_v14  ;;  %v2755_v27 = vmul.f32 %v2751_v61, %v2741_v33 }
0x1377   :  { %v2765_v44 = vmul.f32 0.7978846, %v2761_v40  ;;  %v2760_v25 = vmul.f32 0.044715, %v2756_v2  ;;  %v2906_v40 = vld [vmem:[%s5493_s4 + $0xc8] sm:$0xff]  ;;  %v2907_v2 = vld [vmem:[%s5493_s4 + $0xd0] sm:$0xff] }
0x1378   :  { %4171 = vtanh.f32 %v2766_v59  ;;  %v2759_v17 = vmul.f32 0.044715, %v2755_v27  ;;  %v3931_v59 = vpack.c.bf16 %v2907_v2, %v2906_v40  ;;  %v2908_v27 = vld [vmem:[%s5493_s4 + $0xd8] sm:$0xff] }
0x1379   :  { %4173 = vtanh.f32 %v2765_v44  ;;  %v2764_v28 = vadd.f32 %v2760_v25, %v2746_v54  ;;  %v2909_v44 = vld [vmem:[%s5493_s4 + $0xe0] sm:$0xff] }
0x137a   :  { %v2763_v51 = vadd.f32 %v2759_v17, %v2741_v33  ;;  %3932 = vmatprep.subr.bf16.mxu0 %v3931_v59  ;;  %v3935_v25 = vpack.c.bf16 %v2909_v44, %v2908_v27 }
0x137b   :  { %v2768_v52 = vmul.f32 0.7978846, %v2764_v28  ;;  %3934 = vmatpush3.bf16.msra.mxu0 %v3931_v59 }
0x137c   :  { %v2767_v42 = vmul.f32 0.7978846, %v2763_v51  ;;  %3936 = vmatprep.subr.bf16.mxu0 %v3935_v25 }
0x137d   :  { %4175 = vtanh.f32 %v2768_v52 }
0x137e   :  { %4177 = vtanh.f32 %v2767_v42 }
0x137f   :  { %3938 = vmatpush3.bf16.msra.mxu0 %v3935_v25 }
0x1382   :  { %v4172_v49 = vpop.eup %4171 }
0x1383   :  { %v4174_v18 = vpop.eup %4173  ;;  %v2774_v24 = vadd.f32 1.0, %v4172_v49 }
0x1384   :  { %v2773_v34 = vadd.f32 1.0, %v4174_v18 }
0x1385   :  { %v2778_v50 = vmul.f32 0.5, %v2774_v24 }
0x1386   :  { %v2777_v45 = vmul.f32 0.5, %v2773_v34 }
0x1387   :  { %v4176_v62 = vpop.eup %4175  ;;  %v2782_v8 = vmul.f32 %v2778_v50, %v2736_v22 }
0x1388   :  { %v4178_v57 = vpop.eup %4177  ;;  %v2781_v41 = vmul.f32 %v2777_v45, %v2731_v39  ;;  %v2776_v23 = vadd.f32 1.0, %v4176_v62 }
0x1389   :  { %v2775_v11 = vadd.f32 1.0, %v4178_v57 }
0x138a   :  { %3727 = vmatprep.mubr.msk.f32.mxu1 %vm1510_vm2, %v2781_v41  ;;  %v2780_v35 = vmul.f32 0.5, %v2776_v23  ;;  %v3222_v41 = vld [vmem:[%s5493_s4 + $0xb8] ss:$0 sm:$0xff] }
0x138b   :  { %3728 = vmatmul.mubr.msk.f32.vlgmr.msra.gmra.mrb[52].mxu1 %vm1510_vm2, %v2782_v8  ;;  %v2779_v5 = vmul.f32 0.5, %v2775_v11 }
0x138c   :  { %v2784_v10 = vmul.f32 %v2780_v35, %v2746_v54  ;;  %v3223_v35 = vld [vmem:[%s5493_s4 + $0xb9] ss:$0 sm:$0xff] }
0x138d   :  { %v2783_v58 = vmul.f32 %v2779_v5, %v2741_v33 }
0x138f   :  { %3730 = vmatprep.mubr.msk.f32.mxu1 %vm1510_vm2, %v2783_v58 }
0x1390   :  { %3731 = vmatmul.mubr.msk.f32.gmra.mrb[54].mxu1 %vm1510_vm2, %v2784_v10 }
0x145e   :  { %v3729_v1 = vpop.f32.mrb[52].mxu1 }
0x145f   :  { %v2892_v43 = vadd.f32 %v3729_v1, %v5360_v29  ;;  %v2872_v32 = vpop.f32.mrb[53].mxu1 }
0x1460   :  { %v2891_v37 = vadd.f32 %v2872_v32, %v5362_v47 }
0x1461   :  { %v2900_v12 = vadd.f32 %v3221_v48, %v2892_v43 }
0x1462   :  { %v2899_v3 = vadd.f32 %v3221_v48, %v2891_v37 }
0x1463   :  { %v3732_v7 = vpop.f32.mrb[54].mxu1  ;;  %v2913_v46 = vsel %vm306_vm0, %v2900_v12, 0.0 }
0x1464   :  { %v2894_v55 = vadd.f32 %v3732_v7, %v5370_v4  ;;  %v2882_v56 = vpop.f32.mrb[55].mxu1  ;;  %2914 = vadd.xlane.f32.xlu1 %v2913_v46  ;;  %v2910_v31 = vsel %vm306_vm0, %v2899_v3, 0.0 }
0x1465   :  { %v2893_v13 = vadd.f32 %v2882_v56, %v5372_v20  ;;  %2911 = vadd.xlane.f32.xlu0 %v2910_v31 }
0x1466   :  { %v2902_v15 = vadd.f32 %v3221_v48, %v2894_v55  ;;  %v3224_v55 = vld [vmem:[%s5493_s4 + $0xc0] ss:$0 sm:$0xff] }
0x1467   :  { %v2901_v0 = vadd.f32 %v3221_v48, %v2893_v13 }
0x1468   :  { %v2919_v29 = vsel %vm306_vm0, %v2902_v15, 0.0 }
0x1469   :  { %2920 = vadd.xlane.f32.xlu1 %v2919_v29  ;;  %v2916_v47 = vsel %vm306_vm0, %v2901_v0, 0.0 }
0x146a   :  { %2917 = vadd.xlane.f32.xlu0 %v2916_v47 }
0x14f1   :  { %v2915_v6 = vpop.xlane.xlu1 %2914 }
0x14f2   :  { %v2923_v26 = vmul.f32 0.03125, %v2915_v6  ;;  %v2912_v22 = vpop.xlane.xlu0 %2911 }
0x14f3   :  { %v2922_v30 = vmul.f32 0.03125, %v2912_v22 }
0x14f4   :  { %v2927_v4 = vsub.f32 %v2900_v12, %v2923_v26 }
0x14f5   :  { %v2926_v39 = vsub.f32 %v2899_v3, %v2922_v30 }
0x14f6   :  { %v2921_v16 = vpop.xlane.xlu1 %2920  ;;  %v2931_v36 = vmul.f32 %v2927_v4, %v2927_v4 }
0x14f7   :  { %v2925_v53 = vmul.f32 0.03125, %v2921_v16  ;;  %v2918_v38 = vpop.xlane.xlu0 %2917  ;;  %v2930_v20 = vmul.f32 %v2926_v39, %v2926_v39 }
0x14f8   :  { %v2924_v19 = vmul.f32 0.03125, %v2918_v38  ;;  %v2937_v54 = vsel %vm306_vm0, %v2931_v36, 0.0 }
0x14f9   :  { %v2929_v60 = vsub.f32 %v2902_v15, %v2925_v53  ;;  %2938 = vadd.xlane.f32.xlu1 %v2937_v54  ;;  %v2934_v21 = vsel %vm306_vm0, %v2930_v20, 0.0 }
0x14fa   :  { %v2928_v33 = vsub.f32 %v2901_v0, %v2924_v19  ;;  %2935 = vadd.xlane.f32.xlu0 %v2934_v21 }
0x14fb   :  { %v2933_v9 = vmul.f32 %v2929_v60, %v2929_v60 }
0x14fc   :  { %v2932_v63 = vmul.f32 %v2928_v33, %v2928_v33 }
0x14fd   :  { %v2943_v14 = vsel %vm306_vm0, %v2933_v9, 0.0 }
0x14fe   :  { %2944 = vadd.xlane.f32.xlu1 %v2943_v14  ;;  %v2940_v61 = vsel %vm306_vm0, %v2932_v63, 0.0 }
0x14ff   :  { %2941 = vadd.xlane.f32.xlu0 %v2940_v61 }
0x1586   :  { %v2939_v17 = vpop.xlane.xlu1 %2938 }
0x1587   :  { %v2947_v28 = vmul.f32 0.03125, %v2939_v17  ;;  %v2936_v51 = vpop.xlane.xlu0 %2935 }
0x1588   :  { %v2946_v52 = vmul.f32 0.03125, %v2936_v51 }
0x1589   :  { %v2951_v42 = vadd.f32 1e-05, %v2947_v28 }
0x158a   :  { %v2950_v49 = vadd.f32 1e-05, %v2946_v52 }
0x158b   :  { %4179 = vrsqrt.f32 %v2951_v42  ;;  %v2945_v18 = vpop.xlane.xlu1 %2944 }
0x158c   :  { %4181 = vrsqrt.f32 %v2950_v49  ;;  %v2949_v24 = vmul.f32 0.03125, %v2945_v18  ;;  %v2942_v34 = vpop.xlane.xlu0 %2941 }
0x158d   :  { %v2948_v50 = vmul.f32 0.03125, %v2942_v34 }
0x158e   :  { %v2953_v45 = vadd.f32 1e-05, %v2949_v24 }
0x158f   :  { %v2952_v62 = vadd.f32 1e-05, %v2948_v50 }
0x1590   :  { %4183 = vrsqrt.f32 %v2953_v45 }
0x1591   :  { %4185 = vrsqrt.f32 %v2952_v62 }
0x1595   :  { %v4180_v57 = vpop.eup %4179 }
0x1596   :  { %v4182_v23 = vpop.eup %4181  ;;  %v2959_v8 = vmul.f32 %v4180_v57, %v2927_v4 }
0x1597   :  { %v2958_v11 = vmul.f32 %v4182_v23, %v2926_v39 }
0x1598   :  { %v2967_v5 = vmul.f32 %v3222_v41, %v2959_v8 }
0x1599   :  { %v2966_v58 = vmul.f32 %v3222_v41, %v2958_v11 }
0x159a   :  { %v4184_v10 = vpop.eup %4183  ;;  %v2975_v32 = vadd.f32 %v3223_v35, %v2967_v5 }
0x159b   :  { %v4186_v48 = vpop.eup %4185  ;;  %v2974_v1 = vadd.f32 %v3223_v35, %v2966_v58  ;;  %v2961_v43 = vmul.f32 %v4184_v10, %v2929_v60 }
0x159c   :  { %v2960_v37 = vmul.f32 %v4186_v48, %v2928_v33 }
0x159d   :  { %3741 = vmatprep.mubr.msk.f32.mxu0 %vm306_vm0, %v2974_v1  ;;  %v2969_v12 = vmul.f32 %v3222_v41, %v2961_v43 }
0x159e   :  { %3742 = vmatmul.mubr.msk.f32.vlgmr.msra.gmra.mrb[56].mxu0 %vm306_vm0, %v2975_v32  ;;  %v2968_v3 = vmul.f32 %v3222_v41, %v2960_v37 }
0x159f   :  { %v2977_v46 = vadd.f32 %v3223_v35, %v2969_v12 }
0x15a0   :  { %v2976_v7 = vadd.f32 %v3223_v35, %v2968_v3 }
0x15a2   :  { %3744 = vmatprep.mubr.msk.f32.mxu0 %vm306_vm0, %v2976_v7 }
0x15a3   :  { %3745 = vmatmul.mubr.msk.f32.gmra.mrb[58].mxu0 %vm306_vm0, %v2977_v46 }
0x1671   :  { %v3743_v56 = vpop.f32.mrb[56].mxu0 }
0x1672   :  { %v3066_v31 = vadd.f32 %v3743_v56, %v3224_v55  ;;  %v3060_v13 = vpop.f32.mrb[57].mxu0 }
0x1673   :  { %v3061_v15 = vadd.f32 %v3224_v55, %v3060_v13 }
0x1674   :  { %3080 = vst [vmem:[%s5496_s5 + $0x8] sm:$0xff] %v3066_v31 }
0x1675   :  { %3079 = vst [vmem:[%s5496_s5] sm:$0xff] %v3061_v15 }
0x1676   :  { %v3746_v0 = vpop.f32.mrb[58].mxu0 }
0x1677   :  { %v3076_v29 = vadd.f32 %v3746_v0, %v3224_v55  ;;  %v3070_v47 = vpop.f32.mrb[59].mxu0 }
0x1678   :  { %v3071_v6 = vadd.f32 %v3224_v55, %v3070_v47 }
0x1679   :  { %3082 = vst [vmem:[%s5496_s5 + $0x18] sm:$0xff] %v3076_v29 }
0x167a   :  { %3081 = vst [vmem:[%s5496_s5 + $0x10] sm:$0xff] %v3071_v6 }

</bundles_post_ra>
